<compile_context>
chip_gen: v6e
topology: v6e:2x2x1
jax: 0.10.0
libtpu: 0.0.40
codegen_flags: <defaults>
</compile_context>

<pallas_src>
import functools

import jax
import jax.numpy as jnp
import numpy as np
from jax.experimental import pallas as pl
from jax.experimental.pallas import tpu as pltpu

FEATURE_SIZE = 1280   # mobilenetv2 feature size (module __init__)
HIDDEN = 256
OUT = 53
OUT_PAD = 128         # lane-dense output stores; sliced to 53 in the wrapper
KSIZE = 5
PAD = 2
BN_EPS = 1e-5
ROW_TILE = 512        # rows (B*T) per grid step


def _round_up(x, m):
    return (x + m - 1) // m * m


def _encoder_head_kernel(x_ref, wconv_ref, bias_ref, wlin_ref, blin_ref, out_ref):
    # x_ref: (TM, 5*F) bf16 im2col rows; wconv_ref: (5*F, 256) bf16 (BN folded).
    h = jnp.dot(x_ref[...], wconv_ref[...], preferred_element_type=jnp.float32)
    h = jnp.maximum(h + bias_ref[...], 0.0)          # conv bias + BN + ReLU

    # Linear(256 -> 53), lane-padded to 128 output channels.
    y = jnp.dot(h.astype(wlin_ref.dtype), wlin_ref[...],
                preferred_element_type=jnp.float32)
    y = y + blin_ref[...]

    # parameters[..., 50] = relu(parameters[..., 50])
    col = jax.lax.broadcasted_iota(jnp.int32, y.shape, 1)
    y = jnp.where(col == 50, jnp.maximum(y, 0.0), y)

    out_ref[...] = y.astype(out_ref.dtype)


@functools.partial(jax.jit, static_argnames=())
def perceptual_encoder_head(feat_maps, params):
    """feat_maps: (B, T, F, H, W) backbone feature maps (NCHW per frame)."""
    B, T, F, H, W = feat_maps.shape
    assert F == FEATURE_SIZE

    # adaptive_avg_pool2d(., (1,1)) in XLA: the only pass over the big tensor.
    pooled = feat_maps.mean(axis=(3, 4))                      # (B, T, F) f32
    pooled = pooled.astype(jnp.bfloat16)                      # cast before im2col
    pooled = jnp.pad(pooled, ((0, 0), (PAD, PAD), (0, 0)))    # tiny time pad only

    # im2col over the 5 temporal taps (tap-major, feature-minor), per batch item
    # so windows never cross batch boundaries.
    x = jnp.concatenate([pooled[:, k:k + T, :] for k in range(KSIZE)], axis=-1)
    M = B * T
    TM = min(ROW_TILE, _round_up(M, 8))
    M_pad = _round_up(M, TM)
    x = x.reshape(M, KSIZE * F)
    x = jnp.pad(x, ((0, M_pad - M), (0, 0)))                  # bf16 already

    # Fold eval-mode BatchNorm (+ conv bias) into the conv weight / one bias.
    inv_std = 1.0 / jnp.sqrt(params["bn_var"] + BN_EPS)
    scale = params["bn_gamma"] * inv_std                                  # (256,)
    w_conv = jnp.transpose(params["conv_w"], (2, 1, 0)).reshape(KSIZE * F, HIDDEN)
    w_conv = (w_conv * scale[None, :]).astype(jnp.bfloat16)               # (5F, 256)
    bias = (scale * params["conv_b"] + params["bn_beta"]
            - params["bn_mean"] * scale).reshape(1, HIDDEN)               # f32

    # Lane-pad the 53-wide linear head to 128 columns (zeros beyond 53).
    w_lin = jnp.zeros((HIDDEN, OUT_PAD), jnp.float32)
    w_lin = w_lin.at[:, :OUT].set(params["lin_w"].T).astype(jnp.bfloat16)
    b_lin = jnp.zeros((1, OUT_PAD), jnp.float32).at[:, :OUT].set(params["lin_b"])

    grid = (M_pad // TM,)
    out = pl.pallas_call(
        _encoder_head_kernel,
        out_shape=jax.ShapeDtypeStruct((M_pad, OUT_PAD), jnp.float32),
        grid_spec=pltpu.PrefetchScalarGridSpec(
            num_scalar_prefetch=0,
            grid=grid,
            in_specs=[
                pl.BlockSpec((TM, KSIZE * F), lambda m: (m, 0)),
                pl.BlockSpec((KSIZE * F, HIDDEN), lambda m: (0, 0)),
                pl.BlockSpec((1, HIDDEN), lambda m: (0, 0)),
                pl.BlockSpec((HIDDEN, OUT_PAD), lambda m: (0, 0)),
                pl.BlockSpec((1, OUT_PAD), lambda m: (0, 0)),
            ],
            out_specs=pl.BlockSpec((TM, OUT_PAD), lambda m: (m, 0)),
        ),
        compiler_params=pltpu.CompilerParams(
            dimension_semantics=("parallel",),
            # 2x x-tiles (13.1 MiB @ TM=512) + 2x folded conv weight (6.4 MiB)
            # + 2x out tiles + small vectors  ->  well under 32 MiB, which is
            # also the scoped-VMEM default on v6e/v7x.
            vmem_limit_bytes=32 * 1024 * 1024,
        ),
    )(x, w_conv, bias, w_lin, b_lin)

    out = out[:M, :OUT].reshape(B, T, OUT)
    return out[..., :50], out[..., 50:]


def perceptual_encoder_head_images(feat_maps, params):
    """Image-batch path (inputs.ndim == 4): feat_maps (N, F, H, W)."""
    expr, jaw = perceptual_encoder_head(feat_maps[None], params)
    return expr[0], jaw[0]


def init_params(key):
    ks = jax.random.split(key, 8)
    return {
        "conv_w": 0.02 * jax.random.normal(ks[0], (HIDDEN, FEATURE_SIZE, KSIZE), jnp.float32),
        "conv_b": 0.01 * jax.random.normal(ks[1], (HIDDEN,), jnp.float32),
        "bn_gamma": 1.0 + 0.1 * jax.random.normal(ks[2], (HIDDEN,), jnp.float32),
        "bn_beta": 0.1 * jax.random.normal(ks[3], (HIDDEN,), jnp.float32),
        "bn_mean": 0.05 * jax.random.normal(ks[4], (HIDDEN,), jnp.float32),
        "bn_var": 1.0 + 0.1 * jnp.abs(jax.random.normal(ks[5], (HIDDEN,), jnp.float32)),
        "lin_w": 0.05 * jax.random.normal(ks[6], (OUT, HIDDEN), jnp.float32),
        "lin_b": 0.01 * jax.random.normal(ks[7], (OUT,), jnp.float32),
    }


def reference(feat_maps, params):
    """Pure-JAX f32 reference mirroring the PyTorch forward (eval-mode BN)."""
    pooled = feat_maps.mean(axis=(3, 4))                # (B, T, F)
    x = jnp.transpose(pooled, (0, 2, 1))                # permute(0, 2, 1) -> (B, F, T)
    y = jax.lax.conv_general_dilated(
        x, params["conv_w"], window_strides=(1,), padding=((PAD, PAD),),
        dimension_numbers=("NCH", "OIH", "NCH"))
    y = y + params["conv_b"][None, :, None]
    y = (y - params["bn_mean"][None, :, None]) / jnp.sqrt(
        params["bn_var"][None, :, None] + BN_EPS)
    y = y * params["bn_gamma"][None, :, None] + params["bn_beta"][None, :, None]
    y = jnp.maximum(y, 0.0)
    y = jnp.transpose(y, (0, 2, 1))                     # (B, T, 256)
    p = y @ params["lin_w"].T + params["lin_b"]
    p = p.at[..., 50].set(jnp.maximum(p[..., 50], 0.0))
    return p[..., :50], p[..., 50:]


if __name__ == "__main__":
    key = jax.random.PRNGKey(0)
    k_feat, k_par = jax.random.split(key)

    # Small shapes: video batch B=2, T=8 frames, backbone feature maps 1280 x 4 x 4.
    B, T, H, W = 2, 8, 4, 4
    feat_maps = jax.random.normal(k_feat, (B, T, FEATURE_SIZE, H, W), jnp.float32)
    params = init_params(k_par)

    expr, jaw = perceptual_encoder_head(feat_maps, params)
    expr = jax.block_until_ready(expr)
    jaw = jax.block_until_ready(jaw)

    expr_ref, jaw_ref = reference(feat_maps, params)
    # bf16 matmul operands (f32 accumulation) -> loosened tolerance vs f32 reference.
    np.testing.assert_allclose(np.asarray(expr), np.asarray(expr_ref), rtol=2e-2, atol=2e-2)
    np.testing.assert_allclose(np.asarray(jaw), np.asarray(jaw_ref), rtol=2e-2, atol=2e-2)
    assert expr.shape == (B, T, 50) and jaw.shape == (B, T, 3)

    print("KERNEL_OK")
</pallas_src>

<mosaic_0001>
module attributes {stable_mosaic.version = 11 : i64} {
  func.func @_encoder_head_kernel(%arg0: i32, %arg1: memref<16x6400xbf16, #tpu.memory_space<vmem>>, %arg2: memref<6400x256xbf16, #tpu.memory_space<vmem>>, %arg3: memref<1x256xf32, #tpu.memory_space<vmem>>, %arg4: memref<256x128xbf16, #tpu.memory_space<vmem>>, %arg5: memref<1x128xf32, #tpu.memory_space<vmem>>, %arg6: memref<16x128xf32, #tpu.memory_space<vmem>>) attributes {dimension_semantics = [#tpu.dimension_semantics<parallel>], iteration_bounds = array<i64: 1>, scalar_prefetch = 0 : i64, scratch_operands = 0 : i64, tpu.core_type = #tpu.core_type<tc>, window_params = [{transform_indices = @transform_0, window_bounds = array<i64: 16, 6400>}, {pipeline_mode = #tpu.pipeline_mode<synchronous>, transform_indices = @transform_1, window_bounds = array<i64: 6400, 256>}, {pipeline_mode = #tpu.pipeline_mode<synchronous>, transform_indices = @transform_2, window_bounds = array<i64: 1, 256>}, {pipeline_mode = #tpu.pipeline_mode<synchronous>, transform_indices = @transform_3, window_bounds = array<i64: 256, 128>}, {pipeline_mode = #tpu.pipeline_mode<synchronous>, transform_indices = @transform_4, window_bounds = array<i64: 1, 128>}, {transform_indices = @transform_5, window_bounds = array<i64: 16, 128>}]} {
    %c0 = arith.constant 0 : index
    %c0_0 = arith.constant 0 : index
    %0 = vector.load %arg1[%c0, %c0_0] : memref<16x6400xbf16, #tpu.memory_space<vmem>>, vector<16x6400xbf16>
    %c0_1 = arith.constant 0 : index
    %c0_2 = arith.constant 0 : index
    %1 = vector.load %arg2[%c0_1, %c0_2] : memref<6400x256xbf16, #tpu.memory_space<vmem>>, vector<6400x256xbf16>
    %cst = arith.constant dense<0.000000e+00> : vector<16x256xf32>
    %2 = tpu.matmul %0, %1, %cst {dimension_numbers = #tpu.dot_dimension_numbers<[1], [0], [0], [1], [0, 0, 1, 1], [], []>} : vector<16x6400xbf16>, vector<6400x256xbf16>, vector<16x256xf32> -> vector<16x256xf32>
    %c0_3 = arith.constant 0 : index
    %c0_4 = arith.constant 0 : index
    %3 = vector.load %arg3[%c0_3, %c0_4] : memref<1x256xf32, #tpu.memory_space<vmem>>, vector<1x256xf32>
    %4 = vector.broadcast %3 : vector<1x256xf32> to vector<16x256xf32>
    %5 = arith.addf %2, %4 : vector<16x256xf32>
    %cst_5 = arith.constant 0.000000e+00 : f32
    %6 = vector.broadcast %cst_5 : f32 to vector<16x256xf32>
    %7 = arith.maximumf %5, %6 : vector<16x256xf32>
    %8 = arith.truncf %7 : vector<16x256xf32> to vector<16x256xbf16>
    %c0_6 = arith.constant 0 : index
    %c0_7 = arith.constant 0 : index
    %9 = vector.load %arg4[%c0_6, %c0_7] : memref<256x128xbf16, #tpu.memory_space<vmem>>, vector<256x128xbf16>
    %cst_8 = arith.constant dense<0.000000e+00> : vector<16x128xf32>
    %10 = tpu.matmul %8, %9, %cst_8 {dimension_numbers = #tpu.dot_dimension_numbers<[1], [0], [0], [1], [0, 0, 1, 1], [], []>} : vector<16x256xbf16>, vector<256x128xbf16>, vector<16x128xf32> -> vector<16x128xf32>
    %c0_9 = arith.constant 0 : index
    %c0_10 = arith.constant 0 : index
    %11 = vector.load %arg5[%c0_9, %c0_10] : memref<1x128xf32, #tpu.memory_space<vmem>>, vector<1x128xf32>
    %12 = vector.broadcast %11 : vector<1x128xf32> to vector<16x128xf32>
    %13 = arith.addf %10, %12 : vector<16x128xf32>
    %14 = tpu.iota {dimensions = array<i32: 1>} : vector<16x128xi32>
    %c50_i32 = arith.constant 50 : i32
    %15 = vector.broadcast %c50_i32 : i32 to vector<16x128xi32>
    %16 = arith.cmpi eq, %14, %15 : vector<16x128xi32>
    %cst_11 = arith.constant 0.000000e+00 : f32
    %17 = vector.broadcast %cst_11 : f32 to vector<16x128xf32>
    %18 = arith.maximumf %13, %17 : vector<16x128xf32>
    %19 = arith.select %16, %18, %13 : vector<16x128xi1>, vector<16x128xf32>
    %c0_12 = arith.constant 0 : index
    %c0_13 = arith.constant 0 : index
    %20 = vector.load %arg6[%c0_12, %c0_13] : memref<16x128xf32, #tpu.memory_space<vmem>>, vector<16x128xf32>
    tpu.vector_store %arg6[%c0_12, %c0_13], %19 {strides = array<i32>} : memref<16x128xf32, #tpu.memory_space<vmem>>, vector<16x128xf32>,
    return
  }
  func.func @transform_0(%arg0: i32) -> (i32, i32) {
    %c0_i32 = arith.constant 0 : i32
    %c0_i32_0 = arith.constant 0 : i32
    return %arg0, %c0_i32 : i32, i32
  }
  func.func @transform_1(%arg0: i32) -> (i32, i32) {
    %c0_i32 = arith.constant 0 : i32
    %c0_i32_0 = arith.constant 0 : i32
    %c0_i32_1 = arith.constant 0 : i32
    return %c0_i32, %c0_i32_0 : i32, i32
  }
  func.func @transform_2(%arg0: i32) -> (i32, i32) {
    %c0_i32 = arith.constant 0 : i32
    %c0_i32_0 = arith.constant 0 : i32
    %c0_i32_1 = arith.constant 0 : i32
    return %c0_i32, %c0_i32_0 : i32, i32
  }
  func.func @transform_3(%arg0: i32) -> (i32, i32) {
    %c0_i32 = arith.constant 0 : i32
    %c0_i32_0 = arith.constant 0 : i32
    %c0_i32_1 = arith.constant 0 : i32
    return %c0_i32, %c0_i32_0 : i32, i32
  }
  func.func @transform_4(%arg0: i32) -> (i32, i32) {
    %c0_i32 = arith.constant 0 : i32
    %c0_i32_0 = arith.constant 0 : i32
    %c0_i32_1 = arith.constant 0 : i32
    return %c0_i32, %c0_i32_0 : i32, i32
  }
  func.func @transform_5(%arg0: i32) -> (i32, i32) {
    %c0_i32 = arith.constant 0 : i32
    %c0_i32_0 = arith.constant 0 : i32
    return %arg0, %c0_i32 : i32, i32
  }
}

</mosaic_0001>

<bundles_post_ra>
// kernel: perceptual_encoder_head.1
= control target key start
LH: loop header
LB: loop body
LE: loop exit
PB: predicated region body
PF: predicated region fallthrough
CT: control target
= control target key end

     0   :  { %s11426_s1 = inlined_call_operand.vmem [shape: bf16[6400,256], index: 1, kind: input, shape index: {}]   ;;  %s11427_s0 = inlined_call_operand.vmem [shape: bf16[16,6400], index: 0, kind: input, shape index: {}]   ;;  %s11428_s3 = inlined_call_operand.vmem [shape: bf16[256,128], index: 3, kind: input, shape index: {}]   ;;  %s11429_s2 = inlined_call_operand.vmem [shape: f32[1,256], index: 2, kind: input, shape index: {}]   ;;  %s11430_s4 = inlined_call_operand.vmem [shape: f32[1,128], index: 4, kind: input, shape index: {}]   ;;  %s11431_s5 = inlined_call_operand.vmem [shape: f32[16,128], index: 5, kind: output, shape index: {}]  }
   0x1   :  { %v7292_v0 = vld [vmem:[%s11426_s1 + $0x74] ss:$8 sps:$4 sm:$0xff]   ;;  %v7294_v1 = vld [vmem:[%s11426_s1 + $0x70] ss:$8 sps:$4 sm:$0xff]   ;;  %v7298_v4 = vld [vmem:[%s11426_s1 + $0x64] ss:$8 sps:$4 sm:$0xff]  }
   0x2   :  { %5133 = vmatprep.subr.bf16.mxu0 %v7292_v0  ;;  %v7295_v2 = vld [vmem:[%s11426_s1 + $0x174] ss:$8 sps:$4 sm:$0xff]   ;;  %v7297_v3 = vld [vmem:[%s11426_s1 + $0x170] ss:$8 sps:$4 sm:$0xff]   ;;  %v7300_v5 = vld [vmem:[%s11426_s1 + $0x60] ss:$8 sps:$4 sm:$0xff]  }
   0x3   :  { %5134 = vmatpush1.bf16.msra.mxu0 %v7294_v1  ;;  %5176 = vmatprep.subr.bf16.mxu1 %v7295_v2  ;;  %v7301_v6 = vld [vmem:[%s11426_s1 + $0x164] ss:$8 sps:$4 sm:$0xff]   ;;  %v7303_v7 = vld [vmem:[%s11426_s1 + $0x160] ss:$8 sps:$4 sm:$0xff]   ;;  %v7304_v8 = vld [vmem:[%s11426_s1 + $0x54] ss:$8 sps:$4 sm:$0xff]  }
   0x4   :  { %5177 = vmatpush1.bf16.msra.mxu1 %v7297_v3  ;;  %5135 = vmatprep.subr.bf16.mxu0 %v7298_v4  ;;  %v7306_v9 = vld [vmem:[%s11426_s1 + $0x50] ss:$8 sps:$4 sm:$0xff]   ;;  %v7307_v10 = vld [vmem:[%s11426_s1 + $0x154] ss:$8 sps:$4 sm:$0xff]   ;;  %v7310_v11 = vld [vmem:[%s11426_s1 + $0x44] ss:$8 sps:$4 sm:$0xff]  }
   0x5   :  { %5178 = vmatprep.subr.bf16.mxu1 %v7301_v6  ;;  %v7309_v12 = vld [vmem:[%s11426_s1 + $0x150] ss:$8 sps:$4 sm:$0xff]   ;;  %v7313_v13 = vld [vmem:[%s11426_s1 + $0x144] ss:$8 sps:$4 sm:$0xff]   ;;  %v7312_v14 = vld [vmem:[%s11426_s1 + $0x40] ss:$8 sps:$4 sm:$0xff]  }
   0x6   :  { %v7316_v15 = vld [vmem:[%s11426_s1 + $0x34] ss:$8 sps:$4 sm:$0xff]   ;;  %v7315_v16 = vld [vmem:[%s11426_s1 + $0x140] ss:$8 sps:$4 sm:$0xff]   ;;  %v7318_v18 = vld [vmem:[%s11426_s1 + $0x30] ss:$8 sps:$4 sm:$0xff]  }
   0x7   :  { %5136 = vmatpush1.bf16.msra.mxu0 %v7300_v5  ;;  %v7319_v17 = vld [vmem:[%s11426_s1 + $0x134] ss:$8 sps:$4 sm:$0xff]   ;;  %v7322_v19 = vld [vmem:[%s11426_s1 + $0x24] ss:$8 sps:$4 sm:$0xff]   ;;  %v7321_v20 = vld [vmem:[%s11426_s1 + $0x130] ss:$8 sps:$4 sm:$0xff]  }
   0x8   :  { %5137 = vmatprep.subr.bf16.mxu0 %v7304_v8  ;;  %5179 = vmatpush1.bf16.msra.mxu1 %v7303_v7  ;;  %v7325_v21 = vld [vmem:[%s11426_s1 + $0x124] ss:$8 sps:$4 sm:$0xff]   ;;  %v7324_v22 = vld [vmem:[%s11426_s1 + $0x20] ss:$8 sps:$4 sm:$0xff]   ;;  %v7328_v23 = vld [vmem:[%s11426_s1 + $0x14] ss:$8 sps:$4 sm:$0xff]  }
   0x9   :  { %5180 = vmatprep.subr.bf16.mxu1 %v7307_v10  ;;  %v7327_v24 = vld [vmem:[%s11426_s1 + $0x120] ss:$8 sps:$4 sm:$0xff]   ;;  %v7331_v25 = vld [vmem:[%s11426_s1 + $0x114] ss:$8 sps:$4 sm:$0xff]   ;;  %v7330_v26 = vld [vmem:[%s11426_s1 + $0x10] ss:$8 sps:$4 sm:$0xff]  }
   0xa   :  { %v7334_v27 = vld [vmem:[%s11426_s1 + $0x4] ss:$8 sps:$4 sm:$0xff]   ;;  %v7333_v28 = vld [vmem:[%s11426_s1 + $0x110] ss:$8 sps:$4 sm:$0xff]   ;;  %v7336_v30 = vld [vmem:[%s11426_s1] ss:$8 sps:$4 sm:$0xff]  }
   0xb   :  { %5138 = vmatpush1.bf16.msra.mxu0 %v7306_v9  ;;  %v7337_v29 = vld [vmem:[%s11426_s1 + $0x104] ss:$8 sps:$4 sm:$0xff]   ;;  %v7340_v31 = vld [vmem:[%s11426_s1 + $0xf4] ss:$8 sps:$4 sm:$0xff]   ;;  %v7339_v32 = vld [vmem:[%s11426_s1 + $0x100] ss:$8 sps:$4 sm:$0xff]  }
   0xc   :  { %5139 = vmatprep.subr.bf16.mxu0 %v7310_v11  ;;  %5181 = vmatpush1.bf16.msra.mxu1 %v7309_v12  ;;  %v7343_v33 = vld [vmem:[%s11426_s1 + $0x1f4] ss:$8 sps:$4 sm:$0xff]   ;;  %v7342_v34 = vld [vmem:[%s11426_s1 + $0xf0] ss:$8 sps:$4 sm:$0xff]   ;;  %v7346_v35 = vld [vmem:[%s11426_s1 + $0xe4] ss:$8 sps:$4 sm:$0xff]  }
   0xd   :  { %5182 = vmatprep.subr.bf16.mxu1 %v7313_v13  ;;  %v7345_v36 = vld [vmem:[%s11426_s1 + $0x1f0] ss:$8 sps:$4 sm:$0xff]   ;;  %v7349_v37 = vld [vmem:[%s11426_s1 + $0x1e4] ss:$8 sps:$4 sm:$0xff]   ;;  %v7348_v38 = vld [vmem:[%s11426_s1 + $0xe0] ss:$8 sps:$4 sm:$0xff]  }
   0xe   :  { %v7352_v39 = vld [vmem:[%s11426_s1 + $0xd4] ss:$8 sps:$4 sm:$0xff]   ;;  %v7351_v40 = vld [vmem:[%s11426_s1 + $0x1e0] ss:$8 sps:$4 sm:$0xff]   ;;  %v7354_v42 = vld [vmem:[%s11426_s1 + $0xd0] ss:$8 sps:$4 sm:$0xff]  }
   0xf   :  { %5140 = vmatpush1.bf16.msra.mxu0 %v7312_v14  ;;  %v7355_v41 = vld [vmem:[%s11426_s1 + $0x1d4] ss:$8 sps:$4 sm:$0xff]   ;;  %v7358_v43 = vld [vmem:[%s11426_s1 + $0xc4] ss:$8 sps:$4 sm:$0xff]   ;;  %v7357_v44 = vld [vmem:[%s11426_s1 + $0x1d0] ss:$8 sps:$4 sm:$0xff]  }
  0x10   :  { %5141 = vmatprep.subr.bf16.mxu0 %v7316_v15  ;;  %5183 = vmatpush1.bf16.msra.mxu1 %v7315_v16  ;;  %v7361_v45 = vld [vmem:[%s11426_s1 + $0x1c4] ss:$8 sps:$4 sm:$0xff]   ;;  %v7360_v46 = vld [vmem:[%s11426_s1 + $0xc0] ss:$8 sps:$4 sm:$0xff]   ;;  %v7364_v48 = vld [vmem:[%s11426_s1 + $0xb4] ss:$8 sps:$4 sm:$0xff]  }
  0x11   :  { %5184 = vmatprep.subr.bf16.mxu1 %v7319_v17  ;;  %v7389_v47 = vld [vmem:[%s11427_s0 + $0x4] ss:$200 sps:$4 sm:$0xff]   ;;  %v7363_v49 = vld [vmem:[%s11426_s1 + $0x1c0] ss:$8 sps:$4 sm:$0xff]   ;;  %v7367_v50 = vld [vmem:[%s11426_s1 + $0x1b4] ss:$8 sps:$4 sm:$0xff]  }
  0x12   :  { %5165 = vmatprep.mubr.bf16.mxu0 %v7389_v47  ;;  %v7396_v51 = vld [vmem:[%s11427_s0 + $0xc] ss:$200 sps:$4 sm:$0xff]   ;;  %v7366_v52 = vld [vmem:[%s11426_s1 + $0xb0] ss:$8 sps:$4 sm:$0xff]   ;;  %v7372_v56 = vld [vmem:[%s11426_s1 + $0xa0] ss:$8 sps:$4 sm:$0xff]  }
  0x13   :  { %5142 = vmatpush1.bf16.msra.mxu0 %v7318_v18  ;;  %v7370_v53 = vld [vmem:[%s11426_s1 + $0xa4] ss:$8 sps:$4 sm:$0xff]   ;;  %5208 = vmatprep.mubr.bf16.mxu1 %v7396_v51  ;;  %v7369_v54 = vld [vmem:[%s11426_s1 + $0x1b0] ss:$8 sps:$4 sm:$0xff]   ;;  %v7376_v57 = vld [vmem:[%s11426_s1 + $0x94] ss:$8 sps:$4 sm:$0xff]  }
  0x14   :  { %5143 = vmatprep.subr.bf16.mxu0 %v7322_v19  ;;  %5185 = vmatpush1.bf16.msra.mxu1 %v7321_v20  ;;  %v7373_v55 = vld [vmem:[%s11426_s1 + $0x1a4] ss:$8 sps:$4 sm:$0xff]   ;;  %v7375_v58 = vld [vmem:[%s11426_s1 + $0x1a0] ss:$8 sps:$4 sm:$0xff]   ;;  %v7379_v59 = vld [vmem:[%s11426_s1 + $0x194] ss:$8 sps:$4 sm:$0xff]  }
  0x15   :  { %5186 = vmatprep.subr.bf16.mxu1 %v7325_v21  ;;  %v7378_v60 = vld [vmem:[%s11426_s1 + $0x90] ss:$8 sps:$4 sm:$0xff]   ;;  %v7382_v61 = vld [vmem:[%s11426_s1 + $0x84] ss:$8 sps:$4 sm:$0xff]   ;;  %v7384_v0 = vld [vmem:[%s11426_s1 + $0x80] ss:$8 sps:$4 sm:$0xff]  }
  0x16   :  { %v7381_v62 = vld [vmem:[%s11426_s1 + $0x190] ss:$8 sps:$4 sm:$0xff]   ;;  %v7385_v63 = vld [vmem:[%s11426_s1 + $0x184] ss:$8 sps:$4 sm:$0xff]   ;;  %v7393_v1 = vld [vmem:[%s11426_s1 + $0x274] ss:$8 sps:$4 sm:$0xff]  }
  0x17   :  { %5144 = vmatpush1.bf16.msra.mxu0 %v7324_v22  ;;  %v7390_v2 = vld [vmem:[%s11426_s1 + $0x180] ss:$8 sps:$4 sm:$0xff]   ;;  %v7399_v4 = vld [vmem:[%s11426_s1 + $0x374] ss:$8 sps:$4 sm:$0xff]   ;;  %v7391_v5 = vld [vmem:[%s11426_s1 + $0x270] ss:$8 sps:$4 sm:$0xff]  }
  0x18   :  { %5145 = vmatprep.subr.bf16.mxu0 %v7328_v23  ;;  %5187 = vmatpush1.bf16.msra.mxu1 %v7327_v24  ;;  %v7387_v3 = vld [vmem:[%s11427_s0] ss:$200 sps:$4 sm:$0xff]   ;;  %v7402_v7 = vld [vmem:[%s11426_s1 + $0x264] ss:$8 sps:$4 sm:$0xff]   ;;  %v7397_v8 = vld [vmem:[%s11426_s1 + $0x370] ss:$8 sps:$4 sm:$0xff]  }
  0x19   :  { %5188 = vmatprep.subr.bf16.mxu1 %v7331_v25  ;;  %v7394_v6 = vld [vmem:[%s11427_s0 + $0x8] ss:$200 sps:$4 sm:$0xff]   ;;  %v7405_v9 = vld [vmem:[%s11426_s1 + $0x364] ss:$8 sps:$4 sm:$0xff]   ;;  %v7408_v11 = vld [vmem:[%s11426_s1 + $0x254] ss:$8 sps:$4 sm:$0xff]  }
  0x1a   :  { %v7400_v10 = vld [vmem:[%s11426_s1 + $0x260] ss:$8 sps:$4 sm:$0xff]   ;;  %v7411_v13 = vld [vmem:[%s11426_s1 + $0x354] ss:$8 sps:$4 sm:$0xff]   ;;  %v7406_v14 = vld [vmem:[%s11426_s1 + $0x250] ss:$8 sps:$4 sm:$0xff]  }
  0x1b   :  { %5146 = vmatpush1.bf16.msra.mxu0 %v7330_v26  ;;  %v7403_v12 = vld [vmem:[%s11426_s1 + $0x360] ss:$8 sps:$4 sm:$0xff]   ;;  %v7414_v15 = vld [vmem:[%s11426_s1 + $0x244] ss:$8 sps:$4 sm:$0xff]   ;;  %v7409_v16 = vld [vmem:[%s11426_s1 + $0x350] ss:$8 sps:$4 sm:$0xff]  }
  0x1c   :  { %5147 = vmatprep.subr.bf16.mxu0 %v7334_v27  ;;  %5189 = vmatpush1.bf16.msra.mxu1 %v7333_v28  ;;  %v7417_v17 = vld [vmem:[%s11426_s1 + $0x344] ss:$8 sps:$4 sm:$0xff]   ;;  %v7412_v18 = vld [vmem:[%s11426_s1 + $0x240] ss:$8 sps:$4 sm:$0xff]   ;;  %v7420_v19 = vld [vmem:[%s11426_s1 + $0x234] ss:$8 sps:$4 sm:$0xff]  }
  0x1d   :  { %5190 = vmatprep.subr.bf16.mxu1 %v7337_v29  ;;  %v7415_v20 = vld [vmem:[%s11426_s1 + $0x340] ss:$8 sps:$4 sm:$0xff]   ;;  %v7423_v21 = vld [vmem:[%s11426_s1 + $0x334] ss:$8 sps:$4 sm:$0xff]   ;;  %v7418_v22 = vld [vmem:[%s11426_s1 + $0x230] ss:$8 sps:$4 sm:$0xff]  }
  0x1e   :  { %v7426_v23 = vld [vmem:[%s11426_s1 + $0x224] ss:$8 sps:$4 sm:$0xff]   ;;  %v7421_v24 = vld [vmem:[%s11426_s1 + $0x330] ss:$8 sps:$4 sm:$0xff]   ;;  %v7424_v26 = vld [vmem:[%s11426_s1 + $0x220] ss:$8 sps:$4 sm:$0xff]  }
  0x1f   :  { %5148 = vmatpush1.bf16.msra.mxu0 %v7336_v30  ;;  %v7429_v25 = vld [vmem:[%s11426_s1 + $0x324] ss:$8 sps:$4 sm:$0xff]   ;;  %v7432_v27 = vld [vmem:[%s11426_s1 + $0x214] ss:$8 sps:$4 sm:$0xff]   ;;  %v7427_v28 = vld [vmem:[%s11426_s1 + $0x320] ss:$8 sps:$4 sm:$0xff]  }
  0x20   :  { %5149 = vmatprep.subr.bf16.mxu0 %v7340_v31  ;;  %5191 = vmatpush1.bf16.msra.mxu1 %v7339_v32  ;;  %v7435_v29 = vld [vmem:[%s11426_s1 + $0x314] ss:$8 sps:$4 sm:$0xff]   ;;  %v7430_v30 = vld [vmem:[%s11426_s1 + $0x210] ss:$8 sps:$4 sm:$0xff]   ;;  %v7438_v32 = vld [vmem:[%s11426_s1 + $0x204] ss:$8 sps:$4 sm:$0xff]  }
  0x21   :  { %5192 = vmatprep.subr.bf16.mxu1 %v7343_v33  ;;  %v7433_v31 = vld [vmem:[%s11426_s1 + $0x310] ss:$8 sps:$4 sm:$0xff]   ;;  %v7492_v33 = vld [vmem:[%s11427_s0 + $0x14] ss:$200 sps:$4 sm:$0xff]   ;;  %v7465_v51 = vld [vmem:[%s11426_s1 + $0x3c4] ss:$8 sps:$4 sm:$0xff]  }
  0x22   :  { %v7459_v47 = vld [vmem:[%s11426_s1 + $0x3d4] ss:$8 sps:$4 sm:$0xff]  }
  0x23   :  { %5150 = vmatpush2.bf16.msra.mxu0 %v7342_v34  ;;  %v7441_v34 = vld [vmem:[%s11426_s1 + $0x304] ss:$8 sps:$4 sm:$0xff]  }
  0x24   :  { %5151 = vmatprep.subr.bf16.mxu0 %v7346_v35  ;;  %5193 = vmatpush2.bf16.msra.mxu1 %v7345_v36  ;;  %v7436_v35 = vld [vmem:[%s11426_s1 + $0x200] ss:$8 sps:$4 sm:$0xff]   ;;  %v7498_v36 = vld [vmem:[%s11427_s0 + $0x1c] ss:$200 sps:$4 sm:$0xff]  }
  0x25   :  { %5194 = vmatprep.subr.bf16.mxu1 %v7349_v37  ;;  %v7444_v37 = vld [vmem:[%s11426_s1 + $0x2f4] ss:$8 sps:$4 sm:$0xff]  }
  0x27   :  { %5152 = vmatpush2.bf16.msra.mxu0 %v7348_v38  ;;  %v7439_v38 = vld [vmem:[%s11426_s1 + $0x300] ss:$8 sps:$4 sm:$0xff]  }
  0x28   :  { %5153 = vmatprep.subr.bf16.mxu0 %v7352_v39  ;;  %5195 = vmatpush2.bf16.msra.mxu1 %v7351_v40  ;;  %v7447_v39 = vld [vmem:[%s11426_s1 + $0x3f4] ss:$8 sps:$4 sm:$0xff]   ;;  %v7442_v40 = vld [vmem:[%s11426_s1 + $0x2f0] ss:$8 sps:$4 sm:$0xff]  }
  0x29   :  { %5196 = vmatprep.subr.bf16.mxu1 %v7355_v41  ;;  %v7450_v41 = vld [vmem:[%s11426_s1 + $0x2e4] ss:$8 sps:$4 sm:$0xff]  }
  0x2b   :  { %5154 = vmatpush2.bf16.msra.mxu0 %v7354_v42  ;;  %v7445_v42 = vld [vmem:[%s11426_s1 + $0x3f0] ss:$8 sps:$4 sm:$0xff]  }
  0x2c   :  { %5155 = vmatprep.subr.bf16.mxu0 %v7358_v43  ;;  %5197 = vmatpush2.bf16.msra.mxu1 %v7357_v44  ;;  %v7453_v43 = vld [vmem:[%s11426_s1 + $0x3e4] ss:$8 sps:$4 sm:$0xff]   ;;  %v7448_v44 = vld [vmem:[%s11426_s1 + $0x2e0] ss:$8 sps:$4 sm:$0xff]  }
  0x2d   :  { %5198 = vmatprep.subr.bf16.mxu1 %v7361_v45  ;;  %v7456_v45 = vld [vmem:[%s11426_s1 + $0x2d4] ss:$8 sps:$4 sm:$0xff]  }
  0x2f   :  { %5156 = vmatpush2.bf16.msra.mxu0 %v7360_v46  ;;  %v7451_v46 = vld [vmem:[%s11426_s1 + $0x3e0] ss:$8 sps:$4 sm:$0xff]  }
  0x30   :  { %5157 = vmatprep.subr.bf16.mxu0 %v7364_v48  ;;  %5199 = vmatpush2.bf16.msra.mxu1 %v7363_v49  ;;  %v7454_v48 = vld [vmem:[%s11426_s1 + $0x2d0] ss:$8 sps:$4 sm:$0xff]   ;;  %v7462_v49 = vld [vmem:[%s11426_s1 + $0x2c4] ss:$8 sps:$4 sm:$0xff]  }
  0x31   :  { %5200 = vmatprep.subr.bf16.mxu1 %v7367_v50  ;;  %v7457_v50 = vld [vmem:[%s11426_s1 + $0x3d0] ss:$8 sps:$4 sm:$0xff]  }
  0x33   :  { %5158 = vmatpush2.bf16.msra.mxu0 %v7366_v52  ;;  %v7460_v52 = vld [vmem:[%s11426_s1 + $0x2c0] ss:$8 sps:$4 sm:$0xff]  }
  0x34   :  { %5159 = vmatprep.subr.bf16.mxu0 %v7370_v53  ;;  %5201 = vmatpush2.bf16.msra.mxu1 %v7369_v54  ;;  %v7468_v53 = vld [vmem:[%s11426_s1 + $0x2b4] ss:$8 sps:$4 sm:$0xff]   ;;  %v7463_v54 = vld [vmem:[%s11426_s1 + $0x3c0] ss:$8 sps:$4 sm:$0xff]  }
  0x35   :  { %5202 = vmatprep.subr.bf16.mxu1 %v7373_v55  ;;  %v7471_v55 = vld [vmem:[%s11426_s1 + $0x3b4] ss:$8 sps:$4 sm:$0xff]  }
  0x37   :  { %5160 = vmatpush2.bf16.msra.mxu0 %v7372_v56  ;;  %v7466_v56 = vld [vmem:[%s11426_s1 + $0x2b0] ss:$8 sps:$4 sm:$0xff]  }
  0x38   :  { %5161 = vmatprep.subr.bf16.mxu0 %v7376_v57  ;;  %5203 = vmatpush2.bf16.msra.mxu1 %v7375_v58  ;;  %v7474_v57 = vld [vmem:[%s11426_s1 + $0x2a4] ss:$8 sps:$4 sm:$0xff]   ;;  %v7469_v58 = vld [vmem:[%s11426_s1 + $0x3b0] ss:$8 sps:$4 sm:$0xff]  }
  0x39   :  { %5204 = vmatprep.subr.bf16.mxu1 %v7379_v59  ;;  %v7477_v59 = vld [vmem:[%s11426_s1 + $0x3a4] ss:$8 sps:$4 sm:$0xff]  }
  0x3b   :  { %5162 = vmatpush2.bf16.msra.mxu0 %v7378_v60  ;;  %v7472_v60 = vld [vmem:[%s11426_s1 + $0x2a0] ss:$8 sps:$4 sm:$0xff]  }
  0x3c   :  { %5163 = vmatprep.subr.bf16.mxu0 %v7382_v61  ;;  %5205 = vmatpush2.bf16.msra.mxu1 %v7381_v62  ;;  %v7480_v61 = vld [vmem:[%s11426_s1 + $0x294] ss:$8 sps:$4 sm:$0xff]   ;;  %v7475_v62 = vld [vmem:[%s11426_s1 + $0x3a0] ss:$8 sps:$4 sm:$0xff]  }
  0x3d   :  { %5206 = vmatprep.subr.bf16.mxu1 %v7385_v63  ;;  %v7483_v63 = vld [vmem:[%s11426_s1 + $0x394] ss:$8 sps:$4 sm:$0xff]  }
  0x3f   :  { %5164 = vmatpush2.bf16.msra.mxu0 %v7384_v0  ;;  %v7478_v0 = vld [vmem:[%s11426_s1 + $0x290] ss:$8 sps:$4 sm:$0xff]  }
  0x40   :  { %5219 = vmatprep.subr.bf16.mxu0 %v7393_v1  ;;  %5207 = vmatpush2.bf16.msra.mxu1 %v7390_v2  ;;  %v7486_v1 = vld [vmem:[%s11426_s1 + $0x284] ss:$8 sps:$4 sm:$0xff]   ;;  %v7481_v2 = vld [vmem:[%s11426_s1 + $0x390] ss:$8 sps:$4 sm:$0xff]  }
  0x41   :  { %5262 = vmatprep.subr.bf16.mxu1 %v7399_v4  ;;  %v7484_v4 = vld [vmem:[%s11426_s1 + $0x280] ss:$8 sps:$4 sm:$0xff]  }
  0x42   :  { %5166 = vmatmul.mubr.bf16.vlgmr.msra.gmra.mxu0 %v7387_v3  ;;  %v7489_v3 = vld [vmem:[%s11426_s1 + $0x384] ss:$8 sps:$4 sm:$0xff]  }
  0x43   :  { %5220 = vmatpush1.bf16.msra.mxu0 %v7391_v5  ;;  %5209 = vmatmul.mubr.bf16.vlgmr.msra.gmra.mxu1 %v7394_v6  ;;  %v7495_v5 = vld [vmem:[%s11426_s1 + $0x474] ss:$8 sps:$4 sm:$0xff]   ;;  %v7487_v6 = vld [vmem:[%s11426_s1 + $0x380] ss:$8 sps:$4 sm:$0xff]  }
  0x44   :  { %5221 = vmatprep.subr.bf16.mxu0 %v7402_v7  ;;  %5263 = vmatpush1.bf16.msra.mxu1 %v7397_v8  ;;  %v7490_v7 = vld [vmem:[%s11427_s0 + $0x10] ss:$200 sps:$4 sm:$0xff]   ;;  %v7501_v8 = vld [vmem:[%s11426_s1 + $0x574] ss:$8 sps:$4 sm:$0xff]  }
  0x45   :  { %5264 = vmatprep.subr.bf16.mxu1 %v7405_v9  ;;  %5251 = vmatprep.mubr.bf16.mxu0 %v7492_v33  ;;  %v7493_v9 = vld [vmem:[%s11426_s1 + $0x470] ss:$8 sps:$4 sm:$0xff]   ;;  %v7534_v33 = vld [vmem:[%s11426_s1 + $0x414] ss:$8 sps:$4 sm:$0xff]  }
  0x46   :  { %5294 = vmatprep.mubr.bf16.mxu1 %v7498_v36  ;;  %v7532_v36 = vld [vmem:[%s11426_s1 + $0x410] ss:$8 sps:$4 sm:$0xff]  }
  0x47   :  { %5222 = vmatpush1.bf16.msra.mxu0 %v7400_v10  ;;  %v7496_v10 = vld [vmem:[%s11427_s0 + $0x18] ss:$200 sps:$4 sm:$0xff]  }
  0x48   :  { %5223 = vmatprep.subr.bf16.mxu0 %v7408_v11  ;;  %5265 = vmatpush1.bf16.msra.mxu1 %v7403_v12  ;;  %v7504_v11 = vld [vmem:[%s11426_s1 + $0x464] ss:$8 sps:$4 sm:$0xff]   ;;  %v7499_v12 = vld [vmem:[%s11426_s1 + $0x570] ss:$8 sps:$4 sm:$0xff]  }
  0x49   :  { %5266 = vmatprep.subr.bf16.mxu1 %v7411_v13  ;;  %v7507_v13 = vld [vmem:[%s11426_s1 + $0x564] ss:$8 sps:$4 sm:$0xff]  }
  0x4b   :  { %5224 = vmatpush1.bf16.msra.mxu0 %v7406_v14  ;;  %v7502_v14 = vld [vmem:[%s11426_s1 + $0x460] ss:$8 sps:$4 sm:$0xff]  }
  0x4c   :  { %5225 = vmatprep.subr.bf16.mxu0 %v7414_v15  ;;  %5267 = vmatpush1.bf16.msra.mxu1 %v7409_v16  ;;  %v7510_v15 = vld [vmem:[%s11426_s1 + $0x454] ss:$8 sps:$4 sm:$0xff]   ;;  %v7505_v16 = vld [vmem:[%s11426_s1 + $0x560] ss:$8 sps:$4 sm:$0xff]  }
  0x4d   :  { %5268 = vmatprep.subr.bf16.mxu1 %v7417_v17  ;;  %v7513_v17 = vld [vmem:[%s11426_s1 + $0x554] ss:$8 sps:$4 sm:$0xff]  }
  0x4f   :  { %5226 = vmatpush1.bf16.msra.mxu0 %v7412_v18  ;;  %v7594_v18 = vld [vmem:[%s11427_s0 + $0x24] ss:$200 sps:$4 sm:$0xff]  }
  0x50   :  { %5227 = vmatprep.subr.bf16.mxu0 %v7420_v19  ;;  %5269 = vmatpush1.bf16.msra.mxu1 %v7415_v20  ;;  %v7508_v19 = vld [vmem:[%s11426_s1 + $0x450] ss:$8 sps:$4 sm:$0xff]  }
  0x51   :  { %5270 = vmatprep.subr.bf16.mxu1 %v7423_v21  ;;  %v7511_v20 = vld [vmem:[%s11426_s1 + $0x550] ss:$8 sps:$4 sm:$0xff]   ;;  %v7516_v21 = vld [vmem:[%s11426_s1 + $0x444] ss:$8 sps:$4 sm:$0xff]  }
  0x53   :  { %5228 = vmatpush1.bf16.msra.mxu0 %v7418_v22  ;;  %v7600_v22 = vld [vmem:[%s11427_s0 + $0x2c] ss:$200 sps:$4 sm:$0xff]  }
  0x54   :  { %5229 = vmatprep.subr.bf16.mxu0 %v7426_v23  ;;  %5271 = vmatpush1.bf16.msra.mxu1 %v7421_v24  ;;  %v7519_v23 = vld [vmem:[%s11426_s1 + $0x544] ss:$8 sps:$4 sm:$0xff]   ;;  %v7514_v24 = vld [vmem:[%s11426_s1 + $0x440] ss:$8 sps:$4 sm:$0xff]  }
  0x55   :  { %5272 = vmatprep.subr.bf16.mxu1 %v7429_v25  ;;  %v7522_v25 = vld [vmem:[%s11426_s1 + $0x434] ss:$8 sps:$4 sm:$0xff]  }
  0x57   :  { %5230 = vmatpush1.bf16.msra.mxu0 %v7424_v26  ;;  %v7517_v26 = vld [vmem:[%s11426_s1 + $0x540] ss:$8 sps:$4 sm:$0xff]  }
  0x58   :  { %5231 = vmatprep.subr.bf16.mxu0 %v7432_v27  ;;  %5273 = vmatpush1.bf16.msra.mxu1 %v7427_v28  ;;  %v7525_v27 = vld [vmem:[%s11426_s1 + $0x534] ss:$8 sps:$4 sm:$0xff]   ;;  %v7520_v28 = vld [vmem:[%s11426_s1 + $0x430] ss:$8 sps:$4 sm:$0xff]  }
  0x59   :  { %5274 = vmatprep.subr.bf16.mxu1 %v7435_v29  ;;  %v7528_v29 = vld [vmem:[%s11426_s1 + $0x424] ss:$8 sps:$4 sm:$0xff]  }
  0x5b   :  { %5232 = vmatpush1.bf16.msra.mxu0 %v7430_v30  ;;  %v7523_v30 = vld [vmem:[%s11426_s1 + $0x530] ss:$8 sps:$4 sm:$0xff]  }
  0x5c   :  { %5233 = vmatprep.subr.bf16.mxu0 %v7438_v32  ;;  %5275 = vmatpush1.bf16.msra.mxu1 %v7433_v31  ;;  %v7531_v31 = vld [vmem:[%s11426_s1 + $0x524] ss:$8 sps:$4 sm:$0xff]   ;;  %v7526_v32 = vld [vmem:[%s11426_s1 + $0x420] ss:$8 sps:$4 sm:$0xff]  }
  0x5d   :  { %5276 = vmatprep.subr.bf16.mxu1 %v7441_v34  ;;  %v7529_v34 = vld [vmem:[%s11426_s1 + $0x520] ss:$8 sps:$4 sm:$0xff]  }
  0x5f   :  { %5234 = vmatpush1.bf16.msra.mxu0 %v7436_v35  ;;  %v7537_v35 = vld [vmem:[%s11426_s1 + $0x514] ss:$8 sps:$4 sm:$0xff]  }
  0x60   :  { %5235 = vmatprep.subr.bf16.mxu0 %v7444_v37  ;;  %5277 = vmatpush1.bf16.msra.mxu1 %v7439_v38  ;;  %v7540_v37 = vld [vmem:[%s11426_s1 + $0x404] ss:$8 sps:$4 sm:$0xff]   ;;  %v7535_v38 = vld [vmem:[%s11426_s1 + $0x510] ss:$8 sps:$4 sm:$0xff]  }
  0x61   :  { %5278 = vmatprep.subr.bf16.mxu1 %v7447_v39  ;;  %v7543_v39 = vld [vmem:[%s11426_s1 + $0x504] ss:$8 sps:$4 sm:$0xff]  }
  0x63   :  { %5236 = vmatpush2.bf16.msra.mxu0 %v7442_v40  ;;  %v7538_v40 = vld [vmem:[%s11426_s1 + $0x400] ss:$8 sps:$4 sm:$0xff]  }
  0x64   :  { %5237 = vmatprep.subr.bf16.mxu0 %v7450_v41  ;;  %5279 = vmatpush2.bf16.msra.mxu1 %v7445_v42  ;;  %v7546_v41 = vld [vmem:[%s11426_s1 + $0x4f4] ss:$8 sps:$4 sm:$0xff]   ;;  %v7541_v42 = vld [vmem:[%s11426_s1 + $0x500] ss:$8 sps:$4 sm:$0xff]  }
  0x65   :  { %5280 = vmatprep.subr.bf16.mxu1 %v7453_v43  ;;  %v7549_v43 = vld [vmem:[%s11426_s1 + $0x5f4] ss:$8 sps:$4 sm:$0xff]  }
  0x67   :  { %5238 = vmatpush2.bf16.msra.mxu0 %v7448_v44  ;;  %v7544_v44 = vld [vmem:[%s11426_s1 + $0x4f0] ss:$8 sps:$4 sm:$0xff]  }
  0x68   :  { %5239 = vmatprep.subr.bf16.mxu0 %v7456_v45  ;;  %5281 = vmatpush2.bf16.msra.mxu1 %v7451_v46  ;;  %v7552_v45 = vld [vmem:[%s11426_s1 + $0x4e4] ss:$8 sps:$4 sm:$0xff]   ;;  %v7547_v46 = vld [vmem:[%s11426_s1 + $0x5f0] ss:$8 sps:$4 sm:$0xff]  }
  0x69   :  { %5282 = vmatprep.subr.bf16.mxu1 %v7459_v47  ;;  %v7555_v47 = vld [vmem:[%s11426_s1 + $0x5e4] ss:$8 sps:$4 sm:$0xff]  }
  0x6b   :  { %5240 = vmatpush2.bf16.msra.mxu0 %v7454_v48  ;;  %v7550_v48 = vld [vmem:[%s11426_s1 + $0x4e0] ss:$8 sps:$4 sm:$0xff]  }
  0x6c   :  { %5241 = vmatprep.subr.bf16.mxu0 %v7462_v49  ;;  %5283 = vmatpush2.bf16.msra.mxu1 %v7457_v50  ;;  %v7558_v49 = vld [vmem:[%s11426_s1 + $0x4d4] ss:$8 sps:$4 sm:$0xff]   ;;  %v7553_v50 = vld [vmem:[%s11426_s1 + $0x5e0] ss:$8 sps:$4 sm:$0xff]  }
  0x6d   :  { %5284 = vmatprep.subr.bf16.mxu1 %v7465_v51  ;;  %v7561_v51 = vld [vmem:[%s11426_s1 + $0x5d4] ss:$8 sps:$4 sm:$0xff]  }
  0x6f   :  { %5242 = vmatpush2.bf16.msra.mxu0 %v7460_v52  ;;  %v7556_v52 = vld [vmem:[%s11426_s1 + $0x4d0] ss:$8 sps:$4 sm:$0xff]  }
  0x70   :  { %5243 = vmatprep.subr.bf16.mxu0 %v7468_v53  ;;  %5285 = vmatpush2.bf16.msra.mxu1 %v7463_v54  ;;  %v7564_v53 = vld [vmem:[%s11426_s1 + $0x4c4] ss:$8 sps:$4 sm:$0xff]   ;;  %v7559_v54 = vld [vmem:[%s11426_s1 + $0x5d0] ss:$8 sps:$4 sm:$0xff]  }
  0x71   :  { %5286 = vmatprep.subr.bf16.mxu1 %v7471_v55  ;;  %v7567_v55 = vld [vmem:[%s11426_s1 + $0x5c4] ss:$8 sps:$4 sm:$0xff]  }
  0x73   :  { %5244 = vmatpush2.bf16.msra.mxu0 %v7466_v56  ;;  %v7562_v56 = vld [vmem:[%s11426_s1 + $0x4c0] ss:$8 sps:$4 sm:$0xff]  }
  0x74   :  { %5245 = vmatprep.subr.bf16.mxu0 %v7474_v57  ;;  %5287 = vmatpush2.bf16.msra.mxu1 %v7469_v58  ;;  %v7570_v57 = vld [vmem:[%s11426_s1 + $0x4b4] ss:$8 sps:$4 sm:$0xff]   ;;  %v7565_v58 = vld [vmem:[%s11426_s1 + $0x5c0] ss:$8 sps:$4 sm:$0xff]  }
  0x75   :  { %5288 = vmatprep.subr.bf16.mxu1 %v7477_v59  ;;  %v7573_v59 = vld [vmem:[%s11426_s1 + $0x5b4] ss:$8 sps:$4 sm:$0xff]  }
  0x77   :  { %5246 = vmatpush2.bf16.msra.mxu0 %v7472_v60  ;;  %v7568_v60 = vld [vmem:[%s11426_s1 + $0x4b0] ss:$8 sps:$4 sm:$0xff]  }
  0x78   :  { %5247 = vmatprep.subr.bf16.mxu0 %v7480_v61  ;;  %5289 = vmatpush2.bf16.msra.mxu1 %v7475_v62  ;;  %v7576_v61 = vld [vmem:[%s11426_s1 + $0x4a4] ss:$8 sps:$4 sm:$0xff]   ;;  %v7571_v62 = vld [vmem:[%s11426_s1 + $0x5b0] ss:$8 sps:$4 sm:$0xff]  }
  0x79   :  { %5290 = vmatprep.subr.bf16.mxu1 %v7483_v63  ;;  %v7579_v63 = vld [vmem:[%s11426_s1 + $0x5a4] ss:$8 sps:$4 sm:$0xff]  }
  0x7b   :  { %5248 = vmatpush2.bf16.msra.mxu0 %v7478_v0  ;;  %v7574_v0 = vld [vmem:[%s11426_s1 + $0x4a0] ss:$8 sps:$4 sm:$0xff]  }
  0x7c   :  { %5249 = vmatprep.subr.bf16.mxu0 %v7486_v1  ;;  %5291 = vmatpush2.bf16.msra.mxu1 %v7481_v2  ;;  %v7582_v1 = vld [vmem:[%s11426_s1 + $0x494] ss:$8 sps:$4 sm:$0xff]   ;;  %v7577_v2 = vld [vmem:[%s11426_s1 + $0x5a0] ss:$8 sps:$4 sm:$0xff]  }
  0x7d   :  { %5292 = vmatprep.subr.bf16.mxu1 %v7489_v3  ;;  %v7585_v3 = vld [vmem:[%s11426_s1 + $0x594] ss:$8 sps:$4 sm:$0xff]  }
  0x7f   :  { %5250 = vmatpush2.bf16.msra.mxu0 %v7484_v4  ;;  %v7580_v4 = vld [vmem:[%s11426_s1 + $0x490] ss:$8 sps:$4 sm:$0xff]  }
  0x80   :  { %5305 = vmatprep.subr.bf16.mxu0 %v7495_v5  ;;  %5293 = vmatpush2.bf16.msra.mxu1 %v7487_v6  ;;  %v7588_v5 = vld [vmem:[%s11426_s1 + $0x484] ss:$8 sps:$4 sm:$0xff]   ;;  %v7583_v6 = vld [vmem:[%s11426_s1 + $0x590] ss:$8 sps:$4 sm:$0xff]  }
  0x81   :  { %5348 = vmatprep.subr.bf16.mxu1 %v7501_v8  ;;  %v7591_v8 = vld [vmem:[%s11426_s1 + $0x584] ss:$8 sps:$4 sm:$0xff]  }
  0x82   :  { %5252 = vmatmul.mubr.bf16.vlgmr.msra.gmra.mxu0 %v7490_v7  ;;  %v7586_v7 = vld [vmem:[%s11426_s1 + $0x480] ss:$8 sps:$4 sm:$0xff]  }
  0x83   :  { %5306 = vmatpush1.bf16.msra.mxu0 %v7493_v9  ;;  %5295 = vmatmul.mubr.bf16.vlgmr.msra.gmra.mxu1 %v7496_v10  ;;  %v7589_v9 = vld [vmem:[%s11426_s1 + $0x580] ss:$8 sps:$4 sm:$0xff]   ;;  %v7597_v10 = vld [vmem:[%s11426_s1 + $0x674] ss:$8 sps:$4 sm:$0xff]  }
  0x84   :  { %5307 = vmatprep.subr.bf16.mxu0 %v7504_v11  ;;  %5349 = vmatpush1.bf16.msra.mxu1 %v7499_v12  ;;  %v7592_v11 = vld [vmem:[%s11427_s0 + $0x20] ss:$200 sps:$4 sm:$0xff]   ;;  %v7595_v12 = vld [vmem:[%s11426_s1 + $0x670] ss:$8 sps:$4 sm:$0xff]  }
  0x85   :  { %5350 = vmatprep.subr.bf16.mxu1 %v7507_v13  ;;  %5337 = vmatprep.mubr.bf16.mxu0 %v7594_v18  ;;  %v7598_v13 = vld [vmem:[%s11427_s0 + $0x28] ss:$200 sps:$4 sm:$0xff]   ;;  %v7702_v18 = vld [vmem:[%s11427_s0 + $0x3c] ss:$200 sps:$4 sm:$0xff]  }
  0x86   :  { %5380 = vmatprep.mubr.bf16.mxu1 %v7600_v22  ;;  %v7607_v22 = vld [vmem:[%s11426_s1 + $0x760] ss:$8 sps:$4 sm:$0xff]  }
  0x87   :  { %5308 = vmatpush1.bf16.msra.mxu0 %v7502_v14  ;;  %v7603_v14 = vld [vmem:[%s11426_s1 + $0x774] ss:$8 sps:$4 sm:$0xff]  }
  0x88   :  { %5309 = vmatprep.subr.bf16.mxu0 %v7510_v15  ;;  %5351 = vmatpush1.bf16.msra.mxu1 %v7505_v16  ;;  %v7696_v15 = vld [vmem:[%s11427_s0 + $0x34] ss:$200 sps:$4 sm:$0xff]   ;;  %v7606_v16 = vld [vmem:[%s11426_s1 + $0x664] ss:$8 sps:$4 sm:$0xff]  }
  0x89   :  { %5352 = vmatprep.subr.bf16.mxu1 %v7513_v17  ;;  %v7601_v17 = vld [vmem:[%s11426_s1 + $0x770] ss:$8 sps:$4 sm:$0xff]  }
  0x8b   :  { %5310 = vmatpush1.bf16.msra.mxu0 %v7508_v19  ;;  %v7609_v19 = vld [vmem:[%s11426_s1 + $0x764] ss:$8 sps:$4 sm:$0xff]  }
  0x8c   :  { %5311 = vmatprep.subr.bf16.mxu0 %v7516_v21  ;;  %5353 = vmatpush1.bf16.msra.mxu1 %v7511_v20  ;;  %v7604_v20 = vld [vmem:[%s11426_s1 + $0x660] ss:$8 sps:$4 sm:$0xff]   ;;  %v7612_v21 = vld [vmem:[%s11426_s1 + $0x654] ss:$8 sps:$4 sm:$0xff]  }
  0x8d   :  { %5354 = vmatprep.subr.bf16.mxu1 %v7519_v23  ;;  %v7615_v23 = vld [vmem:[%s11426_s1 + $0x754] ss:$8 sps:$4 sm:$0xff]  }
  0x8f   :  { %5312 = vmatpush1.bf16.msra.mxu0 %v7514_v24  ;;  %v7610_v24 = vld [vmem:[%s11426_s1 + $0x650] ss:$8 sps:$4 sm:$0xff]  }
  0x90   :  { %5313 = vmatprep.subr.bf16.mxu0 %v7522_v25  ;;  %5355 = vmatpush1.bf16.msra.mxu1 %v7517_v26  ;;  %v7618_v25 = vld [vmem:[%s11426_s1 + $0x644] ss:$8 sps:$4 sm:$0xff]   ;;  %v7613_v26 = vld [vmem:[%s11426_s1 + $0x750] ss:$8 sps:$4 sm:$0xff]  }
  0x91   :  { %5356 = vmatprep.subr.bf16.mxu1 %v7525_v27  ;;  %v7621_v27 = vld [vmem:[%s11426_s1 + $0x744] ss:$8 sps:$4 sm:$0xff]  }
  0x93   :  { %5314 = vmatpush1.bf16.msra.mxu0 %v7520_v28  ;;  %v7616_v28 = vld [vmem:[%s11426_s1 + $0x640] ss:$8 sps:$4 sm:$0xff]  }
  0x94   :  { %5315 = vmatprep.subr.bf16.mxu0 %v7528_v29  ;;  %5357 = vmatpush1.bf16.msra.mxu1 %v7523_v30  ;;  %v7624_v29 = vld [vmem:[%s11426_s1 + $0x634] ss:$8 sps:$4 sm:$0xff]   ;;  %v7619_v30 = vld [vmem:[%s11426_s1 + $0x740] ss:$8 sps:$4 sm:$0xff]  }
  0x95   :  { %5358 = vmatprep.subr.bf16.mxu1 %v7531_v31  ;;  %v7627_v31 = vld [vmem:[%s11426_s1 + $0x734] ss:$8 sps:$4 sm:$0xff]  }
  0x97   :  { %5316 = vmatpush1.bf16.msra.mxu0 %v7526_v32  ;;  %v7622_v32 = vld [vmem:[%s11426_s1 + $0x630] ss:$8 sps:$4 sm:$0xff]  }
  0x98   :  { %5317 = vmatprep.subr.bf16.mxu0 %v7534_v33  ;;  %5359 = vmatpush1.bf16.msra.mxu1 %v7529_v34  ;;  %v7630_v33 = vld [vmem:[%s11426_s1 + $0x624] ss:$8 sps:$4 sm:$0xff]   ;;  %v7625_v34 = vld [vmem:[%s11426_s1 + $0x730] ss:$8 sps:$4 sm:$0xff]  }
  0x99   :  { %5360 = vmatprep.subr.bf16.mxu1 %v7537_v35  ;;  %v7633_v35 = vld [vmem:[%s11426_s1 + $0x724] ss:$8 sps:$4 sm:$0xff]  }
  0x9b   :  { %5318 = vmatpush1.bf16.msra.mxu0 %v7532_v36  ;;  %v7628_v36 = vld [vmem:[%s11426_s1 + $0x620] ss:$8 sps:$4 sm:$0xff]  }
  0x9c   :  { %5319 = vmatprep.subr.bf16.mxu0 %v7540_v37  ;;  %5361 = vmatpush1.bf16.msra.mxu1 %v7535_v38  ;;  %v7636_v37 = vld [vmem:[%s11426_s1 + $0x614] ss:$8 sps:$4 sm:$0xff]   ;;  %v7631_v38 = vld [vmem:[%s11426_s1 + $0x720] ss:$8 sps:$4 sm:$0xff]  }
  0x9d   :  { %5362 = vmatprep.subr.bf16.mxu1 %v7543_v39  ;;  %v7639_v39 = vld [vmem:[%s11426_s1 + $0x714] ss:$8 sps:$4 sm:$0xff]  }
  0x9f   :  { %5320 = vmatpush1.bf16.msra.mxu0 %v7538_v40  ;;  %v7634_v40 = vld [vmem:[%s11426_s1 + $0x610] ss:$8 sps:$4 sm:$0xff]  }
  0xa0   :  { %5321 = vmatprep.subr.bf16.mxu0 %v7546_v41  ;;  %5363 = vmatpush1.bf16.msra.mxu1 %v7541_v42  ;;  %v7642_v41 = vld [vmem:[%s11426_s1 + $0x604] ss:$8 sps:$4 sm:$0xff]   ;;  %v7637_v42 = vld [vmem:[%s11426_s1 + $0x710] ss:$8 sps:$4 sm:$0xff]  }
  0xa1   :  { %5364 = vmatprep.subr.bf16.mxu1 %v7549_v43  ;;  %v7645_v43 = vld [vmem:[%s11426_s1 + $0x704] ss:$8 sps:$4 sm:$0xff]  }
  0xa3   :  { %5322 = vmatpush2.bf16.msra.mxu0 %v7544_v44  ;;  %v7640_v44 = vld [vmem:[%s11426_s1 + $0x600] ss:$8 sps:$4 sm:$0xff]  }
  0xa4   :  { %5323 = vmatprep.subr.bf16.mxu0 %v7552_v45  ;;  %5365 = vmatpush2.bf16.msra.mxu1 %v7547_v46  ;;  %v7648_v45 = vld [vmem:[%s11426_s1 + $0x6f4] ss:$8 sps:$4 sm:$0xff]   ;;  %v7643_v46 = vld [vmem:[%s11426_s1 + $0x700] ss:$8 sps:$4 sm:$0xff]  }
  0xa5   :  { %5366 = vmatprep.subr.bf16.mxu1 %v7555_v47  ;;  %v7651_v47 = vld [vmem:[%s11426_s1 + $0x7f4] ss:$8 sps:$4 sm:$0xff]  }
  0xa7   :  { %5324 = vmatpush2.bf16.msra.mxu0 %v7550_v48  ;;  %v7646_v48 = vld [vmem:[%s11426_s1 + $0x6f0] ss:$8 sps:$4 sm:$0xff]  }
  0xa8   :  { %5325 = vmatprep.subr.bf16.mxu0 %v7558_v49  ;;  %5367 = vmatpush2.bf16.msra.mxu1 %v7553_v50  ;;  %v7654_v49 = vld [vmem:[%s11426_s1 + $0x6e4] ss:$8 sps:$4 sm:$0xff]   ;;  %v7649_v50 = vld [vmem:[%s11426_s1 + $0x7f0] ss:$8 sps:$4 sm:$0xff]  }
  0xa9   :  { %5368 = vmatprep.subr.bf16.mxu1 %v7561_v51  ;;  %v7657_v51 = vld [vmem:[%s11426_s1 + $0x7e4] ss:$8 sps:$4 sm:$0xff]  }
  0xab   :  { %5326 = vmatpush2.bf16.msra.mxu0 %v7556_v52  ;;  %v7652_v52 = vld [vmem:[%s11426_s1 + $0x6e0] ss:$8 sps:$4 sm:$0xff]  }
  0xac   :  { %5327 = vmatprep.subr.bf16.mxu0 %v7564_v53  ;;  %5369 = vmatpush2.bf16.msra.mxu1 %v7559_v54  ;;  %v7660_v53 = vld [vmem:[%s11426_s1 + $0x6d4] ss:$8 sps:$4 sm:$0xff]   ;;  %v7655_v54 = vld [vmem:[%s11426_s1 + $0x7e0] ss:$8 sps:$4 sm:$0xff]  }
  0xad   :  { %5370 = vmatprep.subr.bf16.mxu1 %v7567_v55  ;;  %v7663_v55 = vld [vmem:[%s11426_s1 + $0x7d4] ss:$8 sps:$4 sm:$0xff]  }
  0xaf   :  { %5328 = vmatpush2.bf16.msra.mxu0 %v7562_v56  ;;  %v7658_v56 = vld [vmem:[%s11426_s1 + $0x6d0] ss:$8 sps:$4 sm:$0xff]  }
  0xb0   :  { %5329 = vmatprep.subr.bf16.mxu0 %v7570_v57  ;;  %5371 = vmatpush2.bf16.msra.mxu1 %v7565_v58  ;;  %v7666_v57 = vld [vmem:[%s11426_s1 + $0x6c4] ss:$8 sps:$4 sm:$0xff]   ;;  %v7661_v58 = vld [vmem:[%s11426_s1 + $0x7d0] ss:$8 sps:$4 sm:$0xff]  }
  0xb1   :  { %5372 = vmatprep.subr.bf16.mxu1 %v7573_v59  ;;  %v7669_v59 = vld [vmem:[%s11426_s1 + $0x7c4] ss:$8 sps:$4 sm:$0xff]  }
  0xb3   :  { %5330 = vmatpush2.bf16.msra.mxu0 %v7568_v60  ;;  %v7664_v60 = vld [vmem:[%s11426_s1 + $0x6c0] ss:$8 sps:$4 sm:$0xff]  }
  0xb4   :  { %5331 = vmatprep.subr.bf16.mxu0 %v7576_v61  ;;  %5373 = vmatpush2.bf16.msra.mxu1 %v7571_v62  ;;  %v7672_v61 = vld [vmem:[%s11426_s1 + $0x6b4] ss:$8 sps:$4 sm:$0xff]   ;;  %v7667_v62 = vld [vmem:[%s11426_s1 + $0x7c0] ss:$8 sps:$4 sm:$0xff]  }
  0xb5   :  { %5374 = vmatprep.subr.bf16.mxu1 %v7579_v63  ;;  %v7675_v63 = vld [vmem:[%s11426_s1 + $0x7b4] ss:$8 sps:$4 sm:$0xff]  }
  0xb7   :  { %5332 = vmatpush2.bf16.msra.mxu0 %v7574_v0  ;;  %v7670_v0 = vld [vmem:[%s11426_s1 + $0x6b0] ss:$8 sps:$4 sm:$0xff]  }
  0xb8   :  { %5333 = vmatprep.subr.bf16.mxu0 %v7582_v1  ;;  %5375 = vmatpush2.bf16.msra.mxu1 %v7577_v2  ;;  %v7678_v1 = vld [vmem:[%s11426_s1 + $0x6a4] ss:$8 sps:$4 sm:$0xff]   ;;  %v7673_v2 = vld [vmem:[%s11426_s1 + $0x7b0] ss:$8 sps:$4 sm:$0xff]  }
  0xb9   :  { %5376 = vmatprep.subr.bf16.mxu1 %v7585_v3  ;;  %v7681_v3 = vld [vmem:[%s11426_s1 + $0x7a4] ss:$8 sps:$4 sm:$0xff]  }
  0xbb   :  { %5334 = vmatpush2.bf16.msra.mxu0 %v7580_v4  ;;  %v7676_v4 = vld [vmem:[%s11426_s1 + $0x6a0] ss:$8 sps:$4 sm:$0xff]  }
  0xbc   :  { %5335 = vmatprep.subr.bf16.mxu0 %v7588_v5  ;;  %5377 = vmatpush2.bf16.msra.mxu1 %v7583_v6  ;;  %v7684_v5 = vld [vmem:[%s11426_s1 + $0x694] ss:$8 sps:$4 sm:$0xff]   ;;  %v7679_v6 = vld [vmem:[%s11426_s1 + $0x7a0] ss:$8 sps:$4 sm:$0xff]  }
  0xbd   :  { %5378 = vmatprep.subr.bf16.mxu1 %v7591_v8  ;;  %v7682_v8 = vld [vmem:[%s11426_s1 + $0x690] ss:$8 sps:$4 sm:$0xff]  }
  0xbf   :  { %5336 = vmatpush2.bf16.msra.mxu0 %v7586_v7  ;;  %v7687_v7 = vld [vmem:[%s11426_s1 + $0x794] ss:$8 sps:$4 sm:$0xff]  }
  0xc0   :  { %5391 = vmatprep.subr.bf16.mxu0 %v7597_v10  ;;  %5379 = vmatpush2.bf16.msra.mxu1 %v7589_v9  ;;  %v7690_v9 = vld [vmem:[%s11426_s1 + $0x684] ss:$8 sps:$4 sm:$0xff]   ;;  %v7685_v10 = vld [vmem:[%s11426_s1 + $0x790] ss:$8 sps:$4 sm:$0xff]  }
  0xc1   :  { %5434 = vmatprep.subr.bf16.mxu1 %v7603_v14  ;;  %v7699_v14 = vld [vmem:[%s11426_s1 + $0x874] ss:$8 sps:$4 sm:$0xff]  }
  0xc2   :  { %5338 = vmatmul.mubr.bf16.vlgmr.msra.gmra.mxu0 %v7592_v11  ;;  %v7688_v11 = vld [vmem:[%s11426_s1 + $0x680] ss:$8 sps:$4 sm:$0xff]  }
  0xc3   :  { %5392 = vmatpush1.bf16.msra.mxu0 %v7595_v12  ;;  %5423 = vmatprep.mubr.bf16.mxu0 %v7696_v15  ;;  %v7693_v12 = vld [vmem:[%s11426_s1 + $0x784] ss:$8 sps:$4 sm:$0xff]   ;;  %v7694_v15 = vld [vmem:[%s11427_s0 + $0x30] ss:$200 sps:$4 sm:$0xff]  }
  0xc4   :  { %5381 = vmatmul.mubr.bf16.vlgmr.msra.gmra.mxu1 %v7598_v13  ;;  %5393 = vmatprep.subr.bf16.mxu0 %v7606_v16  ;;  %v7691_v13 = vld [vmem:[%s11426_s1 + $0x780] ss:$8 sps:$4 sm:$0xff]   ;;  %v7697_v16 = vld [vmem:[%s11426_s1 + $0x870] ss:$8 sps:$4 sm:$0xff]  }
  0xc5   :  { %5435 = vmatpush1.bf16.msra.mxu1 %v7601_v17  ;;  %5466 = vmatprep.mubr.bf16.mxu1 %v7702_v18  ;;  %v7700_v17 = vld [vmem:[%s11427_s0 + $0x38] ss:$200 sps:$4 sm:$0xff]   ;;  %v7705_v18 = vld [vmem:[%s11426_s1 + $0x974] ss:$8 sps:$4 sm:$0xff]  }
  0xc6   :  { %5436 = vmatprep.subr.bf16.mxu1 %v7609_v19  ;;  %v7798_v19 = vld [vmem:[%s11427_s0 + $0x44] ss:$200 sps:$4 sm:$0xff]  }
  0xc7   :  { %5394 = vmatpush1.bf16.msra.mxu0 %v7604_v20  ;;  %v7708_v20 = vld [vmem:[%s11426_s1 + $0x864] ss:$8 sps:$4 sm:$0xff]  }
  0xc8   :  { %5395 = vmatprep.subr.bf16.mxu0 %v7612_v21  ;;  %v7703_v21 = vld [vmem:[%s11426_s1 + $0x970] ss:$8 sps:$4 sm:$0xff]  }
  0xc9   :  { %5437 = vmatpush1.bf16.msra.mxu1 %v7607_v22  ;;  %v7804_v22 = vld [vmem:[%s11427_s0 + $0x4c] ss:$200 sps:$4 sm:$0xff]  }
  0xca   :  { %5438 = vmatprep.subr.bf16.mxu1 %v7615_v23  ;;  %v7711_v23 = vld [vmem:[%s11426_s1 + $0x964] ss:$8 sps:$4 sm:$0xff]  }
  0xcb   :  { %5396 = vmatpush1.bf16.msra.mxu0 %v7610_v24  ;;  %v7706_v24 = vld [vmem:[%s11426_s1 + $0x860] ss:$8 sps:$4 sm:$0xff]  }
  0xcc   :  { %5397 = vmatprep.subr.bf16.mxu0 %v7618_v25  ;;  %v7714_v25 = vld [vmem:[%s11426_s1 + $0x854] ss:$8 sps:$4 sm:$0xff]  }
  0xcd   :  { %5439 = vmatpush1.bf16.msra.mxu1 %v7613_v26  ;;  %v7709_v26 = vld [vmem:[%s11426_s1 + $0x960] ss:$8 sps:$4 sm:$0xff]  }
  0xce   :  { %5440 = vmatprep.subr.bf16.mxu1 %v7621_v27  ;;  %v7717_v27 = vld [vmem:[%s11426_s1 + $0x954] ss:$8 sps:$4 sm:$0xff]  }
  0xcf   :  { %5398 = vmatpush1.bf16.msra.mxu0 %v7616_v28  ;;  %v7712_v28 = vld [vmem:[%s11426_s1 + $0x850] ss:$8 sps:$4 sm:$0xff]  }
  0xd0   :  { %5399 = vmatprep.subr.bf16.mxu0 %v7624_v29  ;;  %v7720_v29 = vld [vmem:[%s11426_s1 + $0x844] ss:$8 sps:$4 sm:$0xff]  }
  0xd1   :  { %5441 = vmatpush1.bf16.msra.mxu1 %v7619_v30  ;;  %v7715_v30 = vld [vmem:[%s11426_s1 + $0x950] ss:$8 sps:$4 sm:$0xff]  }
  0xd2   :  { %5442 = vmatprep.subr.bf16.mxu1 %v7627_v31  ;;  %v7723_v31 = vld [vmem:[%s11426_s1 + $0x944] ss:$8 sps:$4 sm:$0xff]  }
  0xd3   :  { %5400 = vmatpush1.bf16.msra.mxu0 %v7622_v32  ;;  %v7718_v32 = vld [vmem:[%s11426_s1 + $0x840] ss:$8 sps:$4 sm:$0xff]  }
  0xd4   :  { %5401 = vmatprep.subr.bf16.mxu0 %v7630_v33  ;;  %v7726_v33 = vld [vmem:[%s11426_s1 + $0x834] ss:$8 sps:$4 sm:$0xff]  }
  0xd5   :  { %5443 = vmatpush1.bf16.msra.mxu1 %v7625_v34  ;;  %v7721_v34 = vld [vmem:[%s11426_s1 + $0x940] ss:$8 sps:$4 sm:$0xff]  }
  0xd6   :  { %5444 = vmatprep.subr.bf16.mxu1 %v7633_v35  ;;  %v7729_v35 = vld [vmem:[%s11426_s1 + $0x934] ss:$8 sps:$4 sm:$0xff]  }
  0xd7   :  { %5402 = vmatpush1.bf16.msra.mxu0 %v7628_v36  ;;  %v7724_v36 = vld [vmem:[%s11426_s1 + $0x830] ss:$8 sps:$4 sm:$0xff]  }
  0xd8   :  { %5403 = vmatprep.subr.bf16.mxu0 %v7636_v37  ;;  %v7732_v37 = vld [vmem:[%s11426_s1 + $0x824] ss:$8 sps:$4 sm:$0xff]  }
  0xd9   :  { %5445 = vmatpush1.bf16.msra.mxu1 %v7631_v38  ;;  %v7727_v38 = vld [vmem:[%s11426_s1 + $0x930] ss:$8 sps:$4 sm:$0xff]  }
  0xda   :  { %5446 = vmatprep.subr.bf16.mxu1 %v7639_v39  ;;  %v7735_v39 = vld [vmem:[%s11426_s1 + $0x924] ss:$8 sps:$4 sm:$0xff]  }
  0xdb   :  { %5404 = vmatpush1.bf16.msra.mxu0 %v7634_v40  ;;  %v7730_v40 = vld [vmem:[%s11426_s1 + $0x820] ss:$8 sps:$4 sm:$0xff]  }
  0xdc   :  { %5405 = vmatprep.subr.bf16.mxu0 %v7642_v41  ;;  %v7738_v41 = vld [vmem:[%s11426_s1 + $0x814] ss:$8 sps:$4 sm:$0xff]  }
  0xdd   :  { %5447 = vmatpush1.bf16.msra.mxu1 %v7637_v42  ;;  %v7733_v42 = vld [vmem:[%s11426_s1 + $0x920] ss:$8 sps:$4 sm:$0xff]  }
  0xde   :  { %5448 = vmatprep.subr.bf16.mxu1 %v7645_v43  ;;  %v7741_v43 = vld [vmem:[%s11426_s1 + $0x914] ss:$8 sps:$4 sm:$0xff]  }
  0xdf   :  { %5406 = vmatpush1.bf16.msra.mxu0 %v7640_v44  ;;  %v7736_v44 = vld [vmem:[%s11426_s1 + $0x810] ss:$8 sps:$4 sm:$0xff]  }
  0xe0   :  { %5407 = vmatprep.subr.bf16.mxu0 %v7648_v45  ;;  %v7744_v45 = vld [vmem:[%s11426_s1 + $0x804] ss:$8 sps:$4 sm:$0xff]  }
  0xe1   :  { %5449 = vmatpush1.bf16.msra.mxu1 %v7643_v46  ;;  %v7739_v46 = vld [vmem:[%s11426_s1 + $0x910] ss:$8 sps:$4 sm:$0xff]  }
  0xe2   :  { %5450 = vmatprep.subr.bf16.mxu1 %v7651_v47  ;;  %v7747_v47 = vld [vmem:[%s11426_s1 + $0x904] ss:$8 sps:$4 sm:$0xff]  }
  0xe3   :  { %5408 = vmatpush2.bf16.msra.mxu0 %v7646_v48  ;;  %v7742_v48 = vld [vmem:[%s11426_s1 + $0x800] ss:$8 sps:$4 sm:$0xff]  }
  0xe4   :  { %5409 = vmatprep.subr.bf16.mxu0 %v7654_v49  ;;  %v7750_v49 = vld [vmem:[%s11426_s1 + $0x8f4] ss:$8 sps:$4 sm:$0xff]  }
  0xe5   :  { %5451 = vmatpush2.bf16.msra.mxu1 %v7649_v50  ;;  %v7745_v50 = vld [vmem:[%s11426_s1 + $0x900] ss:$8 sps:$4 sm:$0xff]  }
  0xe6   :  { %5452 = vmatprep.subr.bf16.mxu1 %v7657_v51  ;;  %v7753_v51 = vld [vmem:[%s11426_s1 + $0x9f4] ss:$8 sps:$4 sm:$0xff]  }
  0xe7   :  { %5410 = vmatpush2.bf16.msra.mxu0 %v7652_v52  ;;  %v7748_v52 = vld [vmem:[%s11426_s1 + $0x8f0] ss:$8 sps:$4 sm:$0xff]  }
  0xe8   :  { %5411 = vmatprep.subr.bf16.mxu0 %v7660_v53  ;;  %v7756_v53 = vld [vmem:[%s11426_s1 + $0x8e4] ss:$8 sps:$4 sm:$0xff]  }
  0xe9   :  { %5453 = vmatpush2.bf16.msra.mxu1 %v7655_v54  ;;  %v7751_v54 = vld [vmem:[%s11426_s1 + $0x9f0] ss:$8 sps:$4 sm:$0xff]  }
  0xea   :  { %5454 = vmatprep.subr.bf16.mxu1 %v7663_v55  ;;  %v7759_v55 = vld [vmem:[%s11426_s1 + $0x9e4] ss:$8 sps:$4 sm:$0xff]  }
  0xeb   :  { %5412 = vmatpush2.bf16.msra.mxu0 %v7658_v56  ;;  %v7754_v56 = vld [vmem:[%s11426_s1 + $0x8e0] ss:$8 sps:$4 sm:$0xff]  }
  0xec   :  { %5413 = vmatprep.subr.bf16.mxu0 %v7666_v57  ;;  %v7762_v57 = vld [vmem:[%s11426_s1 + $0x8d4] ss:$8 sps:$4 sm:$0xff]  }
  0xed   :  { %5455 = vmatpush2.bf16.msra.mxu1 %v7661_v58  ;;  %v7757_v58 = vld [vmem:[%s11426_s1 + $0x9e0] ss:$8 sps:$4 sm:$0xff]  }
  0xee   :  { %5456 = vmatprep.subr.bf16.mxu1 %v7669_v59  ;;  %v7765_v59 = vld [vmem:[%s11426_s1 + $0x9d4] ss:$8 sps:$4 sm:$0xff]  }
  0xef   :  { %5414 = vmatpush2.bf16.msra.mxu0 %v7664_v60  ;;  %v7760_v60 = vld [vmem:[%s11426_s1 + $0x8d0] ss:$8 sps:$4 sm:$0xff]  }
  0xf0   :  { %5415 = vmatprep.subr.bf16.mxu0 %v7672_v61  ;;  %v7768_v61 = vld [vmem:[%s11426_s1 + $0x8c4] ss:$8 sps:$4 sm:$0xff]  }
  0xf1   :  { %5457 = vmatpush2.bf16.msra.mxu1 %v7667_v62  ;;  %v7763_v62 = vld [vmem:[%s11426_s1 + $0x9d0] ss:$8 sps:$4 sm:$0xff]  }
  0xf2   :  { %5458 = vmatprep.subr.bf16.mxu1 %v7675_v63  ;;  %v7771_v63 = vld [vmem:[%s11426_s1 + $0x9c4] ss:$8 sps:$4 sm:$0xff]  }
  0xf3   :  { %5416 = vmatpush2.bf16.msra.mxu0 %v7670_v0  ;;  %v7766_v0 = vld [vmem:[%s11426_s1 + $0x8c0] ss:$8 sps:$4 sm:$0xff]  }
  0xf4   :  { %5417 = vmatprep.subr.bf16.mxu0 %v7678_v1  ;;  %v7774_v1 = vld [vmem:[%s11426_s1 + $0x8b4] ss:$8 sps:$4 sm:$0xff]  }
  0xf5   :  { %5459 = vmatpush2.bf16.msra.mxu1 %v7673_v2  ;;  %v7769_v2 = vld [vmem:[%s11426_s1 + $0x9c0] ss:$8 sps:$4 sm:$0xff]  }
  0xf6   :  { %5460 = vmatprep.subr.bf16.mxu1 %v7681_v3  ;;  %v7777_v3 = vld [vmem:[%s11426_s1 + $0x9b4] ss:$8 sps:$4 sm:$0xff]  }
  0xf7   :  { %5418 = vmatpush2.bf16.msra.mxu0 %v7676_v4  ;;  %v7772_v4 = vld [vmem:[%s11426_s1 + $0x8b0] ss:$8 sps:$4 sm:$0xff]  }
  0xf8   :  { %5419 = vmatprep.subr.bf16.mxu0 %v7684_v5  ;;  %v7780_v5 = vld [vmem:[%s11426_s1 + $0x8a4] ss:$8 sps:$4 sm:$0xff]  }
  0xf9   :  { %5461 = vmatpush2.bf16.msra.mxu1 %v7679_v6  ;;  %v7775_v6 = vld [vmem:[%s11426_s1 + $0x9b0] ss:$8 sps:$4 sm:$0xff]  }
  0xfa   :  { %5462 = vmatprep.subr.bf16.mxu1 %v7687_v7  ;;  %v7778_v7 = vld [vmem:[%s11426_s1 + $0x8a0] ss:$8 sps:$4 sm:$0xff]  }
  0xfb   :  { %5420 = vmatpush2.bf16.msra.mxu0 %v7682_v8  ;;  %v7783_v8 = vld [vmem:[%s11426_s1 + $0x9a4] ss:$8 sps:$4 sm:$0xff]  }
  0xfc   :  { %5421 = vmatprep.subr.bf16.mxu0 %v7690_v9  ;;  %v7781_v9 = vld [vmem:[%s11426_s1 + $0x9a0] ss:$8 sps:$4 sm:$0xff]  }
  0xfd   :  { %5463 = vmatpush2.bf16.msra.mxu1 %v7685_v10  ;;  %v7786_v10 = vld [vmem:[%s11426_s1 + $0x894] ss:$8 sps:$4 sm:$0xff]  }
  0xfe   :  { %5464 = vmatprep.subr.bf16.mxu1 %v7693_v12  ;;  %v7789_v12 = vld [vmem:[%s11426_s1 + $0x994] ss:$8 sps:$4 sm:$0xff]  }
  0xff   :  { %5422 = vmatpush2.bf16.msra.mxu0 %v7688_v11  ;;  %v7784_v11 = vld [vmem:[%s11426_s1 + $0x890] ss:$8 sps:$4 sm:$0xff]  }
 0x100   :  { %5477 = vmatprep.subr.bf16.mxu0 %v7699_v14  ;;  %v7792_v14 = vld [vmem:[%s11426_s1 + $0x884] ss:$8 sps:$4 sm:$0xff]  }
 0x101   :  { %5465 = vmatpush2.bf16.msra.mxu1 %v7691_v13  ;;  %v7787_v13 = vld [vmem:[%s11426_s1 + $0x990] ss:$8 sps:$4 sm:$0xff]  }
 0x102   :  { %5424 = vmatmul.mubr.bf16.vlgmr.msra.gmra.mxu0 %v7694_v15  ;;  %5520 = vmatprep.subr.bf16.mxu1 %v7705_v18  ;;  %v7790_v15 = vld [vmem:[%s11426_s1 + $0x880] ss:$8 sps:$4 sm:$0xff]   ;;  %v7801_v18 = vld [vmem:[%s11426_s1 + $0xa74] ss:$8 sps:$4 sm:$0xff]  }
 0x103   :  { %5478 = vmatpush1.bf16.msra.mxu0 %v7697_v16  ;;  %5509 = vmatprep.mubr.bf16.mxu0 %v7798_v19  ;;  %v7795_v16 = vld [vmem:[%s11426_s1 + $0x984] ss:$8 sps:$4 sm:$0xff]   ;;  %v7796_v19 = vld [vmem:[%s11427_s0 + $0x40] ss:$200 sps:$4 sm:$0xff]  }
 0x104   :  { %5467 = vmatmul.mubr.bf16.vlgmr.msra.gmra.mxu1 %v7700_v17  ;;  %5479 = vmatprep.subr.bf16.mxu0 %v7708_v20  ;;  %v7793_v17 = vld [vmem:[%s11426_s1 + $0x980] ss:$8 sps:$4 sm:$0xff]   ;;  %v7807_v20 = vld [vmem:[%s11426_s1 + $0xb74] ss:$8 sps:$4 sm:$0xff]  }
 0x105   :  { %5521 = vmatpush1.bf16.msra.mxu1 %v7703_v21  ;;  %5552 = vmatprep.mubr.bf16.mxu1 %v7804_v22  ;;  %v7799_v21 = vld [vmem:[%s11426_s1 + $0xa70] ss:$8 sps:$4 sm:$0xff]  }
 0x106   :  { %5522 = vmatprep.subr.bf16.mxu1 %v7711_v23  ;;  %v7802_v22 = vld [vmem:[%s11427_s0 + $0x48] ss:$200 sps:$4 sm:$0xff]   ;;  %v7900_v23 = vld [vmem:[%s11427_s0 + $0x54] ss:$200 sps:$4 sm:$0xff]  }
 0x107   :  { %5480 = vmatpush1.bf16.msra.mxu0 %v7706_v24  ;;  %v7810_v24 = vld [vmem:[%s11426_s1 + $0xa64] ss:$8 sps:$4 sm:$0xff]  }
 0x108   :  { %5481 = vmatprep.subr.bf16.mxu0 %v7714_v25  ;;  %v7805_v25 = vld [vmem:[%s11426_s1 + $0xb70] ss:$8 sps:$4 sm:$0xff]  }
 0x109   :  { %5523 = vmatpush1.bf16.msra.mxu1 %v7709_v26  ;;  %v7906_v26 = vld [vmem:[%s11427_s0 + $0x5c] ss:$200 sps:$4 sm:$0xff]  }
 0x10a   :  { %5524 = vmatprep.subr.bf16.mxu1 %v7717_v27  ;;  %v7808_v27 = vld [vmem:[%s11426_s1 + $0xa60] ss:$8 sps:$4 sm:$0xff]  }
 0x10b   :  { %5482 = vmatpush1.bf16.msra.mxu0 %v7712_v28  ;;  %v7813_v28 = vld [vmem:[%s11426_s1 + $0xb64] ss:$8 sps:$4 sm:$0xff]  }
 0x10c   :  { %5483 = vmatprep.subr.bf16.mxu0 %v7720_v29  ;;  %v7811_v29 = vld [vmem:[%s11426_s1 + $0xb60] ss:$8 sps:$4 sm:$0xff]  }
 0x10d   :  { %5525 = vmatpush1.bf16.msra.mxu1 %v7715_v30  ;;  %v7816_v30 = vld [vmem:[%s11426_s1 + $0xa54] ss:$8 sps:$4 sm:$0xff]  }
 0x10e   :  { %5526 = vmatprep.subr.bf16.mxu1 %v7723_v31  ;;  %v7814_v31 = vld [vmem:[%s11426_s1 + $0xa50] ss:$8 sps:$4 sm:$0xff]  }
 0x10f   :  { %5484 = vmatpush1.bf16.msra.mxu0 %v7718_v32  ;;  %v7819_v32 = vld [vmem:[%s11426_s1 + $0xb54] ss:$8 sps:$4 sm:$0xff]  }
 0x110   :  { %5485 = vmatprep.subr.bf16.mxu0 %v7726_v33  ;;  %v7817_v33 = vld [vmem:[%s11426_s1 + $0xb50] ss:$8 sps:$4 sm:$0xff]  }
 0x111   :  { %5527 = vmatpush1.bf16.msra.mxu1 %v7721_v34  ;;  %v7822_v34 = vld [vmem:[%s11426_s1 + $0xa44] ss:$8 sps:$4 sm:$0xff]  }
 0x112   :  { %5528 = vmatprep.subr.bf16.mxu1 %v7729_v35  ;;  %v7820_v35 = vld [vmem:[%s11426_s1 + $0xa40] ss:$8 sps:$4 sm:$0xff]  }
 0x113   :  { %5486 = vmatpush1.bf16.msra.mxu0 %v7724_v36  ;;  %v7825_v36 = vld [vmem:[%s11426_s1 + $0xb44] ss:$8 sps:$4 sm:$0xff]  }
 0x114   :  { %5487 = vmatprep.subr.bf16.mxu0 %v7732_v37  ;;  %v7823_v37 = vld [vmem:[%s11426_s1 + $0xb40] ss:$8 sps:$4 sm:$0xff]  }
 0x115   :  { %5529 = vmatpush1.bf16.msra.mxu1 %v7727_v38  ;;  %v7828_v38 = vld [vmem:[%s11426_s1 + $0xa34] ss:$8 sps:$4 sm:$0xff]  }
 0x116   :  { %5530 = vmatprep.subr.bf16.mxu1 %v7735_v39  ;;  %v7826_v39 = vld [vmem:[%s11426_s1 + $0xa30] ss:$8 sps:$4 sm:$0xff]  }
 0x117   :  { %5488 = vmatpush1.bf16.msra.mxu0 %v7730_v40  ;;  %v7831_v40 = vld [vmem:[%s11426_s1 + $0xb34] ss:$8 sps:$4 sm:$0xff]  }
 0x118   :  { %5489 = vmatprep.subr.bf16.mxu0 %v7738_v41  ;;  %v7829_v41 = vld [vmem:[%s11426_s1 + $0xb30] ss:$8 sps:$4 sm:$0xff]  }
 0x119   :  { %5531 = vmatpush1.bf16.msra.mxu1 %v7733_v42  ;;  %v7834_v42 = vld [vmem:[%s11426_s1 + $0xa24] ss:$8 sps:$4 sm:$0xff]  }
 0x11a   :  { %5532 = vmatprep.subr.bf16.mxu1 %v7741_v43  ;;  %v7832_v43 = vld [vmem:[%s11426_s1 + $0xa20] ss:$8 sps:$4 sm:$0xff]  }
 0x11b   :  { %5490 = vmatpush1.bf16.msra.mxu0 %v7736_v44  ;;  %v7837_v44 = vld [vmem:[%s11426_s1 + $0xb24] ss:$8 sps:$4 sm:$0xff]  }
 0x11c   :  { %5491 = vmatprep.subr.bf16.mxu0 %v7744_v45  ;;  %v7835_v45 = vld [vmem:[%s11426_s1 + $0xb20] ss:$8 sps:$4 sm:$0xff]  }
 0x11d   :  { %5533 = vmatpush1.bf16.msra.mxu1 %v7739_v46  ;;  %v7840_v46 = vld [vmem:[%s11426_s1 + $0xa14] ss:$8 sps:$4 sm:$0xff]  }
 0x11e   :  { %5534 = vmatprep.subr.bf16.mxu1 %v7747_v47  ;;  %v7838_v47 = vld [vmem:[%s11426_s1 + $0xa10] ss:$8 sps:$4 sm:$0xff]  }
 0x11f   :  { %5492 = vmatpush1.bf16.msra.mxu0 %v7742_v48  ;;  %v7843_v48 = vld [vmem:[%s11426_s1 + $0xb14] ss:$8 sps:$4 sm:$0xff]  }
 0x120   :  { %5493 = vmatprep.subr.bf16.mxu0 %v7750_v49  ;;  %v7841_v49 = vld [vmem:[%s11426_s1 + $0xb10] ss:$8 sps:$4 sm:$0xff]  }
 0x121   :  { %5535 = vmatpush1.bf16.msra.mxu1 %v7745_v50  ;;  %v7846_v50 = vld [vmem:[%s11426_s1 + $0xa04] ss:$8 sps:$4 sm:$0xff]  }
 0x122   :  { %5536 = vmatprep.subr.bf16.mxu1 %v7753_v51  ;;  %v7844_v51 = vld [vmem:[%s11426_s1 + $0xa00] ss:$8 sps:$4 sm:$0xff]  }
 0x123   :  { %5494 = vmatpush2.bf16.msra.mxu0 %v7748_v52  ;;  %v7849_v52 = vld [vmem:[%s11426_s1 + $0xb04] ss:$8 sps:$4 sm:$0xff]  }
 0x124   :  { %5495 = vmatprep.subr.bf16.mxu0 %v7756_v53  ;;  %v7847_v53 = vld [vmem:[%s11426_s1 + $0xb00] ss:$8 sps:$4 sm:$0xff]  }
 0x125   :  { %5537 = vmatpush2.bf16.msra.mxu1 %v7751_v54  ;;  %v7852_v54 = vld [vmem:[%s11426_s1 + $0xaf4] ss:$8 sps:$4 sm:$0xff]  }
 0x126   :  { %5538 = vmatprep.subr.bf16.mxu1 %v7759_v55  ;;  %v7850_v55 = vld [vmem:[%s11426_s1 + $0xaf0] ss:$8 sps:$4 sm:$0xff]  }
 0x127   :  { %5496 = vmatpush2.bf16.msra.mxu0 %v7754_v56  ;;  %v7855_v56 = vld [vmem:[%s11426_s1 + $0xbf4] ss:$8 sps:$4 sm:$0xff]  }
 0x128   :  { %5497 = vmatprep.subr.bf16.mxu0 %v7762_v57  ;;  %v7853_v57 = vld [vmem:[%s11426_s1 + $0xbf0] ss:$8 sps:$4 sm:$0xff]  }
 0x129   :  { %5539 = vmatpush2.bf16.msra.mxu1 %v7757_v58  ;;  %v7858_v58 = vld [vmem:[%s11426_s1 + $0xae4] ss:$8 sps:$4 sm:$0xff]  }
 0x12a   :  { %5540 = vmatprep.subr.bf16.mxu1 %v7765_v59  ;;  %v7856_v59 = vld [vmem:[%s11426_s1 + $0xae0] ss:$8 sps:$4 sm:$0xff]  }
 0x12b   :  { %5498 = vmatpush2.bf16.msra.mxu0 %v7760_v60  ;;  %v7861_v60 = vld [vmem:[%s11426_s1 + $0xbe4] ss:$8 sps:$4 sm:$0xff]  }
 0x12c   :  { %5499 = vmatprep.subr.bf16.mxu0 %v7768_v61  ;;  %v7859_v61 = vld [vmem:[%s11426_s1 + $0xbe0] ss:$8 sps:$4 sm:$0xff]  }
 0x12d   :  { %5541 = vmatpush2.bf16.msra.mxu1 %v7763_v62  ;;  %v7864_v62 = vld [vmem:[%s11426_s1 + $0xad4] ss:$8 sps:$4 sm:$0xff]  }
 0x12e   :  { %5542 = vmatprep.subr.bf16.mxu1 %v7771_v63  ;;  %v7862_v63 = vld [vmem:[%s11426_s1 + $0xad0] ss:$8 sps:$4 sm:$0xff]  }
 0x12f   :  { %5500 = vmatpush2.bf16.msra.mxu0 %v7766_v0  ;;  %v7867_v0 = vld [vmem:[%s11426_s1 + $0xbd4] ss:$8 sps:$4 sm:$0xff]  }
 0x130   :  { %5501 = vmatprep.subr.bf16.mxu0 %v7774_v1  ;;  %v7865_v1 = vld [vmem:[%s11426_s1 + $0xbd0] ss:$8 sps:$4 sm:$0xff]  }
 0x131   :  { %5543 = vmatpush2.bf16.msra.mxu1 %v7769_v2  ;;  %v7870_v2 = vld [vmem:[%s11426_s1 + $0xac4] ss:$8 sps:$4 sm:$0xff]  }
 0x132   :  { %5544 = vmatprep.subr.bf16.mxu1 %v7777_v3  ;;  %v7868_v3 = vld [vmem:[%s11426_s1 + $0xac0] ss:$8 sps:$4 sm:$0xff]  }
 0x133   :  { %5502 = vmatpush2.bf16.msra.mxu0 %v7772_v4  ;;  %v7873_v4 = vld [vmem:[%s11426_s1 + $0xbc4] ss:$8 sps:$4 sm:$0xff]  }
 0x134   :  { %5503 = vmatprep.subr.bf16.mxu0 %v7780_v5  ;;  %v7871_v5 = vld [vmem:[%s11426_s1 + $0xbc0] ss:$8 sps:$4 sm:$0xff]  }
 0x135   :  { %5545 = vmatpush2.bf16.msra.mxu1 %v7775_v6  ;;  %v7876_v6 = vld [vmem:[%s11426_s1 + $0xab4] ss:$8 sps:$4 sm:$0xff]  }
 0x136   :  { %5546 = vmatprep.subr.bf16.mxu1 %v7783_v8  ;;  %v7879_v8 = vld [vmem:[%s11426_s1 + $0xbb4] ss:$8 sps:$4 sm:$0xff]  }
 0x137   :  { %5504 = vmatpush2.bf16.msra.mxu0 %v7778_v7  ;;  %v7874_v7 = vld [vmem:[%s11426_s1 + $0xab0] ss:$8 sps:$4 sm:$0xff]  }
 0x138   :  { %5505 = vmatprep.subr.bf16.mxu0 %v7786_v10  ;;  %v7882_v10 = vld [vmem:[%s11426_s1 + $0xaa4] ss:$8 sps:$4 sm:$0xff]  }
 0x139   :  { %5547 = vmatpush2.bf16.msra.mxu1 %v7781_v9  ;;  %v7877_v9 = vld [vmem:[%s11426_s1 + $0xbb0] ss:$8 sps:$4 sm:$0xff]  }
 0x13a   :  { %5548 = vmatprep.subr.bf16.mxu1 %v7789_v12  ;;  %v7885_v12 = vld [vmem:[%s11426_s1 + $0xba4] ss:$8 sps:$4 sm:$0xff]  }
 0x13b   :  { %5506 = vmatpush2.bf16.msra.mxu0 %v7784_v11  ;;  %v7880_v11 = vld [vmem:[%s11426_s1 + $0xaa0] ss:$8 sps:$4 sm:$0xff]  }
 0x13c   :  { %5507 = vmatprep.subr.bf16.mxu0 %v7792_v14  ;;  %v7888_v14 = vld [vmem:[%s11426_s1 + $0xa94] ss:$8 sps:$4 sm:$0xff]  }
 0x13d   :  { %5549 = vmatpush2.bf16.msra.mxu1 %v7787_v13  ;;  %v7883_v13 = vld [vmem:[%s11426_s1 + $0xba0] ss:$8 sps:$4 sm:$0xff]  }
 0x13e   :  { %5550 = vmatprep.subr.bf16.mxu1 %v7795_v16  ;;  %v7891_v16 = vld [vmem:[%s11426_s1 + $0xb94] ss:$8 sps:$4 sm:$0xff]  }
 0x13f   :  { %5508 = vmatpush2.bf16.msra.mxu0 %v7790_v15  ;;  %v7886_v15 = vld [vmem:[%s11426_s1 + $0xa90] ss:$8 sps:$4 sm:$0xff]  }
 0x140   :  { %5563 = vmatprep.subr.bf16.mxu0 %v7801_v18  ;;  %v7894_v18 = vld [vmem:[%s11426_s1 + $0xa84] ss:$8 sps:$4 sm:$0xff]  }
 0x141   :  { %5551 = vmatpush2.bf16.msra.mxu1 %v7793_v17  ;;  %v7889_v17 = vld [vmem:[%s11426_s1 + $0xb90] ss:$8 sps:$4 sm:$0xff]  }
 0x142   :  { %5510 = vmatmul.mubr.bf16.vlgmr.msra.gmra.mxu0 %v7796_v19  ;;  %5606 = vmatprep.subr.bf16.mxu1 %v7807_v20  ;;  %v7892_v19 = vld [vmem:[%s11426_s1 + $0xa80] ss:$8 sps:$4 sm:$0xff]   ;;  %v7897_v20 = vld [vmem:[%s11426_s1 + $0xb84] ss:$8 sps:$4 sm:$0xff]  }
 0x143   :  { %5564 = vmatpush1.bf16.msra.mxu0 %v7799_v21  ;;  %5595 = vmatprep.mubr.bf16.mxu0 %v7900_v23  ;;  %v7895_v21 = vld [vmem:[%s11426_s1 + $0xb80] ss:$8 sps:$4 sm:$0xff]   ;;  %v7898_v23 = vld [vmem:[%s11427_s0 + $0x50] ss:$200 sps:$4 sm:$0xff]  }
 0x144   :  { %5553 = vmatmul.mubr.bf16.vlgmr.msra.gmra.mxu1 %v7802_v22  ;;  %5565 = vmatprep.subr.bf16.mxu0 %v7810_v24  ;;  %v7903_v22 = vld [vmem:[%s11426_s1 + $0xc74] ss:$8 sps:$4 sm:$0xff]  }
 0x145   :  { %5607 = vmatpush1.bf16.msra.mxu1 %v7805_v25  ;;  %5638 = vmatprep.mubr.bf16.mxu1 %v7906_v26  ;;  %v7909_v24 = vld [vmem:[%s11426_s1 + $0xd74] ss:$8 sps:$4 sm:$0xff]   ;;  %v7901_v25 = vld [vmem:[%s11426_s1 + $0xc70] ss:$8 sps:$4 sm:$0xff]  }
 0x146   :  { %5608 = vmatprep.subr.bf16.mxu1 %v7813_v28  ;;  %v7904_v26 = vld [vmem:[%s11427_s0 + $0x58] ss:$200 sps:$4 sm:$0xff]   ;;  %v7912_v28 = vld [vmem:[%s11426_s1 + $0xc64] ss:$8 sps:$4 sm:$0xff]  }
 0x147   :  { %5566 = vmatpush1.bf16.msra.mxu0 %v7808_v27  ;;  %v8002_v27 = vld [vmem:[%s11427_s0 + $0x64] ss:$200 sps:$4 sm:$0xff]  }
 0x148   :  { %5567 = vmatprep.subr.bf16.mxu0 %v7816_v30  ;;  %v8008_v30 = vld [vmem:[%s11427_s0 + $0x6c] ss:$200 sps:$4 sm:$0xff]  }
 0x149   :  { %5609 = vmatpush1.bf16.msra.mxu1 %v7811_v29  ;;  %v7907_v29 = vld [vmem:[%s11426_s1 + $0xd70] ss:$8 sps:$4 sm:$0xff]  }
 0x14a   :  { %5610 = vmatprep.subr.bf16.mxu1 %v7819_v32  ;;  %v7915_v32 = vld [vmem:[%s11426_s1 + $0xd64] ss:$8 sps:$4 sm:$0xff]  }
 0x14b   :  { %5568 = vmatpush1.bf16.msra.mxu0 %v7814_v31  ;;  %v7910_v31 = vld [vmem:[%s11426_s1 + $0xc60] ss:$8 sps:$4 sm:$0xff]  }
 0x14c   :  { %5569 = vmatprep.subr.bf16.mxu0 %v7822_v34  ;;  %v7918_v34 = vld [vmem:[%s11426_s1 + $0xc54] ss:$8 sps:$4 sm:$0xff]  }
 0x14d   :  { %5611 = vmatpush1.bf16.msra.mxu1 %v7817_v33  ;;  %v7913_v33 = vld [vmem:[%s11426_s1 + $0xd60] ss:$8 sps:$4 sm:$0xff]  }
 0x14e   :  { %5612 = vmatprep.subr.bf16.mxu1 %v7825_v36  ;;  %v7921_v36 = vld [vmem:[%s11426_s1 + $0xd54] ss:$8 sps:$4 sm:$0xff]  }
 0x14f   :  { %5570 = vmatpush1.bf16.msra.mxu0 %v7820_v35  ;;  %v7916_v35 = vld [vmem:[%s11426_s1 + $0xc50] ss:$8 sps:$4 sm:$0xff]  }
 0x150   :  { %5571 = vmatprep.subr.bf16.mxu0 %v7828_v38  ;;  %v7924_v38 = vld [vmem:[%s11426_s1 + $0xc44] ss:$8 sps:$4 sm:$0xff]  }
 0x151   :  { %5613 = vmatpush1.bf16.msra.mxu1 %v7823_v37  ;;  %v7919_v37 = vld [vmem:[%s11426_s1 + $0xd50] ss:$8 sps:$4 sm:$0xff]  }
 0x152   :  { %5614 = vmatprep.subr.bf16.mxu1 %v7831_v40  ;;  %v7927_v40 = vld [vmem:[%s11426_s1 + $0xd44] ss:$8 sps:$4 sm:$0xff]  }
 0x153   :  { %5572 = vmatpush1.bf16.msra.mxu0 %v7826_v39  ;;  %v7922_v39 = vld [vmem:[%s11426_s1 + $0xc40] ss:$8 sps:$4 sm:$0xff]  }
 0x154   :  { %5573 = vmatprep.subr.bf16.mxu0 %v7834_v42  ;;  %v7930_v42 = vld [vmem:[%s11426_s1 + $0xc34] ss:$8 sps:$4 sm:$0xff]  }
 0x155   :  { %5615 = vmatpush1.bf16.msra.mxu1 %v7829_v41  ;;  %v7925_v41 = vld [vmem:[%s11426_s1 + $0xd40] ss:$8 sps:$4 sm:$0xff]  }
 0x156   :  { %5616 = vmatprep.subr.bf16.mxu1 %v7837_v44  ;;  %v7933_v44 = vld [vmem:[%s11426_s1 + $0xd34] ss:$8 sps:$4 sm:$0xff]  }
 0x157   :  { %5574 = vmatpush1.bf16.msra.mxu0 %v7832_v43  ;;  %v7928_v43 = vld [vmem:[%s11426_s1 + $0xc30] ss:$8 sps:$4 sm:$0xff]  }
 0x158   :  { %5575 = vmatprep.subr.bf16.mxu0 %v7840_v46  ;;  %v7936_v46 = vld [vmem:[%s11426_s1 + $0xc24] ss:$8 sps:$4 sm:$0xff]  }
 0x159   :  { %5617 = vmatpush1.bf16.msra.mxu1 %v7835_v45  ;;  %v7931_v45 = vld [vmem:[%s11426_s1 + $0xd30] ss:$8 sps:$4 sm:$0xff]  }
 0x15a   :  { %5618 = vmatprep.subr.bf16.mxu1 %v7843_v48  ;;  %v7939_v48 = vld [vmem:[%s11426_s1 + $0xd24] ss:$8 sps:$4 sm:$0xff]  }
 0x15b   :  { %5576 = vmatpush1.bf16.msra.mxu0 %v7838_v47  ;;  %v7934_v47 = vld [vmem:[%s11426_s1 + $0xc20] ss:$8 sps:$4 sm:$0xff]  }
 0x15c   :  { %5577 = vmatprep.subr.bf16.mxu0 %v7846_v50  ;;  %v7942_v50 = vld [vmem:[%s11426_s1 + $0xc14] ss:$8 sps:$4 sm:$0xff]  }
 0x15d   :  { %5619 = vmatpush1.bf16.msra.mxu1 %v7841_v49  ;;  %v7937_v49 = vld [vmem:[%s11426_s1 + $0xd20] ss:$8 sps:$4 sm:$0xff]  }
 0x15e   :  { %5620 = vmatprep.subr.bf16.mxu1 %v7849_v52  ;;  %v7945_v52 = vld [vmem:[%s11426_s1 + $0xd14] ss:$8 sps:$4 sm:$0xff]  }
 0x15f   :  { %5578 = vmatpush1.bf16.msra.mxu0 %v7844_v51  ;;  %v7940_v51 = vld [vmem:[%s11426_s1 + $0xc10] ss:$8 sps:$4 sm:$0xff]  }
 0x160   :  { %5579 = vmatprep.subr.bf16.mxu0 %v7852_v54  ;;  %v7948_v54 = vld [vmem:[%s11426_s1 + $0xc04] ss:$8 sps:$4 sm:$0xff]  }
 0x161   :  { %5621 = vmatpush1.bf16.msra.mxu1 %v7847_v53  ;;  %v7943_v53 = vld [vmem:[%s11426_s1 + $0xd10] ss:$8 sps:$4 sm:$0xff]  }
 0x162   :  { %5622 = vmatprep.subr.bf16.mxu1 %v7855_v56  ;;  %v7951_v56 = vld [vmem:[%s11426_s1 + $0xd04] ss:$8 sps:$4 sm:$0xff]  }
 0x163   :  { %5580 = vmatpush2.bf16.msra.mxu0 %v7850_v55  ;;  %v7946_v55 = vld [vmem:[%s11426_s1 + $0xc00] ss:$8 sps:$4 sm:$0xff]  }
 0x164   :  { %5581 = vmatprep.subr.bf16.mxu0 %v7858_v58  ;;  %v7954_v58 = vld [vmem:[%s11426_s1 + $0xcf4] ss:$8 sps:$4 sm:$0xff]  }
 0x165   :  { %5623 = vmatpush2.bf16.msra.mxu1 %v7853_v57  ;;  %v7949_v57 = vld [vmem:[%s11426_s1 + $0xd00] ss:$8 sps:$4 sm:$0xff]  }
 0x166   :  { %5624 = vmatprep.subr.bf16.mxu1 %v7861_v60  ;;  %v7957_v60 = vld [vmem:[%s11426_s1 + $0xdf4] ss:$8 sps:$4 sm:$0xff]  }
 0x167   :  { %5582 = vmatpush2.bf16.msra.mxu0 %v7856_v59  ;;  %v7952_v59 = vld [vmem:[%s11426_s1 + $0xcf0] ss:$8 sps:$4 sm:$0xff]  }
 0x168   :  { %5583 = vmatprep.subr.bf16.mxu0 %v7864_v62  ;;  %v7960_v62 = vld [vmem:[%s11426_s1 + $0xce4] ss:$8 sps:$4 sm:$0xff]  }
 0x169   :  { %5625 = vmatpush2.bf16.msra.mxu1 %v7859_v61  ;;  %v7955_v61 = vld [vmem:[%s11426_s1 + $0xdf0] ss:$8 sps:$4 sm:$0xff]  }
 0x16a   :  { %5626 = vmatprep.subr.bf16.mxu1 %v7867_v0  ;;  %v7963_v0 = vld [vmem:[%s11426_s1 + $0xde4] ss:$8 sps:$4 sm:$0xff]  }
 0x16b   :  { %5584 = vmatpush2.bf16.msra.mxu0 %v7862_v63  ;;  %v7958_v63 = vld [vmem:[%s11426_s1 + $0xce0] ss:$8 sps:$4 sm:$0xff]  }
 0x16c   :  { %5585 = vmatprep.subr.bf16.mxu0 %v7870_v2  ;;  %v7966_v2 = vld [vmem:[%s11426_s1 + $0xcd4] ss:$8 sps:$4 sm:$0xff]  }
 0x16d   :  { %5627 = vmatpush2.bf16.msra.mxu1 %v7865_v1  ;;  %v7961_v1 = vld [vmem:[%s11426_s1 + $0xde0] ss:$8 sps:$4 sm:$0xff]  }
 0x16e   :  { %5628 = vmatprep.subr.bf16.mxu1 %v7873_v4  ;;  %v7969_v4 = vld [vmem:[%s11426_s1 + $0xdd4] ss:$8 sps:$4 sm:$0xff]  }
 0x16f   :  { %5586 = vmatpush2.bf16.msra.mxu0 %v7868_v3  ;;  %v7964_v3 = vld [vmem:[%s11426_s1 + $0xcd0] ss:$8 sps:$4 sm:$0xff]  }
 0x170   :  { %5587 = vmatprep.subr.bf16.mxu0 %v7876_v6  ;;  %v7972_v6 = vld [vmem:[%s11426_s1 + $0xcc4] ss:$8 sps:$4 sm:$0xff]  }
 0x171   :  { %5629 = vmatpush2.bf16.msra.mxu1 %v7871_v5  ;;  %v7967_v5 = vld [vmem:[%s11426_s1 + $0xdd0] ss:$8 sps:$4 sm:$0xff]  }
 0x172   :  { %5630 = vmatprep.subr.bf16.mxu1 %v7879_v8  ;;  %v7975_v8 = vld [vmem:[%s11426_s1 + $0xdc4] ss:$8 sps:$4 sm:$0xff]  }
 0x173   :  { %5588 = vmatpush2.bf16.msra.mxu0 %v7874_v7  ;;  %v7970_v7 = vld [vmem:[%s11426_s1 + $0xcc0] ss:$8 sps:$4 sm:$0xff]  }
 0x174   :  { %5589 = vmatprep.subr.bf16.mxu0 %v7882_v10  ;;  %v7978_v10 = vld [vmem:[%s11426_s1 + $0xcb4] ss:$8 sps:$4 sm:$0xff]  }
 0x175   :  { %5631 = vmatpush2.bf16.msra.mxu1 %v7877_v9  ;;  %v7973_v9 = vld [vmem:[%s11426_s1 + $0xdc0] ss:$8 sps:$4 sm:$0xff]  }
 0x176   :  { %5632 = vmatprep.subr.bf16.mxu1 %v7885_v12  ;;  %v7981_v12 = vld [vmem:[%s11426_s1 + $0xdb4] ss:$8 sps:$4 sm:$0xff]  }
 0x177   :  { %5590 = vmatpush2.bf16.msra.mxu0 %v7880_v11  ;;  %v7976_v11 = vld [vmem:[%s11426_s1 + $0xcb0] ss:$8 sps:$4 sm:$0xff]  }
 0x178   :  { %5591 = vmatprep.subr.bf16.mxu0 %v7888_v14  ;;  %v7984_v14 = vld [vmem:[%s11426_s1 + $0xca4] ss:$8 sps:$4 sm:$0xff]  }
 0x179   :  { %5633 = vmatpush2.bf16.msra.mxu1 %v7883_v13  ;;  %v7979_v13 = vld [vmem:[%s11426_s1 + $0xdb0] ss:$8 sps:$4 sm:$0xff]  }
 0x17a   :  { %5634 = vmatprep.subr.bf16.mxu1 %v7891_v16  ;;  %v7987_v16 = vld [vmem:[%s11426_s1 + $0xda4] ss:$8 sps:$4 sm:$0xff]  }
 0x17b   :  { %5592 = vmatpush2.bf16.msra.mxu0 %v7886_v15  ;;  %v7982_v15 = vld [vmem:[%s11426_s1 + $0xca0] ss:$8 sps:$4 sm:$0xff]  }
 0x17c   :  { %5593 = vmatprep.subr.bf16.mxu0 %v7894_v18  ;;  %v7990_v18 = vld [vmem:[%s11426_s1 + $0xc94] ss:$8 sps:$4 sm:$0xff]  }
 0x17d   :  { %5635 = vmatpush2.bf16.msra.mxu1 %v7889_v17  ;;  %v7985_v17 = vld [vmem:[%s11426_s1 + $0xda0] ss:$8 sps:$4 sm:$0xff]  }
 0x17e   :  { %5636 = vmatprep.subr.bf16.mxu1 %v7897_v20  ;;  %v7993_v20 = vld [vmem:[%s11426_s1 + $0xd94] ss:$8 sps:$4 sm:$0xff]  }
 0x17f   :  { %5594 = vmatpush2.bf16.msra.mxu0 %v7892_v19  ;;  %v7988_v19 = vld [vmem:[%s11426_s1 + $0xc90] ss:$8 sps:$4 sm:$0xff]  }
 0x180   :  { %5649 = vmatprep.subr.bf16.mxu0 %v7903_v22  ;;  %v7996_v22 = vld [vmem:[%s11426_s1 + $0xc84] ss:$8 sps:$4 sm:$0xff]  }
 0x181   :  { %5637 = vmatpush2.bf16.msra.mxu1 %v7895_v21  ;;  %v7991_v21 = vld [vmem:[%s11426_s1 + $0xd90] ss:$8 sps:$4 sm:$0xff]  }
 0x182   :  { %5596 = vmatmul.mubr.bf16.vlgmr.msra.gmra.mxu0 %v7898_v23  ;;  %5692 = vmatprep.subr.bf16.mxu1 %v7909_v24  ;;  %v7994_v23 = vld [vmem:[%s11426_s1 + $0xc80] ss:$8 sps:$4 sm:$0xff]   ;;  %v7999_v24 = vld [vmem:[%s11426_s1 + $0xd84] ss:$8 sps:$4 sm:$0xff]  }
 0x183   :  { %5650 = vmatpush1.bf16.msra.mxu0 %v7901_v25  ;;  %5681 = vmatprep.mubr.bf16.mxu0 %v8002_v27  ;;  %v7997_v25 = vld [vmem:[%s11426_s1 + $0xd80] ss:$8 sps:$4 sm:$0xff]  }
 0x184   :  { %5639 = vmatmul.mubr.bf16.vlgmr.msra.gmra.mxu1 %v7904_v26  ;;  %5651 = vmatprep.subr.bf16.mxu0 %v7912_v28  ;;  %v8005_v26 = vld [vmem:[%s11426_s1 + $0xe74] ss:$8 sps:$4 sm:$0xff]   ;;  %v8000_v27 = vld [vmem:[%s11427_s0 + $0x60] ss:$200 sps:$4 sm:$0xff]  }
 0x185   :  { %5693 = vmatpush1.bf16.msra.mxu1 %v7907_v29  ;;  %5724 = vmatprep.mubr.bf16.mxu1 %v8008_v30  ;;  %v8011_v28 = vld [vmem:[%s11426_s1 + $0xf74] ss:$8 sps:$4 sm:$0xff]   ;;  %v8003_v29 = vld [vmem:[%s11426_s1 + $0xe70] ss:$8 sps:$4 sm:$0xff]  }
 0x186   :  { %5694 = vmatprep.subr.bf16.mxu1 %v7915_v32  ;;  %v8006_v30 = vld [vmem:[%s11427_s0 + $0x68] ss:$200 sps:$4 sm:$0xff]   ;;  %v8014_v32 = vld [vmem:[%s11426_s1 + $0xe64] ss:$8 sps:$4 sm:$0xff]  }
 0x187   :  { %5652 = vmatpush1.bf16.msra.mxu0 %v7910_v31  ;;  %v8104_v31 = vld [vmem:[%s11427_s0 + $0x74] ss:$200 sps:$4 sm:$0xff]  }
 0x188   :  { %5653 = vmatprep.subr.bf16.mxu0 %v7918_v34  ;;  %v8110_v34 = vld [vmem:[%s11427_s0 + $0x7c] ss:$200 sps:$4 sm:$0xff]  }
 0x189   :  { %5695 = vmatpush1.bf16.msra.mxu1 %v7913_v33  ;;  %v8009_v33 = vld [vmem:[%s11426_s1 + $0xf70] ss:$8 sps:$4 sm:$0xff]  }
 0x18a   :  { %5696 = vmatprep.subr.bf16.mxu1 %v7921_v36  ;;  %v8012_v36 = vld [vmem:[%s11426_s1 + $0xe60] ss:$8 sps:$4 sm:$0xff]  }
 0x18b   :  { %5654 = vmatpush1.bf16.msra.mxu0 %v7916_v35  ;;  %v8017_v35 = vld [vmem:[%s11426_s1 + $0xf64] ss:$8 sps:$4 sm:$0xff]  }
 0x18c   :  { %5655 = vmatprep.subr.bf16.mxu0 %v7924_v38  ;;  %v8015_v38 = vld [vmem:[%s11426_s1 + $0xf60] ss:$8 sps:$4 sm:$0xff]  }
 0x18d   :  { %5697 = vmatpush1.bf16.msra.mxu1 %v7919_v37  ;;  %v8020_v37 = vld [vmem:[%s11426_s1 + $0xe54] ss:$8 sps:$4 sm:$0xff]  }
 0x18e   :  { %5698 = vmatprep.subr.bf16.mxu1 %v7927_v40  ;;  %v8018_v40 = vld [vmem:[%s11426_s1 + $0xe50] ss:$8 sps:$4 sm:$0xff]  }
 0x18f   :  { %5656 = vmatpush1.bf16.msra.mxu0 %v7922_v39  ;;  %v8023_v39 = vld [vmem:[%s11426_s1 + $0xf54] ss:$8 sps:$4 sm:$0xff]  }
 0x190   :  { %5657 = vmatprep.subr.bf16.mxu0 %v7930_v42  ;;  %v8021_v42 = vld [vmem:[%s11426_s1 + $0xf50] ss:$8 sps:$4 sm:$0xff]  }
 0x191   :  { %5699 = vmatpush1.bf16.msra.mxu1 %v7925_v41  ;;  %v8026_v41 = vld [vmem:[%s11426_s1 + $0xe44] ss:$8 sps:$4 sm:$0xff]  }
 0x192   :  { %5700 = vmatprep.subr.bf16.mxu1 %v7933_v44  ;;  %v8024_v44 = vld [vmem:[%s11426_s1 + $0xe40] ss:$8 sps:$4 sm:$0xff]  }
 0x193   :  { %5658 = vmatpush1.bf16.msra.mxu0 %v7928_v43  ;;  %v8029_v43 = vld [vmem:[%s11426_s1 + $0xf44] ss:$8 sps:$4 sm:$0xff]  }
 0x194   :  { %5659 = vmatprep.subr.bf16.mxu0 %v7936_v46  ;;  %v8027_v46 = vld [vmem:[%s11426_s1 + $0xf40] ss:$8 sps:$4 sm:$0xff]  }
 0x195   :  { %5701 = vmatpush1.bf16.msra.mxu1 %v7931_v45  ;;  %v8032_v45 = vld [vmem:[%s11426_s1 + $0xe34] ss:$8 sps:$4 sm:$0xff]  }
 0x196   :  { %5702 = vmatprep.subr.bf16.mxu1 %v7939_v48  ;;  %v8030_v48 = vld [vmem:[%s11426_s1 + $0xe30] ss:$8 sps:$4 sm:$0xff]  }
 0x197   :  { %5660 = vmatpush1.bf16.msra.mxu0 %v7934_v47  ;;  %v8035_v47 = vld [vmem:[%s11426_s1 + $0xf34] ss:$8 sps:$4 sm:$0xff]  }
 0x198   :  { %5661 = vmatprep.subr.bf16.mxu0 %v7942_v50  ;;  %v8033_v50 = vld [vmem:[%s11426_s1 + $0xf30] ss:$8 sps:$4 sm:$0xff]  }
 0x199   :  { %5703 = vmatpush1.bf16.msra.mxu1 %v7937_v49  ;;  %v8038_v49 = vld [vmem:[%s11426_s1 + $0xe24] ss:$8 sps:$4 sm:$0xff]  }
 0x19a   :  { %5704 = vmatprep.subr.bf16.mxu1 %v7945_v52  ;;  %v8036_v52 = vld [vmem:[%s11426_s1 + $0xe20] ss:$8 sps:$4 sm:$0xff]  }
 0x19b   :  { %5662 = vmatpush1.bf16.msra.mxu0 %v7940_v51  ;;  %v8041_v51 = vld [vmem:[%s11426_s1 + $0xf24] ss:$8 sps:$4 sm:$0xff]  }
 0x19c   :  { %5663 = vmatprep.subr.bf16.mxu0 %v7948_v54  ;;  %v8039_v54 = vld [vmem:[%s11426_s1 + $0xf20] ss:$8 sps:$4 sm:$0xff]  }
 0x19d   :  { %5705 = vmatpush1.bf16.msra.mxu1 %v7943_v53  ;;  %v8044_v53 = vld [vmem:[%s11426_s1 + $0xe14] ss:$8 sps:$4 sm:$0xff]  }
 0x19e   :  { %5706 = vmatprep.subr.bf16.mxu1 %v7951_v56  ;;  %v8042_v56 = vld [vmem:[%s11426_s1 + $0xe10] ss:$8 sps:$4 sm:$0xff]  }
 0x19f   :  { %5664 = vmatpush1.bf16.msra.mxu0 %v7946_v55  ;;  %v8047_v55 = vld [vmem:[%s11426_s1 + $0xf14] ss:$8 sps:$4 sm:$0xff]  }
 0x1a0   :  { %5665 = vmatprep.subr.bf16.mxu0 %v7954_v58  ;;  %v8045_v58 = vld [vmem:[%s11426_s1 + $0xf10] ss:$8 sps:$4 sm:$0xff]  }
 0x1a1   :  { %5707 = vmatpush1.bf16.msra.mxu1 %v7949_v57  ;;  %v8050_v57 = vld [vmem:[%s11426_s1 + $0xe04] ss:$8 sps:$4 sm:$0xff]  }
 0x1a2   :  { %5708 = vmatprep.subr.bf16.mxu1 %v7957_v60  ;;  %v8048_v60 = vld [vmem:[%s11426_s1 + $0xe00] ss:$8 sps:$4 sm:$0xff]  }
 0x1a3   :  { %5666 = vmatpush2.bf16.msra.mxu0 %v7952_v59  ;;  %v8053_v59 = vld [vmem:[%s11426_s1 + $0xf04] ss:$8 sps:$4 sm:$0xff]  }
 0x1a4   :  { %5667 = vmatprep.subr.bf16.mxu0 %v7960_v62  ;;  %v8051_v62 = vld [vmem:[%s11426_s1 + $0xf00] ss:$8 sps:$4 sm:$0xff]  }
 0x1a5   :  { %5709 = vmatpush2.bf16.msra.mxu1 %v7955_v61  ;;  %v8056_v61 = vld [vmem:[%s11426_s1 + $0xef4] ss:$8 sps:$4 sm:$0xff]  }
 0x1a6   :  { %5710 = vmatprep.subr.bf16.mxu1 %v7963_v0  ;;  %v8054_v0 = vld [vmem:[%s11426_s1 + $0xef0] ss:$8 sps:$4 sm:$0xff]  }
 0x1a7   :  { %5668 = vmatpush2.bf16.msra.mxu0 %v7958_v63  ;;  %v8059_v63 = vld [vmem:[%s11426_s1 + $0xff4] ss:$8 sps:$4 sm:$0xff]  }
 0x1a8   :  { %5669 = vmatprep.subr.bf16.mxu0 %v7966_v2  ;;  %v8057_v2 = vld [vmem:[%s11426_s1 + $0xff0] ss:$8 sps:$4 sm:$0xff]  }
 0x1a9   :  { %5711 = vmatpush2.bf16.msra.mxu1 %v7961_v1  ;;  %v8062_v1 = vld [vmem:[%s11426_s1 + $0xee4] ss:$8 sps:$4 sm:$0xff]  }
 0x1aa   :  { %5712 = vmatprep.subr.bf16.mxu1 %v7969_v4  ;;  %v8060_v4 = vld [vmem:[%s11426_s1 + $0xee0] ss:$8 sps:$4 sm:$0xff]  }
 0x1ab   :  { %5670 = vmatpush2.bf16.msra.mxu0 %v7964_v3  ;;  %v8065_v3 = vld [vmem:[%s11426_s1 + $0xfe4] ss:$8 sps:$4 sm:$0xff]  }
 0x1ac   :  { %5671 = vmatprep.subr.bf16.mxu0 %v7972_v6  ;;  %v8063_v6 = vld [vmem:[%s11426_s1 + $0xfe0] ss:$8 sps:$4 sm:$0xff]  }
 0x1ad   :  { %5713 = vmatpush2.bf16.msra.mxu1 %v7967_v5  ;;  %v8068_v5 = vld [vmem:[%s11426_s1 + $0xed4] ss:$8 sps:$4 sm:$0xff]  }
 0x1ae   :  { %5714 = vmatprep.subr.bf16.mxu1 %v7975_v8  ;;  %v8066_v8 = vld [vmem:[%s11426_s1 + $0xed0] ss:$8 sps:$4 sm:$0xff]  }
 0x1af   :  { %5672 = vmatpush2.bf16.msra.mxu0 %v7970_v7  ;;  %v8071_v7 = vld [vmem:[%s11426_s1 + $0xfd4] ss:$8 sps:$4 sm:$0xff]  }
 0x1b0   :  { %5673 = vmatprep.subr.bf16.mxu0 %v7978_v10  ;;  %v8069_v10 = vld [vmem:[%s11426_s1 + $0xfd0] ss:$8 sps:$4 sm:$0xff]  }
 0x1b1   :  { %5715 = vmatpush2.bf16.msra.mxu1 %v7973_v9  ;;  %v8074_v9 = vld [vmem:[%s11426_s1 + $0xec4] ss:$8 sps:$4 sm:$0xff]  }
 0x1b2   :  { %5716 = vmatprep.subr.bf16.mxu1 %v7981_v12  ;;  %v8072_v12 = vld [vmem:[%s11426_s1 + $0xec0] ss:$8 sps:$4 sm:$0xff]  }
 0x1b3   :  { %5674 = vmatpush2.bf16.msra.mxu0 %v7976_v11  ;;  %v8077_v11 = vld [vmem:[%s11426_s1 + $0xfc4] ss:$8 sps:$4 sm:$0xff]  }
 0x1b4   :  { %5675 = vmatprep.subr.bf16.mxu0 %v7984_v14  ;;  %v8075_v14 = vld [vmem:[%s11426_s1 + $0xfc0] ss:$8 sps:$4 sm:$0xff]  }
 0x1b5   :  { %5717 = vmatpush2.bf16.msra.mxu1 %v7979_v13  ;;  %v8080_v13 = vld [vmem:[%s11426_s1 + $0xeb4] ss:$8 sps:$4 sm:$0xff]  }
 0x1b6   :  { %5718 = vmatprep.subr.bf16.mxu1 %v7987_v16  ;;  %v8078_v16 = vld [vmem:[%s11426_s1 + $0xeb0] ss:$8 sps:$4 sm:$0xff]  }
 0x1b7   :  { %5676 = vmatpush2.bf16.msra.mxu0 %v7982_v15  ;;  %v8083_v15 = vld [vmem:[%s11426_s1 + $0xfb4] ss:$8 sps:$4 sm:$0xff]  }
 0x1b8   :  { %5677 = vmatprep.subr.bf16.mxu0 %v7990_v18  ;;  %v8081_v18 = vld [vmem:[%s11426_s1 + $0xfb0] ss:$8 sps:$4 sm:$0xff]  }
 0x1b9   :  { %5719 = vmatpush2.bf16.msra.mxu1 %v7985_v17  ;;  %v8086_v17 = vld [vmem:[%s11426_s1 + $0xea4] ss:$8 sps:$4 sm:$0xff]  }
 0x1ba   :  { %5720 = vmatprep.subr.bf16.mxu1 %v7993_v20  ;;  %v8084_v20 = vld [vmem:[%s11426_s1 + $0xea0] ss:$8 sps:$4 sm:$0xff]  }
 0x1bb   :  { %5678 = vmatpush2.bf16.msra.mxu0 %v7988_v19  ;;  %v8089_v19 = vld [vmem:[%s11426_s1 + $0xfa4] ss:$8 sps:$4 sm:$0xff]  }
 0x1bc   :  { %5679 = vmatprep.subr.bf16.mxu0 %v7996_v22  ;;  %v8087_v22 = vld [vmem:[%s11426_s1 + $0xfa0] ss:$8 sps:$4 sm:$0xff]  }
 0x1bd   :  { %5721 = vmatpush2.bf16.msra.mxu1 %v7991_v21  ;;  %v8092_v21 = vld [vmem:[%s11426_s1 + $0xe94] ss:$8 sps:$4 sm:$0xff]  }
 0x1be   :  { %5722 = vmatprep.subr.bf16.mxu1 %v7999_v24  ;;  %v8090_v24 = vld [vmem:[%s11426_s1 + $0xe90] ss:$8 sps:$4 sm:$0xff]  }
 0x1bf   :  { %5680 = vmatpush2.bf16.msra.mxu0 %v7994_v23  ;;  %v8095_v23 = vld [vmem:[%s11426_s1 + $0xf94] ss:$8 sps:$4 sm:$0xff]  }
 0x1c0   :  { %5735 = vmatprep.subr.bf16.mxu0 %v8005_v26  ;;  %v8093_v26 = vld [vmem:[%s11426_s1 + $0xf90] ss:$8 sps:$4 sm:$0xff]  }
 0x1c1   :  { %5723 = vmatpush2.bf16.msra.mxu1 %v7997_v25  ;;  %v8098_v25 = vld [vmem:[%s11426_s1 + $0xe84] ss:$8 sps:$4 sm:$0xff]  }
 0x1c2   :  { %5682 = vmatmul.mubr.bf16.vlgmr.msra.gmra.mxu0 %v8000_v27  ;;  %5778 = vmatprep.subr.bf16.mxu1 %v8011_v28  ;;  %v8101_v27 = vld [vmem:[%s11426_s1 + $0xf84] ss:$8 sps:$4 sm:$0xff]   ;;  %v8096_v28 = vld [vmem:[%s11426_s1 + $0xe80] ss:$8 sps:$4 sm:$0xff]  }
 0x1c3   :  { %5736 = vmatpush1.bf16.msra.mxu0 %v8003_v29  ;;  %5767 = vmatprep.mubr.bf16.mxu0 %v8104_v31  ;;  %v8107_v29 = vld [vmem:[%s11426_s1 + $0x1074] ss:$8 sps:$4 sm:$0xff]   ;;  %v8102_v31 = vld [vmem:[%s11427_s0 + $0x70] ss:$200 sps:$4 sm:$0xff]  }
 0x1c4   :  { %5725 = vmatmul.mubr.bf16.vlgmr.msra.gmra.mxu1 %v8006_v30  ;;  %5737 = vmatprep.subr.bf16.mxu0 %v8014_v32  ;;  %v8099_v30 = vld [vmem:[%s11426_s1 + $0xf80] ss:$8 sps:$4 sm:$0xff]   ;;  %v8113_v32 = vld [vmem:[%s11426_s1 + $0x1174] ss:$8 sps:$4 sm:$0xff]  }
 0x1c5   :  { %5779 = vmatpush1.bf16.msra.mxu1 %v8009_v33  ;;  %5810 = vmatprep.mubr.bf16.mxu1 %v8110_v34  ;;  %v8105_v33 = vld [vmem:[%s11426_s1 + $0x1070] ss:$8 sps:$4 sm:$0xff]   ;;  %v8206_v34 = vld [vmem:[%s11427_s0 + $0x84] ss:$200 sps:$4 sm:$0xff]  }
 0x1c6   :  { %5780 = vmatprep.subr.bf16.mxu1 %v8017_v35  ;;  %v8108_v35 = vld [vmem:[%s11427_s0 + $0x78] ss:$200 sps:$4 sm:$0xff]  }
 0x1c7   :  { %5738 = vmatpush1.bf16.msra.mxu0 %v8012_v36  ;;  %v8116_v36 = vld [vmem:[%s11426_s1 + $0x1064] ss:$8 sps:$4 sm:$0xff]  }
 0x1c8   :  { %5739 = vmatprep.subr.bf16.mxu0 %v8020_v37  ;;  %v8111_v37 = vld [vmem:[%s11426_s1 + $0x1170] ss:$8 sps:$4 sm:$0xff]  }
 0x1c9   :  { %5781 = vmatpush1.bf16.msra.mxu1 %v8015_v38  ;;  %v8212_v38 = vld [vmem:[%s11427_s0 + $0x8c] ss:$200 sps:$4 sm:$0xff]  }
 0x1ca   :  { %5782 = vmatprep.subr.bf16.mxu1 %v8023_v39  ;;  %v8119_v39 = vld [vmem:[%s11426_s1 + $0x1164] ss:$8 sps:$4 sm:$0xff]  }
 0x1cb   :  { %5740 = vmatpush1.bf16.msra.mxu0 %v8018_v40  ;;  %v8114_v40 = vld [vmem:[%s11426_s1 + $0x1060] ss:$8 sps:$4 sm:$0xff]  }
 0x1cc   :  { %5741 = vmatprep.subr.bf16.mxu0 %v8026_v41  ;;  %v8122_v41 = vld [vmem:[%s11426_s1 + $0x1054] ss:$8 sps:$4 sm:$0xff]  }
 0x1cd   :  { %5783 = vmatpush1.bf16.msra.mxu1 %v8021_v42  ;;  %v8117_v42 = vld [vmem:[%s11426_s1 + $0x1160] ss:$8 sps:$4 sm:$0xff]  }
 0x1ce   :  { %5784 = vmatprep.subr.bf16.mxu1 %v8029_v43  ;;  %v8125_v43 = vld [vmem:[%s11426_s1 + $0x1154] ss:$8 sps:$4 sm:$0xff]  }
 0x1cf   :  { %5742 = vmatpush1.bf16.msra.mxu0 %v8024_v44  ;;  %v8120_v44 = vld [vmem:[%s11426_s1 + $0x1050] ss:$8 sps:$4 sm:$0xff]  }
 0x1d0   :  { %5743 = vmatprep.subr.bf16.mxu0 %v8032_v45  ;;  %v8128_v45 = vld [vmem:[%s11426_s1 + $0x1044] ss:$8 sps:$4 sm:$0xff]  }
 0x1d1   :  { %5785 = vmatpush1.bf16.msra.mxu1 %v8027_v46  ;;  %v8123_v46 = vld [vmem:[%s11426_s1 + $0x1150] ss:$8 sps:$4 sm:$0xff]  }
 0x1d2   :  { %5786 = vmatprep.subr.bf16.mxu1 %v8035_v47  ;;  %v8131_v47 = vld [vmem:[%s11426_s1 + $0x1144] ss:$8 sps:$4 sm:$0xff]  }
 0x1d3   :  { %5744 = vmatpush1.bf16.msra.mxu0 %v8030_v48  ;;  %v8126_v48 = vld [vmem:[%s11426_s1 + $0x1040] ss:$8 sps:$4 sm:$0xff]  }
 0x1d4   :  { %5745 = vmatprep.subr.bf16.mxu0 %v8038_v49  ;;  %v8134_v49 = vld [vmem:[%s11426_s1 + $0x1034] ss:$8 sps:$4 sm:$0xff]  }
 0x1d5   :  { %5787 = vmatpush1.bf16.msra.mxu1 %v8033_v50  ;;  %v8129_v50 = vld [vmem:[%s11426_s1 + $0x1140] ss:$8 sps:$4 sm:$0xff]  }
 0x1d6   :  { %5788 = vmatprep.subr.bf16.mxu1 %v8041_v51  ;;  %v8137_v51 = vld [vmem:[%s11426_s1 + $0x1134] ss:$8 sps:$4 sm:$0xff]  }
 0x1d7   :  { %5746 = vmatpush1.bf16.msra.mxu0 %v8036_v52  ;;  %v8132_v52 = vld [vmem:[%s11426_s1 + $0x1030] ss:$8 sps:$4 sm:$0xff]  }
 0x1d8   :  { %5747 = vmatprep.subr.bf16.mxu0 %v8044_v53  ;;  %v8140_v53 = vld [vmem:[%s11426_s1 + $0x1024] ss:$8 sps:$4 sm:$0xff]  }
 0x1d9   :  { %5789 = vmatpush1.bf16.msra.mxu1 %v8039_v54  ;;  %v8135_v54 = vld [vmem:[%s11426_s1 + $0x1130] ss:$8 sps:$4 sm:$0xff]  }
 0x1da   :  { %5790 = vmatprep.subr.bf16.mxu1 %v8047_v55  ;;  %v8143_v55 = vld [vmem:[%s11426_s1 + $0x1124] ss:$8 sps:$4 sm:$0xff]  }
 0x1db   :  { %5748 = vmatpush1.bf16.msra.mxu0 %v8042_v56  ;;  %v8138_v56 = vld [vmem:[%s11426_s1 + $0x1020] ss:$8 sps:$4 sm:$0xff]  }
 0x1dc   :  { %5749 = vmatprep.subr.bf16.mxu0 %v8050_v57  ;;  %v8146_v57 = vld [vmem:[%s11426_s1 + $0x1014] ss:$8 sps:$4 sm:$0xff]  }
 0x1dd   :  { %5791 = vmatpush1.bf16.msra.mxu1 %v8045_v58  ;;  %v8141_v58 = vld [vmem:[%s11426_s1 + $0x1120] ss:$8 sps:$4 sm:$0xff]  }
 0x1de   :  { %5792 = vmatprep.subr.bf16.mxu1 %v8053_v59  ;;  %v8149_v59 = vld [vmem:[%s11426_s1 + $0x1114] ss:$8 sps:$4 sm:$0xff]  }
 0x1df   :  { %5750 = vmatpush1.bf16.msra.mxu0 %v8048_v60  ;;  %v8144_v60 = vld [vmem:[%s11426_s1 + $0x1010] ss:$8 sps:$4 sm:$0xff]  }
 0x1e0   :  { %5751 = vmatprep.subr.bf16.mxu0 %v8056_v61  ;;  %v8152_v61 = vld [vmem:[%s11426_s1 + $0x1004] ss:$8 sps:$4 sm:$0xff]  }
 0x1e1   :  { %5793 = vmatpush1.bf16.msra.mxu1 %v8051_v62  ;;  %v8147_v62 = vld [vmem:[%s11426_s1 + $0x1110] ss:$8 sps:$4 sm:$0xff]  }
 0x1e2   :  { %5794 = vmatprep.subr.bf16.mxu1 %v8059_v63  ;;  %v8155_v63 = vld [vmem:[%s11426_s1 + $0x1104] ss:$8 sps:$4 sm:$0xff]  }
 0x1e3   :  { %5752 = vmatpush2.bf16.msra.mxu0 %v8054_v0  ;;  %v8150_v0 = vld [vmem:[%s11426_s1 + $0x1000] ss:$8 sps:$4 sm:$0xff]  }
 0x1e4   :  { %5753 = vmatprep.subr.bf16.mxu0 %v8062_v1  ;;  %v8158_v1 = vld [vmem:[%s11426_s1 + $0x10f4] ss:$8 sps:$4 sm:$0xff]  }
 0x1e5   :  { %5795 = vmatpush2.bf16.msra.mxu1 %v8057_v2  ;;  %v8153_v2 = vld [vmem:[%s11426_s1 + $0x1100] ss:$8 sps:$4 sm:$0xff]  }
 0x1e6   :  { %5796 = vmatprep.subr.bf16.mxu1 %v8065_v3  ;;  %v8161_v3 = vld [vmem:[%s11426_s1 + $0x11f4] ss:$8 sps:$4 sm:$0xff]  }
 0x1e7   :  { %5754 = vmatpush2.bf16.msra.mxu0 %v8060_v4  ;;  %v8156_v4 = vld [vmem:[%s11426_s1 + $0x10f0] ss:$8 sps:$4 sm:$0xff]  }
 0x1e8   :  { %5755 = vmatprep.subr.bf16.mxu0 %v8068_v5  ;;  %v8164_v5 = vld [vmem:[%s11426_s1 + $0x10e4] ss:$8 sps:$4 sm:$0xff]  }
 0x1e9   :  { %5797 = vmatpush2.bf16.msra.mxu1 %v8063_v6  ;;  %v8159_v6 = vld [vmem:[%s11426_s1 + $0x11f0] ss:$8 sps:$4 sm:$0xff]  }
 0x1ea   :  { %5798 = vmatprep.subr.bf16.mxu1 %v8071_v7  ;;  %v8167_v7 = vld [vmem:[%s11426_s1 + $0x11e4] ss:$8 sps:$4 sm:$0xff]  }
 0x1eb   :  { %5756 = vmatpush2.bf16.msra.mxu0 %v8066_v8  ;;  %v8162_v8 = vld [vmem:[%s11426_s1 + $0x10e0] ss:$8 sps:$4 sm:$0xff]  }
 0x1ec   :  { %5757 = vmatprep.subr.bf16.mxu0 %v8074_v9  ;;  %v8170_v9 = vld [vmem:[%s11426_s1 + $0x10d4] ss:$8 sps:$4 sm:$0xff]  }
 0x1ed   :  { %5799 = vmatpush2.bf16.msra.mxu1 %v8069_v10  ;;  %v8165_v10 = vld [vmem:[%s11426_s1 + $0x11e0] ss:$8 sps:$4 sm:$0xff]  }
 0x1ee   :  { %5800 = vmatprep.subr.bf16.mxu1 %v8077_v11  ;;  %v8173_v11 = vld [vmem:[%s11426_s1 + $0x11d4] ss:$8 sps:$4 sm:$0xff]  }
 0x1ef   :  { %5758 = vmatpush2.bf16.msra.mxu0 %v8072_v12  ;;  %v8168_v12 = vld [vmem:[%s11426_s1 + $0x10d0] ss:$8 sps:$4 sm:$0xff]  }
 0x1f0   :  { %5759 = vmatprep.subr.bf16.mxu0 %v8080_v13  ;;  %v8176_v13 = vld [vmem:[%s11426_s1 + $0x10c4] ss:$8 sps:$4 sm:$0xff]  }
 0x1f1   :  { %5801 = vmatpush2.bf16.msra.mxu1 %v8075_v14  ;;  %v8171_v14 = vld [vmem:[%s11426_s1 + $0x11d0] ss:$8 sps:$4 sm:$0xff]  }
 0x1f2   :  { %5802 = vmatprep.subr.bf16.mxu1 %v8083_v15  ;;  %v8179_v15 = vld [vmem:[%s11426_s1 + $0x11c4] ss:$8 sps:$4 sm:$0xff]  }
 0x1f3   :  { %5760 = vmatpush2.bf16.msra.mxu0 %v8078_v16  ;;  %v8174_v16 = vld [vmem:[%s11426_s1 + $0x10c0] ss:$8 sps:$4 sm:$0xff]  }
 0x1f4   :  { %5761 = vmatprep.subr.bf16.mxu0 %v8086_v17  ;;  %v8182_v17 = vld [vmem:[%s11426_s1 + $0x10b4] ss:$8 sps:$4 sm:$0xff]  }
 0x1f5   :  { %5803 = vmatpush2.bf16.msra.mxu1 %v8081_v18  ;;  %v8177_v18 = vld [vmem:[%s11426_s1 + $0x11c0] ss:$8 sps:$4 sm:$0xff]  }
 0x1f6   :  { %5804 = vmatprep.subr.bf16.mxu1 %v8089_v19  ;;  %v8185_v19 = vld [vmem:[%s11426_s1 + $0x11b4] ss:$8 sps:$4 sm:$0xff]  }
 0x1f7   :  { %5762 = vmatpush2.bf16.msra.mxu0 %v8084_v20  ;;  %v8180_v20 = vld [vmem:[%s11426_s1 + $0x10b0] ss:$8 sps:$4 sm:$0xff]  }
 0x1f8   :  { %5763 = vmatprep.subr.bf16.mxu0 %v8092_v21  ;;  %v8188_v21 = vld [vmem:[%s11426_s1 + $0x10a4] ss:$8 sps:$4 sm:$0xff]  }
 0x1f9   :  { %5805 = vmatpush2.bf16.msra.mxu1 %v8087_v22  ;;  %v8183_v22 = vld [vmem:[%s11426_s1 + $0x11b0] ss:$8 sps:$4 sm:$0xff]  }
 0x1fa   :  { %5806 = vmatprep.subr.bf16.mxu1 %v8095_v23  ;;  %v8191_v23 = vld [vmem:[%s11426_s1 + $0x11a4] ss:$8 sps:$4 sm:$0xff]  }
 0x1fb   :  { %5764 = vmatpush2.bf16.msra.mxu0 %v8090_v24  ;;  %v8186_v24 = vld [vmem:[%s11426_s1 + $0x10a0] ss:$8 sps:$4 sm:$0xff]  }
 0x1fc   :  { %5765 = vmatprep.subr.bf16.mxu0 %v8098_v25  ;;  %v8194_v25 = vld [vmem:[%s11426_s1 + $0x1094] ss:$8 sps:$4 sm:$0xff]  }
 0x1fd   :  { %5807 = vmatpush2.bf16.msra.mxu1 %v8093_v26  ;;  %v8189_v26 = vld [vmem:[%s11426_s1 + $0x11a0] ss:$8 sps:$4 sm:$0xff]  }
 0x1fe   :  { %5808 = vmatprep.subr.bf16.mxu1 %v8101_v27  ;;  %v8197_v27 = vld [vmem:[%s11426_s1 + $0x1194] ss:$8 sps:$4 sm:$0xff]  }
 0x1ff   :  { %5766 = vmatpush2.bf16.msra.mxu0 %v8096_v28  ;;  %v8192_v28 = vld [vmem:[%s11426_s1 + $0x1090] ss:$8 sps:$4 sm:$0xff]  }
 0x200   :  { %5821 = vmatprep.subr.bf16.mxu0 %v8107_v29  ;;  %v8200_v29 = vld [vmem:[%s11426_s1 + $0x1084] ss:$8 sps:$4 sm:$0xff]  }
 0x201   :  { %5809 = vmatpush2.bf16.msra.mxu1 %v8099_v30  ;;  %v8195_v30 = vld [vmem:[%s11426_s1 + $0x1190] ss:$8 sps:$4 sm:$0xff]  }
 0x202   :  { %5768 = vmatmul.mubr.bf16.vlgmr.msra.gmra.mxu0 %v8102_v31  ;;  %5864 = vmatprep.subr.bf16.mxu1 %v8113_v32  ;;  %v8203_v31 = vld [vmem:[%s11426_s1 + $0x1184] ss:$8 sps:$4 sm:$0xff]   ;;  %v8198_v32 = vld [vmem:[%s11426_s1 + $0x1080] ss:$8 sps:$4 sm:$0xff]  }
 0x203   :  { %5822 = vmatpush1.bf16.msra.mxu0 %v8105_v33  ;;  %5853 = vmatprep.mubr.bf16.mxu0 %v8206_v34  ;;  %v8209_v33 = vld [vmem:[%s11426_s1 + $0x1274] ss:$8 sps:$4 sm:$0xff]   ;;  %v8201_v34 = vld [vmem:[%s11426_s1 + $0x1180] ss:$8 sps:$4 sm:$0xff]  }
 0x204   :  { %5811 = vmatmul.mubr.bf16.vlgmr.msra.gmra.mxu1 %v8108_v35  ;;  %5823 = vmatprep.subr.bf16.mxu0 %v8116_v36  ;;  %v8204_v35 = vld [vmem:[%s11427_s0 + $0x80] ss:$200 sps:$4 sm:$0xff]   ;;  %v8215_v36 = vld [vmem:[%s11426_s1 + $0x1374] ss:$8 sps:$4 sm:$0xff]  }
 0x205   :  { %5865 = vmatpush1.bf16.msra.mxu1 %v8111_v37  ;;  %5896 = vmatprep.mubr.bf16.mxu1 %v8212_v38  ;;  %v8207_v37 = vld [vmem:[%s11426_s1 + $0x1270] ss:$8 sps:$4 sm:$0xff]   ;;  %v8308_v38 = vld [vmem:[%s11427_s0 + $0x94] ss:$200 sps:$4 sm:$0xff]  }
 0x206   :  { %5866 = vmatprep.subr.bf16.mxu1 %v8119_v39  ;;  %v8210_v39 = vld [vmem:[%s11427_s0 + $0x88] ss:$200 sps:$4 sm:$0xff]  }
 0x207   :  { %5824 = vmatpush1.bf16.msra.mxu0 %v8114_v40  ;;  %v8218_v40 = vld [vmem:[%s11426_s1 + $0x1264] ss:$8 sps:$4 sm:$0xff]  }
 0x208   :  { %5825 = vmatprep.subr.bf16.mxu0 %v8122_v41  ;;  %v8213_v41 = vld [vmem:[%s11426_s1 + $0x1370] ss:$8 sps:$4 sm:$0xff]  }
 0x209   :  { %5867 = vmatpush1.bf16.msra.mxu1 %v8117_v42  ;;  %v8314_v42 = vld [vmem:[%s11427_s0 + $0x9c] ss:$200 sps:$4 sm:$0xff]  }
 0x20a   :  { %5868 = vmatprep.subr.bf16.mxu1 %v8125_v43  ;;  %v8221_v43 = vld [vmem:[%s11426_s1 + $0x1364] ss:$8 sps:$4 sm:$0xff]  }
 0x20b   :  { %5826 = vmatpush1.bf16.msra.mxu0 %v8120_v44  ;;  %v8216_v44 = vld [vmem:[%s11426_s1 + $0x1260] ss:$8 sps:$4 sm:$0xff]  }
 0x20c   :  { %5827 = vmatprep.subr.bf16.mxu0 %v8128_v45  ;;  %v8224_v45 = vld [vmem:[%s11426_s1 + $0x1254] ss:$8 sps:$4 sm:$0xff]  }
 0x20d   :  { %5869 = vmatpush1.bf16.msra.mxu1 %v8123_v46  ;;  %v8219_v46 = vld [vmem:[%s11426_s1 + $0x1360] ss:$8 sps:$4 sm:$0xff]  }
 0x20e   :  { %5870 = vmatprep.subr.bf16.mxu1 %v8131_v47  ;;  %v8227_v47 = vld [vmem:[%s11426_s1 + $0x1354] ss:$8 sps:$4 sm:$0xff]  }
 0x20f   :  { %5828 = vmatpush1.bf16.msra.mxu0 %v8126_v48  ;;  %v8222_v48 = vld [vmem:[%s11426_s1 + $0x1250] ss:$8 sps:$4 sm:$0xff]  }
 0x210   :  { %5829 = vmatprep.subr.bf16.mxu0 %v8134_v49  ;;  %v8230_v49 = vld [vmem:[%s11426_s1 + $0x1244] ss:$8 sps:$4 sm:$0xff]  }
 0x211   :  { %5871 = vmatpush1.bf16.msra.mxu1 %v8129_v50  ;;  %v8225_v50 = vld [vmem:[%s11426_s1 + $0x1350] ss:$8 sps:$4 sm:$0xff]  }
 0x212   :  { %5872 = vmatprep.subr.bf16.mxu1 %v8137_v51  ;;  %v8233_v51 = vld [vmem:[%s11426_s1 + $0x1344] ss:$8 sps:$4 sm:$0xff]  }
 0x213   :  { %5830 = vmatpush1.bf16.msra.mxu0 %v8132_v52  ;;  %v8228_v52 = vld [vmem:[%s11426_s1 + $0x1240] ss:$8 sps:$4 sm:$0xff]  }
 0x214   :  { %5831 = vmatprep.subr.bf16.mxu0 %v8140_v53  ;;  %v8236_v53 = vld [vmem:[%s11426_s1 + $0x1234] ss:$8 sps:$4 sm:$0xff]  }
 0x215   :  { %5873 = vmatpush1.bf16.msra.mxu1 %v8135_v54  ;;  %v8231_v54 = vld [vmem:[%s11426_s1 + $0x1340] ss:$8 sps:$4 sm:$0xff]  }
 0x216   :  { %5874 = vmatprep.subr.bf16.mxu1 %v8143_v55  ;;  %v8239_v55 = vld [vmem:[%s11426_s1 + $0x1334] ss:$8 sps:$4 sm:$0xff]  }
 0x217   :  { %5832 = vmatpush1.bf16.msra.mxu0 %v8138_v56  ;;  %v8234_v56 = vld [vmem:[%s11426_s1 + $0x1230] ss:$8 sps:$4 sm:$0xff]  }
 0x218   :  { %5833 = vmatprep.subr.bf16.mxu0 %v8146_v57  ;;  %v8242_v57 = vld [vmem:[%s11426_s1 + $0x1224] ss:$8 sps:$4 sm:$0xff]  }
 0x219   :  { %5875 = vmatpush1.bf16.msra.mxu1 %v8141_v58  ;;  %v8237_v58 = vld [vmem:[%s11426_s1 + $0x1330] ss:$8 sps:$4 sm:$0xff]  }
 0x21a   :  { %5876 = vmatprep.subr.bf16.mxu1 %v8149_v59  ;;  %v8245_v59 = vld [vmem:[%s11426_s1 + $0x1324] ss:$8 sps:$4 sm:$0xff]  }
 0x21b   :  { %5834 = vmatpush1.bf16.msra.mxu0 %v8144_v60  ;;  %v8240_v60 = vld [vmem:[%s11426_s1 + $0x1220] ss:$8 sps:$4 sm:$0xff]  }
 0x21c   :  { %5835 = vmatprep.subr.bf16.mxu0 %v8152_v61  ;;  %v8248_v61 = vld [vmem:[%s11426_s1 + $0x1214] ss:$8 sps:$4 sm:$0xff]  }
 0x21d   :  { %5877 = vmatpush1.bf16.msra.mxu1 %v8147_v62  ;;  %v8243_v62 = vld [vmem:[%s11426_s1 + $0x1320] ss:$8 sps:$4 sm:$0xff]  }
 0x21e   :  { %5878 = vmatprep.subr.bf16.mxu1 %v8155_v63  ;;  %v8251_v63 = vld [vmem:[%s11426_s1 + $0x1314] ss:$8 sps:$4 sm:$0xff]  }
 0x21f   :  { %5836 = vmatpush1.bf16.msra.mxu0 %v8150_v0  ;;  %v8246_v0 = vld [vmem:[%s11426_s1 + $0x1210] ss:$8 sps:$4 sm:$0xff]  }
 0x220   :  { %5837 = vmatprep.subr.bf16.mxu0 %v8158_v1  ;;  %v8254_v1 = vld [vmem:[%s11426_s1 + $0x1204] ss:$8 sps:$4 sm:$0xff]  }
 0x221   :  { %5879 = vmatpush1.bf16.msra.mxu1 %v8153_v2  ;;  %v8249_v2 = vld [vmem:[%s11426_s1 + $0x1310] ss:$8 sps:$4 sm:$0xff]  }
 0x222   :  { %5880 = vmatprep.subr.bf16.mxu1 %v8161_v3  ;;  %v8257_v3 = vld [vmem:[%s11426_s1 + $0x1304] ss:$8 sps:$4 sm:$0xff]  }
 0x223   :  { %5838 = vmatpush2.bf16.msra.mxu0 %v8156_v4  ;;  %v8252_v4 = vld [vmem:[%s11426_s1 + $0x1200] ss:$8 sps:$4 sm:$0xff]  }
 0x224   :  { %5839 = vmatprep.subr.bf16.mxu0 %v8164_v5  ;;  %v8260_v5 = vld [vmem:[%s11426_s1 + $0x12f4] ss:$8 sps:$4 sm:$0xff]  }
 0x225   :  { %5881 = vmatpush2.bf16.msra.mxu1 %v8159_v6  ;;  %v8255_v6 = vld [vmem:[%s11426_s1 + $0x1300] ss:$8 sps:$4 sm:$0xff]  }
 0x226   :  { %5882 = vmatprep.subr.bf16.mxu1 %v8167_v7  ;;  %v8263_v7 = vld [vmem:[%s11426_s1 + $0x13f4] ss:$8 sps:$4 sm:$0xff]  }
 0x227   :  { %5840 = vmatpush2.bf16.msra.mxu0 %v8162_v8  ;;  %v8258_v8 = vld [vmem:[%s11426_s1 + $0x12f0] ss:$8 sps:$4 sm:$0xff]  }
 0x228   :  { %5841 = vmatprep.subr.bf16.mxu0 %v8170_v9  ;;  %v8266_v9 = vld [vmem:[%s11426_s1 + $0x12e4] ss:$8 sps:$4 sm:$0xff]  }
 0x229   :  { %5883 = vmatpush2.bf16.msra.mxu1 %v8165_v10  ;;  %v8261_v10 = vld [vmem:[%s11426_s1 + $0x13f0] ss:$8 sps:$4 sm:$0xff]  }
 0x22a   :  { %5884 = vmatprep.subr.bf16.mxu1 %v8173_v11  ;;  %v8269_v11 = vld [vmem:[%s11426_s1 + $0x13e4] ss:$8 sps:$4 sm:$0xff]  }
 0x22b   :  { %5842 = vmatpush2.bf16.msra.mxu0 %v8168_v12  ;;  %v8264_v12 = vld [vmem:[%s11426_s1 + $0x12e0] ss:$8 sps:$4 sm:$0xff]  }
 0x22c   :  { %5843 = vmatprep.subr.bf16.mxu0 %v8176_v13  ;;  %v8272_v13 = vld [vmem:[%s11426_s1 + $0x12d4] ss:$8 sps:$4 sm:$0xff]  }
 0x22d   :  { %5885 = vmatpush2.bf16.msra.mxu1 %v8171_v14  ;;  %v8267_v14 = vld [vmem:[%s11426_s1 + $0x13e0] ss:$8 sps:$4 sm:$0xff]  }
 0x22e   :  { %5886 = vmatprep.subr.bf16.mxu1 %v8179_v15  ;;  %v8275_v15 = vld [vmem:[%s11426_s1 + $0x13d4] ss:$8 sps:$4 sm:$0xff]  }
 0x22f   :  { %5844 = vmatpush2.bf16.msra.mxu0 %v8174_v16  ;;  %v8270_v16 = vld [vmem:[%s11426_s1 + $0x12d0] ss:$8 sps:$4 sm:$0xff]  }
 0x230   :  { %5845 = vmatprep.subr.bf16.mxu0 %v8182_v17  ;;  %v8278_v17 = vld [vmem:[%s11426_s1 + $0x12c4] ss:$8 sps:$4 sm:$0xff]  }
 0x231   :  { %5887 = vmatpush2.bf16.msra.mxu1 %v8177_v18  ;;  %v8273_v18 = vld [vmem:[%s11426_s1 + $0x13d0] ss:$8 sps:$4 sm:$0xff]  }
 0x232   :  { %5888 = vmatprep.subr.bf16.mxu1 %v8185_v19  ;;  %v8281_v19 = vld [vmem:[%s11426_s1 + $0x13c4] ss:$8 sps:$4 sm:$0xff]  }
 0x233   :  { %5846 = vmatpush2.bf16.msra.mxu0 %v8180_v20  ;;  %v8276_v20 = vld [vmem:[%s11426_s1 + $0x12c0] ss:$8 sps:$4 sm:$0xff]  }
 0x234   :  { %5847 = vmatprep.subr.bf16.mxu0 %v8188_v21  ;;  %v8284_v21 = vld [vmem:[%s11426_s1 + $0x12b4] ss:$8 sps:$4 sm:$0xff]  }
 0x235   :  { %5889 = vmatpush2.bf16.msra.mxu1 %v8183_v22  ;;  %v8279_v22 = vld [vmem:[%s11426_s1 + $0x13c0] ss:$8 sps:$4 sm:$0xff]  }
 0x236   :  { %5890 = vmatprep.subr.bf16.mxu1 %v8191_v23  ;;  %v8287_v23 = vld [vmem:[%s11426_s1 + $0x13b4] ss:$8 sps:$4 sm:$0xff]  }
 0x237   :  { %5848 = vmatpush2.bf16.msra.mxu0 %v8186_v24  ;;  %v8282_v24 = vld [vmem:[%s11426_s1 + $0x12b0] ss:$8 sps:$4 sm:$0xff]  }
 0x238   :  { %5849 = vmatprep.subr.bf16.mxu0 %v8194_v25  ;;  %v8290_v25 = vld [vmem:[%s11426_s1 + $0x12a4] ss:$8 sps:$4 sm:$0xff]  }
 0x239   :  { %5891 = vmatpush2.bf16.msra.mxu1 %v8189_v26  ;;  %v8285_v26 = vld [vmem:[%s11426_s1 + $0x13b0] ss:$8 sps:$4 sm:$0xff]  }
 0x23a   :  { %5892 = vmatprep.subr.bf16.mxu1 %v8197_v27  ;;  %v8293_v27 = vld [vmem:[%s11426_s1 + $0x13a4] ss:$8 sps:$4 sm:$0xff]  }
 0x23b   :  { %5850 = vmatpush2.bf16.msra.mxu0 %v8192_v28  ;;  %v8288_v28 = vld [vmem:[%s11426_s1 + $0x12a0] ss:$8 sps:$4 sm:$0xff]  }
 0x23c   :  { %5851 = vmatprep.subr.bf16.mxu0 %v8200_v29  ;;  %v8296_v29 = vld [vmem:[%s11426_s1 + $0x1294] ss:$8 sps:$4 sm:$0xff]  }
 0x23d   :  { %5893 = vmatpush2.bf16.msra.mxu1 %v8195_v30  ;;  %v8291_v30 = vld [vmem:[%s11426_s1 + $0x13a0] ss:$8 sps:$4 sm:$0xff]  }
 0x23e   :  { %5894 = vmatprep.subr.bf16.mxu1 %v8203_v31  ;;  %v8299_v31 = vld [vmem:[%s11426_s1 + $0x1394] ss:$8 sps:$4 sm:$0xff]  }
 0x23f   :  { %5852 = vmatpush2.bf16.msra.mxu0 %v8198_v32  ;;  %v8294_v32 = vld [vmem:[%s11426_s1 + $0x1290] ss:$8 sps:$4 sm:$0xff]  }
 0x240   :  { %5907 = vmatprep.subr.bf16.mxu0 %v8209_v33  ;;  %v8302_v33 = vld [vmem:[%s11426_s1 + $0x1284] ss:$8 sps:$4 sm:$0xff]  }
 0x241   :  { %5895 = vmatpush2.bf16.msra.mxu1 %v8201_v34  ;;  %v8297_v34 = vld [vmem:[%s11426_s1 + $0x1390] ss:$8 sps:$4 sm:$0xff]  }
 0x242   :  { %5854 = vmatmul.mubr.bf16.vlgmr.msra.gmra.mxu0 %v8204_v35  ;;  %5950 = vmatprep.subr.bf16.mxu1 %v8215_v36  ;;  %v8305_v35 = vld [vmem:[%s11426_s1 + $0x1384] ss:$8 sps:$4 sm:$0xff]   ;;  %v8300_v36 = vld [vmem:[%s11426_s1 + $0x1280] ss:$8 sps:$4 sm:$0xff]  }
 0x243   :  { %5908 = vmatpush1.bf16.msra.mxu0 %v8207_v37  ;;  %5939 = vmatprep.mubr.bf16.mxu0 %v8308_v38  ;;  %v8311_v37 = vld [vmem:[%s11426_s1 + $0x1474] ss:$8 sps:$4 sm:$0xff]   ;;  %v8303_v38 = vld [vmem:[%s11426_s1 + $0x1380] ss:$8 sps:$4 sm:$0xff]  }
 0x244   :  { %5897 = vmatmul.mubr.bf16.vlgmr.msra.gmra.mxu1 %v8210_v39  ;;  %5909 = vmatprep.subr.bf16.mxu0 %v8218_v40  ;;  %v8306_v39 = vld [vmem:[%s11427_s0 + $0x90] ss:$200 sps:$4 sm:$0xff]   ;;  %v8317_v40 = vld [vmem:[%s11426_s1 + $0x1574] ss:$8 sps:$4 sm:$0xff]  }
 0x245   :  { %5951 = vmatpush1.bf16.msra.mxu1 %v8213_v41  ;;  %5982 = vmatprep.mubr.bf16.mxu1 %v8314_v42  ;;  %v8309_v41 = vld [vmem:[%s11426_s1 + $0x1470] ss:$8 sps:$4 sm:$0xff]   ;;  %v8410_v42 = vld [vmem:[%s11427_s0 + $0xa4] ss:$200 sps:$4 sm:$0xff]  }
 0x246   :  { %5952 = vmatprep.subr.bf16.mxu1 %v8221_v43  ;;  %v8312_v43 = vld [vmem:[%s11427_s0 + $0x98] ss:$200 sps:$4 sm:$0xff]  }
 0x247   :  { %5910 = vmatpush1.bf16.msra.mxu0 %v8216_v44  ;;  %v8320_v44 = vld [vmem:[%s11426_s1 + $0x1464] ss:$8 sps:$4 sm:$0xff]  }
 0x248   :  { %5911 = vmatprep.subr.bf16.mxu0 %v8224_v45  ;;  %v8315_v45 = vld [vmem:[%s11426_s1 + $0x1570] ss:$8 sps:$4 sm:$0xff]  }
 0x249   :  { %5953 = vmatpush1.bf16.msra.mxu1 %v8219_v46  ;;  %v8416_v46 = vld [vmem:[%s11427_s0 + $0xac] ss:$200 sps:$4 sm:$0xff]  }
 0x24a   :  { %5954 = vmatprep.subr.bf16.mxu1 %v8227_v47  ;;  %v8323_v47 = vld [vmem:[%s11426_s1 + $0x1564] ss:$8 sps:$4 sm:$0xff]  }
 0x24b   :  { %5912 = vmatpush1.bf16.msra.mxu0 %v8222_v48  ;;  %v8318_v48 = vld [vmem:[%s11426_s1 + $0x1460] ss:$8 sps:$4 sm:$0xff]  }
 0x24c   :  { %5913 = vmatprep.subr.bf16.mxu0 %v8230_v49  ;;  %v8326_v49 = vld [vmem:[%s11426_s1 + $0x1454] ss:$8 sps:$4 sm:$0xff]  }
 0x24d   :  { %5955 = vmatpush1.bf16.msra.mxu1 %v8225_v50  ;;  %v8321_v50 = vld [vmem:[%s11426_s1 + $0x1560] ss:$8 sps:$4 sm:$0xff]  }
 0x24e   :  { %5956 = vmatprep.subr.bf16.mxu1 %v8233_v51  ;;  %v8329_v51 = vld [vmem:[%s11426_s1 + $0x1554] ss:$8 sps:$4 sm:$0xff]  }
 0x24f   :  { %5914 = vmatpush1.bf16.msra.mxu0 %v8228_v52  ;;  %v8324_v52 = vld [vmem:[%s11426_s1 + $0x1450] ss:$8 sps:$4 sm:$0xff]  }
 0x250   :  { %5915 = vmatprep.subr.bf16.mxu0 %v8236_v53  ;;  %v8332_v53 = vld [vmem:[%s11426_s1 + $0x1444] ss:$8 sps:$4 sm:$0xff]  }
 0x251   :  { %5957 = vmatpush1.bf16.msra.mxu1 %v8231_v54  ;;  %v8327_v54 = vld [vmem:[%s11426_s1 + $0x1550] ss:$8 sps:$4 sm:$0xff]  }
 0x252   :  { %5958 = vmatprep.subr.bf16.mxu1 %v8239_v55  ;;  %v8335_v55 = vld [vmem:[%s11426_s1 + $0x1544] ss:$8 sps:$4 sm:$0xff]  }
 0x253   :  { %5916 = vmatpush1.bf16.msra.mxu0 %v8234_v56  ;;  %v8330_v56 = vld [vmem:[%s11426_s1 + $0x1440] ss:$8 sps:$4 sm:$0xff]  }
 0x254   :  { %5917 = vmatprep.subr.bf16.mxu0 %v8242_v57  ;;  %v8338_v57 = vld [vmem:[%s11426_s1 + $0x1434] ss:$8 sps:$4 sm:$0xff]  }
 0x255   :  { %5959 = vmatpush1.bf16.msra.mxu1 %v8237_v58  ;;  %v8333_v58 = vld [vmem:[%s11426_s1 + $0x1540] ss:$8 sps:$4 sm:$0xff]  }
 0x256   :  { %5960 = vmatprep.subr.bf16.mxu1 %v8245_v59  ;;  %v8341_v59 = vld [vmem:[%s11426_s1 + $0x1534] ss:$8 sps:$4 sm:$0xff]  }
 0x257   :  { %5918 = vmatpush1.bf16.msra.mxu0 %v8240_v60  ;;  %v8336_v60 = vld [vmem:[%s11426_s1 + $0x1430] ss:$8 sps:$4 sm:$0xff]  }
 0x258   :  { %5919 = vmatprep.subr.bf16.mxu0 %v8248_v61  ;;  %v8344_v61 = vld [vmem:[%s11426_s1 + $0x1424] ss:$8 sps:$4 sm:$0xff]  }
 0x259   :  { %5961 = vmatpush1.bf16.msra.mxu1 %v8243_v62  ;;  %v8339_v62 = vld [vmem:[%s11426_s1 + $0x1530] ss:$8 sps:$4 sm:$0xff]  }
 0x25a   :  { %5962 = vmatprep.subr.bf16.mxu1 %v8251_v63  ;;  %v8347_v63 = vld [vmem:[%s11426_s1 + $0x1524] ss:$8 sps:$4 sm:$0xff]  }
 0x25b   :  { %5920 = vmatpush1.bf16.msra.mxu0 %v8246_v0  ;;  %v8342_v0 = vld [vmem:[%s11426_s1 + $0x1420] ss:$8 sps:$4 sm:$0xff]  }
 0x25c   :  { %5921 = vmatprep.subr.bf16.mxu0 %v8254_v1  ;;  %v8350_v1 = vld [vmem:[%s11426_s1 + $0x1414] ss:$8 sps:$4 sm:$0xff]  }
 0x25d   :  { %5963 = vmatpush1.bf16.msra.mxu1 %v8249_v2  ;;  %v8345_v2 = vld [vmem:[%s11426_s1 + $0x1520] ss:$8 sps:$4 sm:$0xff]  }
 0x25e   :  { %5964 = vmatprep.subr.bf16.mxu1 %v8257_v3  ;;  %v8353_v3 = vld [vmem:[%s11426_s1 + $0x1514] ss:$8 sps:$4 sm:$0xff]  }
 0x25f   :  { %5922 = vmatpush1.bf16.msra.mxu0 %v8252_v4  ;;  %v8348_v4 = vld [vmem:[%s11426_s1 + $0x1410] ss:$8 sps:$4 sm:$0xff]  }
 0x260   :  { %5923 = vmatprep.subr.bf16.mxu0 %v8260_v5  ;;  %v8356_v5 = vld [vmem:[%s11426_s1 + $0x1404] ss:$8 sps:$4 sm:$0xff]  }
 0x261   :  { %5965 = vmatpush1.bf16.msra.mxu1 %v8255_v6  ;;  %v8351_v6 = vld [vmem:[%s11426_s1 + $0x1510] ss:$8 sps:$4 sm:$0xff]  }
 0x262   :  { %5966 = vmatprep.subr.bf16.mxu1 %v8263_v7  ;;  %v8359_v7 = vld [vmem:[%s11426_s1 + $0x1504] ss:$8 sps:$4 sm:$0xff]  }
 0x263   :  { %5924 = vmatpush2.bf16.msra.mxu0 %v8258_v8  ;;  %v8354_v8 = vld [vmem:[%s11426_s1 + $0x1400] ss:$8 sps:$4 sm:$0xff]  }
 0x264   :  { %5925 = vmatprep.subr.bf16.mxu0 %v8266_v9  ;;  %v8362_v9 = vld [vmem:[%s11426_s1 + $0x14f4] ss:$8 sps:$4 sm:$0xff]  }
 0x265   :  { %5967 = vmatpush2.bf16.msra.mxu1 %v8261_v10  ;;  %v8357_v10 = vld [vmem:[%s11426_s1 + $0x1500] ss:$8 sps:$4 sm:$0xff]  }
 0x266   :  { %5968 = vmatprep.subr.bf16.mxu1 %v8269_v11  ;;  %v8365_v11 = vld [vmem:[%s11426_s1 + $0x15f4] ss:$8 sps:$4 sm:$0xff]  }
 0x267   :  { %5926 = vmatpush2.bf16.msra.mxu0 %v8264_v12  ;;  %v8360_v12 = vld [vmem:[%s11426_s1 + $0x14f0] ss:$8 sps:$4 sm:$0xff]  }
 0x268   :  { %5927 = vmatprep.subr.bf16.mxu0 %v8272_v13  ;;  %v8368_v13 = vld [vmem:[%s11426_s1 + $0x14e4] ss:$8 sps:$4 sm:$0xff]  }
 0x269   :  { %5969 = vmatpush2.bf16.msra.mxu1 %v8267_v14  ;;  %v8363_v14 = vld [vmem:[%s11426_s1 + $0x15f0] ss:$8 sps:$4 sm:$0xff]  }
 0x26a   :  { %5970 = vmatprep.subr.bf16.mxu1 %v8275_v15  ;;  %v8371_v15 = vld [vmem:[%s11426_s1 + $0x15e4] ss:$8 sps:$4 sm:$0xff]  }
 0x26b   :  { %5928 = vmatpush2.bf16.msra.mxu0 %v8270_v16  ;;  %v8366_v16 = vld [vmem:[%s11426_s1 + $0x14e0] ss:$8 sps:$4 sm:$0xff]  }
 0x26c   :  { %5929 = vmatprep.subr.bf16.mxu0 %v8278_v17  ;;  %v8374_v17 = vld [vmem:[%s11426_s1 + $0x14d4] ss:$8 sps:$4 sm:$0xff]  }
 0x26d   :  { %5971 = vmatpush2.bf16.msra.mxu1 %v8273_v18  ;;  %v8369_v18 = vld [vmem:[%s11426_s1 + $0x15e0] ss:$8 sps:$4 sm:$0xff]  }
 0x26e   :  { %5972 = vmatprep.subr.bf16.mxu1 %v8281_v19  ;;  %v8377_v19 = vld [vmem:[%s11426_s1 + $0x15d4] ss:$8 sps:$4 sm:$0xff]  }
 0x26f   :  { %5930 = vmatpush2.bf16.msra.mxu0 %v8276_v20  ;;  %v8372_v20 = vld [vmem:[%s11426_s1 + $0x14d0] ss:$8 sps:$4 sm:$0xff]  }
 0x270   :  { %5931 = vmatprep.subr.bf16.mxu0 %v8284_v21  ;;  %v8380_v21 = vld [vmem:[%s11426_s1 + $0x14c4] ss:$8 sps:$4 sm:$0xff]  }
 0x271   :  { %5973 = vmatpush2.bf16.msra.mxu1 %v8279_v22  ;;  %v8375_v22 = vld [vmem:[%s11426_s1 + $0x15d0] ss:$8 sps:$4 sm:$0xff]  }
 0x272   :  { %5974 = vmatprep.subr.bf16.mxu1 %v8287_v23  ;;  %v8383_v23 = vld [vmem:[%s11426_s1 + $0x15c4] ss:$8 sps:$4 sm:$0xff]  }
 0x273   :  { %5932 = vmatpush2.bf16.msra.mxu0 %v8282_v24  ;;  %v8378_v24 = vld [vmem:[%s11426_s1 + $0x14c0] ss:$8 sps:$4 sm:$0xff]  }
 0x274   :  { %5933 = vmatprep.subr.bf16.mxu0 %v8290_v25  ;;  %v8386_v25 = vld [vmem:[%s11426_s1 + $0x14b4] ss:$8 sps:$4 sm:$0xff]  }
 0x275   :  { %5975 = vmatpush2.bf16.msra.mxu1 %v8285_v26  ;;  %v8381_v26 = vld [vmem:[%s11426_s1 + $0x15c0] ss:$8 sps:$4 sm:$0xff]  }
 0x276   :  { %5976 = vmatprep.subr.bf16.mxu1 %v8293_v27  ;;  %v8389_v27 = vld [vmem:[%s11426_s1 + $0x15b4] ss:$8 sps:$4 sm:$0xff]  }
 0x277   :  { %5934 = vmatpush2.bf16.msra.mxu0 %v8288_v28  ;;  %v8384_v28 = vld [vmem:[%s11426_s1 + $0x14b0] ss:$8 sps:$4 sm:$0xff]  }
 0x278   :  { %5935 = vmatprep.subr.bf16.mxu0 %v8296_v29  ;;  %v8392_v29 = vld [vmem:[%s11426_s1 + $0x14a4] ss:$8 sps:$4 sm:$0xff]  }
 0x279   :  { %5977 = vmatpush2.bf16.msra.mxu1 %v8291_v30  ;;  %v8387_v30 = vld [vmem:[%s11426_s1 + $0x15b0] ss:$8 sps:$4 sm:$0xff]  }
 0x27a   :  { %5978 = vmatprep.subr.bf16.mxu1 %v8299_v31  ;;  %v8395_v31 = vld [vmem:[%s11426_s1 + $0x15a4] ss:$8 sps:$4 sm:$0xff]  }
 0x27b   :  { %5936 = vmatpush2.bf16.msra.mxu0 %v8294_v32  ;;  %v8390_v32 = vld [vmem:[%s11426_s1 + $0x14a0] ss:$8 sps:$4 sm:$0xff]  }
 0x27c   :  { %5937 = vmatprep.subr.bf16.mxu0 %v8302_v33  ;;  %v8398_v33 = vld [vmem:[%s11426_s1 + $0x1494] ss:$8 sps:$4 sm:$0xff]  }
 0x27d   :  { %5979 = vmatpush2.bf16.msra.mxu1 %v8297_v34  ;;  %v8393_v34 = vld [vmem:[%s11426_s1 + $0x15a0] ss:$8 sps:$4 sm:$0xff]  }
 0x27e   :  { %5980 = vmatprep.subr.bf16.mxu1 %v8305_v35  ;;  %v8401_v35 = vld [vmem:[%s11426_s1 + $0x1594] ss:$8 sps:$4 sm:$0xff]  }
 0x27f   :  { %5938 = vmatpush2.bf16.msra.mxu0 %v8300_v36  ;;  %v8396_v36 = vld [vmem:[%s11426_s1 + $0x1490] ss:$8 sps:$4 sm:$0xff]  }
 0x280   :  { %5993 = vmatprep.subr.bf16.mxu0 %v8311_v37  ;;  %v8404_v37 = vld [vmem:[%s11426_s1 + $0x1484] ss:$8 sps:$4 sm:$0xff]  }
 0x281   :  { %5981 = vmatpush2.bf16.msra.mxu1 %v8303_v38  ;;  %v8399_v38 = vld [vmem:[%s11426_s1 + $0x1590] ss:$8 sps:$4 sm:$0xff]  }
 0x282   :  { %5940 = vmatmul.mubr.bf16.vlgmr.msra.gmra.mxu0 %v8306_v39  ;;  %6036 = vmatprep.subr.bf16.mxu1 %v8317_v40  ;;  %v8407_v39 = vld [vmem:[%s11426_s1 + $0x1584] ss:$8 sps:$4 sm:$0xff]   ;;  %v8402_v40 = vld [vmem:[%s11426_s1 + $0x1480] ss:$8 sps:$4 sm:$0xff]  }
 0x283   :  { %5994 = vmatpush1.bf16.msra.mxu0 %v8309_v41  ;;  %6025 = vmatprep.mubr.bf16.mxu0 %v8410_v42  ;;  %v8413_v41 = vld [vmem:[%s11426_s1 + $0x1674] ss:$8 sps:$4 sm:$0xff]   ;;  %v8405_v42 = vld [vmem:[%s11426_s1 + $0x1580] ss:$8 sps:$4 sm:$0xff]  }
 0x284   :  { %5983 = vmatmul.mubr.bf16.vlgmr.msra.gmra.mxu1 %v8312_v43  ;;  %5995 = vmatprep.subr.bf16.mxu0 %v8320_v44  ;;  %v8408_v43 = vld [vmem:[%s11427_s0 + $0xa0] ss:$200 sps:$4 sm:$0xff]   ;;  %v8419_v44 = vld [vmem:[%s11426_s1 + $0x1774] ss:$8 sps:$4 sm:$0xff]  }
 0x285   :  { %6037 = vmatpush1.bf16.msra.mxu1 %v8315_v45  ;;  %6068 = vmatprep.mubr.bf16.mxu1 %v8416_v46  ;;  %v8411_v45 = vld [vmem:[%s11426_s1 + $0x1670] ss:$8 sps:$4 sm:$0xff]   ;;  %v8512_v46 = vld [vmem:[%s11427_s0 + $0xb4] ss:$200 sps:$4 sm:$0xff]  }
 0x286   :  { %6038 = vmatprep.subr.bf16.mxu1 %v8323_v47  ;;  %v8414_v47 = vld [vmem:[%s11427_s0 + $0xa8] ss:$200 sps:$4 sm:$0xff]  }
 0x287   :  { %5996 = vmatpush1.bf16.msra.mxu0 %v8318_v48  ;;  %v8422_v48 = vld [vmem:[%s11426_s1 + $0x1664] ss:$8 sps:$4 sm:$0xff]  }
 0x288   :  { %5997 = vmatprep.subr.bf16.mxu0 %v8326_v49  ;;  %v8417_v49 = vld [vmem:[%s11426_s1 + $0x1770] ss:$8 sps:$4 sm:$0xff]  }
 0x289   :  { %6039 = vmatpush1.bf16.msra.mxu1 %v8321_v50  ;;  %v8518_v50 = vld [vmem:[%s11427_s0 + $0xbc] ss:$200 sps:$4 sm:$0xff]  }
 0x28a   :  { %6040 = vmatprep.subr.bf16.mxu1 %v8329_v51  ;;  %v8425_v51 = vld [vmem:[%s11426_s1 + $0x1764] ss:$8 sps:$4 sm:$0xff]  }
 0x28b   :  { %5998 = vmatpush1.bf16.msra.mxu0 %v8324_v52  ;;  %v8420_v52 = vld [vmem:[%s11426_s1 + $0x1660] ss:$8 sps:$4 sm:$0xff]  }
 0x28c   :  { %5999 = vmatprep.subr.bf16.mxu0 %v8332_v53  ;;  %v8428_v53 = vld [vmem:[%s11426_s1 + $0x1654] ss:$8 sps:$4 sm:$0xff]  }
 0x28d   :  { %6041 = vmatpush1.bf16.msra.mxu1 %v8327_v54  ;;  %v8423_v54 = vld [vmem:[%s11426_s1 + $0x1760] ss:$8 sps:$4 sm:$0xff]  }
 0x28e   :  { %6042 = vmatprep.subr.bf16.mxu1 %v8335_v55  ;;  %v8431_v55 = vld [vmem:[%s11426_s1 + $0x1754] ss:$8 sps:$4 sm:$0xff]  }
 0x28f   :  { %6000 = vmatpush1.bf16.msra.mxu0 %v8330_v56  ;;  %v8426_v56 = vld [vmem:[%s11426_s1 + $0x1650] ss:$8 sps:$4 sm:$0xff]  }
 0x290   :  { %6001 = vmatprep.subr.bf16.mxu0 %v8338_v57  ;;  %v8434_v57 = vld [vmem:[%s11426_s1 + $0x1644] ss:$8 sps:$4 sm:$0xff]  }
 0x291   :  { %6043 = vmatpush1.bf16.msra.mxu1 %v8333_v58  ;;  %v8429_v58 = vld [vmem:[%s11426_s1 + $0x1750] ss:$8 sps:$4 sm:$0xff]  }
 0x292   :  { %6044 = vmatprep.subr.bf16.mxu1 %v8341_v59  ;;  %v8437_v59 = vld [vmem:[%s11426_s1 + $0x1744] ss:$8 sps:$4 sm:$0xff]  }
 0x293   :  { %6002 = vmatpush1.bf16.msra.mxu0 %v8336_v60  ;;  %v8432_v60 = vld [vmem:[%s11426_s1 + $0x1640] ss:$8 sps:$4 sm:$0xff]  }
 0x294   :  { %6003 = vmatprep.subr.bf16.mxu0 %v8344_v61  ;;  %v8440_v61 = vld [vmem:[%s11426_s1 + $0x1634] ss:$8 sps:$4 sm:$0xff]  }
 0x295   :  { %6045 = vmatpush1.bf16.msra.mxu1 %v8339_v62  ;;  %v8435_v62 = vld [vmem:[%s11426_s1 + $0x1740] ss:$8 sps:$4 sm:$0xff]  }
 0x296   :  { %6046 = vmatprep.subr.bf16.mxu1 %v8347_v63  ;;  %v8443_v63 = vld [vmem:[%s11426_s1 + $0x1734] ss:$8 sps:$4 sm:$0xff]  }
 0x297   :  { %6004 = vmatpush1.bf16.msra.mxu0 %v8342_v0  ;;  %v8438_v0 = vld [vmem:[%s11426_s1 + $0x1630] ss:$8 sps:$4 sm:$0xff]  }
 0x298   :  { %6005 = vmatprep.subr.bf16.mxu0 %v8350_v1  ;;  %v8446_v1 = vld [vmem:[%s11426_s1 + $0x1624] ss:$8 sps:$4 sm:$0xff]  }
 0x299   :  { %6047 = vmatpush1.bf16.msra.mxu1 %v8345_v2  ;;  %v8441_v2 = vld [vmem:[%s11426_s1 + $0x1730] ss:$8 sps:$4 sm:$0xff]  }
 0x29a   :  { %6048 = vmatprep.subr.bf16.mxu1 %v8353_v3  ;;  %v8449_v3 = vld [vmem:[%s11426_s1 + $0x1724] ss:$8 sps:$4 sm:$0xff]  }
 0x29b   :  { %6006 = vmatpush1.bf16.msra.mxu0 %v8348_v4  ;;  %v8444_v4 = vld [vmem:[%s11426_s1 + $0x1620] ss:$8 sps:$4 sm:$0xff]  }
 0x29c   :  { %6007 = vmatprep.subr.bf16.mxu0 %v8356_v5  ;;  %v8452_v5 = vld [vmem:[%s11426_s1 + $0x1614] ss:$8 sps:$4 sm:$0xff]  }
 0x29d   :  { %6049 = vmatpush1.bf16.msra.mxu1 %v8351_v6  ;;  %v8447_v6 = vld [vmem:[%s11426_s1 + $0x1720] ss:$8 sps:$4 sm:$0xff]  }
 0x29e   :  { %6050 = vmatprep.subr.bf16.mxu1 %v8359_v7  ;;  %v8455_v7 = vld [vmem:[%s11426_s1 + $0x1714] ss:$8 sps:$4 sm:$0xff]  }
 0x29f   :  { %6008 = vmatpush1.bf16.msra.mxu0 %v8354_v8  ;;  %v8450_v8 = vld [vmem:[%s11426_s1 + $0x1610] ss:$8 sps:$4 sm:$0xff]  }
 0x2a0   :  { %6009 = vmatprep.subr.bf16.mxu0 %v8362_v9  ;;  %v8458_v9 = vld [vmem:[%s11426_s1 + $0x1604] ss:$8 sps:$4 sm:$0xff]  }
 0x2a1   :  { %6051 = vmatpush1.bf16.msra.mxu1 %v8357_v10  ;;  %v8453_v10 = vld [vmem:[%s11426_s1 + $0x1710] ss:$8 sps:$4 sm:$0xff]  }
 0x2a2   :  { %6052 = vmatprep.subr.bf16.mxu1 %v8365_v11  ;;  %v8461_v11 = vld [vmem:[%s11426_s1 + $0x1704] ss:$8 sps:$4 sm:$0xff]  }
 0x2a3   :  { %6010 = vmatpush2.bf16.msra.mxu0 %v8360_v12  ;;  %v8456_v12 = vld [vmem:[%s11426_s1 + $0x1600] ss:$8 sps:$4 sm:$0xff]  }
 0x2a4   :  { %6011 = vmatprep.subr.bf16.mxu0 %v8368_v13  ;;  %v8464_v13 = vld [vmem:[%s11426_s1 + $0x16f4] ss:$8 sps:$4 sm:$0xff]  }
 0x2a5   :  { %6053 = vmatpush2.bf16.msra.mxu1 %v8363_v14  ;;  %v8459_v14 = vld [vmem:[%s11426_s1 + $0x1700] ss:$8 sps:$4 sm:$0xff]  }
 0x2a6   :  { %6054 = vmatprep.subr.bf16.mxu1 %v8371_v15  ;;  %v8467_v15 = vld [vmem:[%s11426_s1 + $0x17f4] ss:$8 sps:$4 sm:$0xff]  }
 0x2a7   :  { %6012 = vmatpush2.bf16.msra.mxu0 %v8366_v16  ;;  %v8462_v16 = vld [vmem:[%s11426_s1 + $0x16f0] ss:$8 sps:$4 sm:$0xff]  }
 0x2a8   :  { %6013 = vmatprep.subr.bf16.mxu0 %v8374_v17  ;;  %v8470_v17 = vld [vmem:[%s11426_s1 + $0x16e4] ss:$8 sps:$4 sm:$0xff]  }
 0x2a9   :  { %6055 = vmatpush2.bf16.msra.mxu1 %v8369_v18  ;;  %v8465_v18 = vld [vmem:[%s11426_s1 + $0x17f0] ss:$8 sps:$4 sm:$0xff]  }
 0x2aa   :  { %6056 = vmatprep.subr.bf16.mxu1 %v8377_v19  ;;  %v8473_v19 = vld [vmem:[%s11426_s1 + $0x17e4] ss:$8 sps:$4 sm:$0xff]  }
 0x2ab   :  { %6014 = vmatpush2.bf16.msra.mxu0 %v8372_v20  ;;  %v8468_v20 = vld [vmem:[%s11426_s1 + $0x16e0] ss:$8 sps:$4 sm:$0xff]  }
 0x2ac   :  { %6015 = vmatprep.subr.bf16.mxu0 %v8380_v21  ;;  %v8476_v21 = vld [vmem:[%s11426_s1 + $0x16d4] ss:$8 sps:$4 sm:$0xff]  }
 0x2ad   :  { %6057 = vmatpush2.bf16.msra.mxu1 %v8375_v22  ;;  %v8471_v22 = vld [vmem:[%s11426_s1 + $0x17e0] ss:$8 sps:$4 sm:$0xff]  }
 0x2ae   :  { %6058 = vmatprep.subr.bf16.mxu1 %v8383_v23  ;;  %v8479_v23 = vld [vmem:[%s11426_s1 + $0x17d4] ss:$8 sps:$4 sm:$0xff]  }
 0x2af   :  { %6016 = vmatpush2.bf16.msra.mxu0 %v8378_v24  ;;  %v8474_v24 = vld [vmem:[%s11426_s1 + $0x16d0] ss:$8 sps:$4 sm:$0xff]  }
 0x2b0   :  { %6017 = vmatprep.subr.bf16.mxu0 %v8386_v25  ;;  %v8482_v25 = vld [vmem:[%s11426_s1 + $0x16c4] ss:$8 sps:$4 sm:$0xff]  }
 0x2b1   :  { %6059 = vmatpush2.bf16.msra.mxu1 %v8381_v26  ;;  %v8477_v26 = vld [vmem:[%s11426_s1 + $0x17d0] ss:$8 sps:$4 sm:$0xff]  }
 0x2b2   :  { %6060 = vmatprep.subr.bf16.mxu1 %v8389_v27  ;;  %v8485_v27 = vld [vmem:[%s11426_s1 + $0x17c4] ss:$8 sps:$4 sm:$0xff]  }
 0x2b3   :  { %6018 = vmatpush2.bf16.msra.mxu0 %v8384_v28  ;;  %v8480_v28 = vld [vmem:[%s11426_s1 + $0x16c0] ss:$8 sps:$4 sm:$0xff]  }
 0x2b4   :  { %6019 = vmatprep.subr.bf16.mxu0 %v8392_v29  ;;  %v8488_v29 = vld [vmem:[%s11426_s1 + $0x16b4] ss:$8 sps:$4 sm:$0xff]  }
 0x2b5   :  { %6061 = vmatpush2.bf16.msra.mxu1 %v8387_v30  ;;  %v8483_v30 = vld [vmem:[%s11426_s1 + $0x17c0] ss:$8 sps:$4 sm:$0xff]  }
 0x2b6   :  { %6062 = vmatprep.subr.bf16.mxu1 %v8395_v31  ;;  %v8491_v31 = vld [vmem:[%s11426_s1 + $0x17b4] ss:$8 sps:$4 sm:$0xff]  }
 0x2b7   :  { %6020 = vmatpush2.bf16.msra.mxu0 %v8390_v32  ;;  %v8486_v32 = vld [vmem:[%s11426_s1 + $0x16b0] ss:$8 sps:$4 sm:$0xff]  }
 0x2b8   :  { %6021 = vmatprep.subr.bf16.mxu0 %v8398_v33  ;;  %v8494_v33 = vld [vmem:[%s11426_s1 + $0x16a4] ss:$8 sps:$4 sm:$0xff]  }
 0x2b9   :  { %6063 = vmatpush2.bf16.msra.mxu1 %v8393_v34  ;;  %v8489_v34 = vld [vmem:[%s11426_s1 + $0x17b0] ss:$8 sps:$4 sm:$0xff]  }
 0x2ba   :  { %6064 = vmatprep.subr.bf16.mxu1 %v8401_v35  ;;  %v8497_v35 = vld [vmem:[%s11426_s1 + $0x17a4] ss:$8 sps:$4 sm:$0xff]  }
 0x2bb   :  { %6022 = vmatpush2.bf16.msra.mxu0 %v8396_v36  ;;  %v8492_v36 = vld [vmem:[%s11426_s1 + $0x16a0] ss:$8 sps:$4 sm:$0xff]  }
 0x2bc   :  { %6023 = vmatprep.subr.bf16.mxu0 %v8404_v37  ;;  %v8500_v37 = vld [vmem:[%s11426_s1 + $0x1694] ss:$8 sps:$4 sm:$0xff]  }
 0x2bd   :  { %6065 = vmatpush2.bf16.msra.mxu1 %v8399_v38  ;;  %v8495_v38 = vld [vmem:[%s11426_s1 + $0x17a0] ss:$8 sps:$4 sm:$0xff]  }
 0x2be   :  { %6066 = vmatprep.subr.bf16.mxu1 %v8407_v39  ;;  %v8503_v39 = vld [vmem:[%s11426_s1 + $0x1794] ss:$8 sps:$4 sm:$0xff]  }
 0x2bf   :  { %6024 = vmatpush2.bf16.msra.mxu0 %v8402_v40  ;;  %v8498_v40 = vld [vmem:[%s11426_s1 + $0x1690] ss:$8 sps:$4 sm:$0xff]  }
 0x2c0   :  { %6079 = vmatprep.subr.bf16.mxu0 %v8413_v41  ;;  %v8506_v41 = vld [vmem:[%s11426_s1 + $0x1684] ss:$8 sps:$4 sm:$0xff]  }
 0x2c1   :  { %6067 = vmatpush2.bf16.msra.mxu1 %v8405_v42  ;;  %v8501_v42 = vld [vmem:[%s11426_s1 + $0x1790] ss:$8 sps:$4 sm:$0xff]  }
 0x2c2   :  { %6026 = vmatmul.mubr.bf16.vlgmr.msra.gmra.mxu0 %v8408_v43  ;;  %6122 = vmatprep.subr.bf16.mxu1 %v8419_v44  ;;  %v8509_v43 = vld [vmem:[%s11426_s1 + $0x1784] ss:$8 sps:$4 sm:$0xff]   ;;  %v8504_v44 = vld [vmem:[%s11426_s1 + $0x1680] ss:$8 sps:$4 sm:$0xff]  }
 0x2c3   :  { %6080 = vmatpush1.bf16.msra.mxu0 %v8411_v45  ;;  %6111 = vmatprep.mubr.bf16.mxu0 %v8512_v46  ;;  %v8515_v45 = vld [vmem:[%s11426_s1 + $0x1874] ss:$8 sps:$4 sm:$0xff]   ;;  %v8507_v46 = vld [vmem:[%s11426_s1 + $0x1780] ss:$8 sps:$4 sm:$0xff]  }
 0x2c4   :  { %6069 = vmatmul.mubr.bf16.vlgmr.msra.gmra.mxu1 %v8414_v47  ;;  %6081 = vmatprep.subr.bf16.mxu0 %v8422_v48  ;;  %v8510_v47 = vld [vmem:[%s11427_s0 + $0xb0] ss:$200 sps:$4 sm:$0xff]  }
 0x2c5   :  { %6123 = vmatpush1.bf16.msra.mxu1 %v8417_v49  ;;  %6154 = vmatprep.mubr.bf16.mxu1 %v8518_v50  ;;  %v8513_v48 = vld [vmem:[%s11426_s1 + $0x1870] ss:$8 sps:$4 sm:$0xff]   ;;  %v8566_v49 = vld [vmem:[%s11427_s0 + $0xc4] ss:$200 sps:$4 sm:$0xff]  }
 0x2c6   :  { %6124 = vmatprep.subr.bf16.mxu1 %v8425_v51  ;;  %v8516_v50 = vld [vmem:[%s11427_s0 + $0xb8] ss:$200 sps:$4 sm:$0xff]   ;;  %v8521_v51 = vld [vmem:[%s11426_s1 + $0x1864] ss:$8 sps:$4 sm:$0xff]  }
 0x2c7   :  { %6082 = vmatpush1.bf16.msra.mxu0 %v8420_v52  ;;  %v8519_v52 = vld [vmem:[%s11426_s1 + $0x1860] ss:$8 sps:$4 sm:$0xff]  }
 0x2c8   :  { %6083 = vmatprep.subr.bf16.mxu0 %v8428_v53  ;;  %v8524_v53 = vld [vmem:[%s11426_s1 + $0x1854] ss:$8 sps:$4 sm:$0xff]  }
 0x2c9   :  { %6125 = vmatpush1.bf16.msra.mxu1 %v8423_v54  ;;  %v8522_v54 = vld [vmem:[%s11426_s1 + $0x1850] ss:$8 sps:$4 sm:$0xff]  }
 0x2ca   :  { %6126 = vmatprep.subr.bf16.mxu1 %v8431_v55  ;;  %v8527_v55 = vld [vmem:[%s11426_s1 + $0x1844] ss:$8 sps:$4 sm:$0xff]  }
 0x2cb   :  { %6084 = vmatpush1.bf16.msra.mxu0 %v8426_v56  ;;  %v8525_v56 = vld [vmem:[%s11426_s1 + $0x1840] ss:$8 sps:$4 sm:$0xff]  }
 0x2cc   :  { %6085 = vmatprep.subr.bf16.mxu0 %v8434_v57  ;;  %v8530_v57 = vld [vmem:[%s11426_s1 + $0x1834] ss:$8 sps:$4 sm:$0xff]  }
 0x2cd   :  { %6127 = vmatpush1.bf16.msra.mxu1 %v8429_v58  ;;  %v8528_v58 = vld [vmem:[%s11426_s1 + $0x1830] ss:$8 sps:$4 sm:$0xff]  }
 0x2ce   :  { %6128 = vmatprep.subr.bf16.mxu1 %v8437_v59  ;;  %v8533_v59 = vld [vmem:[%s11426_s1 + $0x1824] ss:$8 sps:$4 sm:$0xff]  }
 0x2cf   :  { %6086 = vmatpush1.bf16.msra.mxu0 %v8432_v60  ;;  %v8531_v60 = vld [vmem:[%s11426_s1 + $0x1820] ss:$8 sps:$4 sm:$0xff]  }
 0x2d0   :  { %6087 = vmatprep.subr.bf16.mxu0 %v8440_v61  ;;  %v8536_v61 = vld [vmem:[%s11426_s1 + $0x1814] ss:$8 sps:$4 sm:$0xff]  }
 0x2d1   :  { %6129 = vmatpush1.bf16.msra.mxu1 %v8435_v62  ;;  %v8534_v62 = vld [vmem:[%s11426_s1 + $0x1810] ss:$8 sps:$4 sm:$0xff]  }
 0x2d2   :  { %6130 = vmatprep.subr.bf16.mxu1 %v8443_v63  ;;  %v8539_v63 = vld [vmem:[%s11426_s1 + $0x1804] ss:$8 sps:$4 sm:$0xff]  }
 0x2d3   :  { %6088 = vmatpush1.bf16.msra.mxu0 %v8438_v0  ;;  %v8537_v0 = vld [vmem:[%s11426_s1 + $0x1800] ss:$8 sps:$4 sm:$0xff]  }
 0x2d4   :  { %6089 = vmatprep.subr.bf16.mxu0 %v8446_v1  ;;  %v8542_v1 = vld [vmem:[%s11426_s1 + $0x18f4] ss:$8 sps:$4 sm:$0xff]  }
 0x2d5   :  { %6131 = vmatpush1.bf16.msra.mxu1 %v8441_v2  ;;  %v8540_v2 = vld [vmem:[%s11426_s1 + $0x18f0] ss:$8 sps:$4 sm:$0xff]  }
 0x2d6   :  { %6132 = vmatprep.subr.bf16.mxu1 %v8449_v3  ;;  %v8545_v3 = vld [vmem:[%s11426_s1 + $0x18e4] ss:$8 sps:$4 sm:$0xff]  }
 0x2d7   :  { %6090 = vmatpush1.bf16.msra.mxu0 %v8444_v4  ;;  %v8543_v4 = vld [vmem:[%s11426_s1 + $0x18e0] ss:$8 sps:$4 sm:$0xff]  }
 0x2d8   :  { %6091 = vmatprep.subr.bf16.mxu0 %v8452_v5  ;;  %v8548_v5 = vld [vmem:[%s11426_s1 + $0x18d4] ss:$8 sps:$4 sm:$0xff]  }
 0x2d9   :  { %6133 = vmatpush1.bf16.msra.mxu1 %v8447_v6  ;;  %v8546_v6 = vld [vmem:[%s11426_s1 + $0x18d0] ss:$8 sps:$4 sm:$0xff]  }
 0x2da   :  { %6134 = vmatprep.subr.bf16.mxu1 %v8455_v7  ;;  %v8551_v7 = vld [vmem:[%s11426_s1 + $0x18c4] ss:$8 sps:$4 sm:$0xff]  }
 0x2db   :  { %6092 = vmatpush1.bf16.msra.mxu0 %v8450_v8  ;;  %v8549_v8 = vld [vmem:[%s11426_s1 + $0x18c0] ss:$8 sps:$4 sm:$0xff]  }
 0x2dc   :  { %6093 = vmatprep.subr.bf16.mxu0 %v8458_v9  ;;  %v8554_v9 = vld [vmem:[%s11426_s1 + $0x18b4] ss:$8 sps:$4 sm:$0xff]  }
 0x2dd   :  { %6135 = vmatpush1.bf16.msra.mxu1 %v8453_v10  ;;  %v8552_v10 = vld [vmem:[%s11426_s1 + $0x18b0] ss:$8 sps:$4 sm:$0xff]  }
 0x2de   :  { %6136 = vmatprep.subr.bf16.mxu1 %v8461_v11  ;;  %v8557_v11 = vld [vmem:[%s11426_s1 + $0x18a4] ss:$8 sps:$4 sm:$0xff]  }
 0x2df   :  { %6094 = vmatpush1.bf16.msra.mxu0 %v8456_v12  ;;  %v8555_v12 = vld [vmem:[%s11426_s1 + $0x18a0] ss:$8 sps:$4 sm:$0xff]  }
 0x2e0   :  { %6095 = vmatprep.subr.bf16.mxu0 %v8464_v13  ;;  %v8560_v13 = vld [vmem:[%s11426_s1 + $0x1894] ss:$8 sps:$4 sm:$0xff]  }
 0x2e1   :  { %6137 = vmatpush1.bf16.msra.mxu1 %v8459_v14  ;;  %v8558_v14 = vld [vmem:[%s11426_s1 + $0x1890] ss:$8 sps:$4 sm:$0xff]  }
 0x2e2   :  { %6138 = vmatprep.subr.bf16.mxu1 %v8467_v15  ;;  %v8563_v15 = vld [vmem:[%s11426_s1 + $0x1884] ss:$8 sps:$4 sm:$0xff]  }
 0x2e3   :  { %6096 = vmatpush2.bf16.msra.mxu0 %v8462_v16  ;;  %v8561_v16 = vld [vmem:[%s11426_s1 + $0x1880] ss:$8 sps:$4 sm:$0xff]  }
 0x2e4   :  { %6097 = vmatprep.subr.bf16.mxu0 %v8470_v17  ;;  %v8564_v17 = vld [vmem:[%s11427_s0 + $0xc0] ss:$200 sps:$4 sm:$0xff]  }
 0x2e5   :  { %6139 = vmatpush2.bf16.msra.mxu1 %v8465_v18  ;;  %v8567_v18 = vld [vmem:[%s11428_s3 + $0x78] sm:$0xff]  }
 0x2e6   :  { %6140 = vmatprep.subr.bf16.mxu1 %v8473_v19  ;;  %v8568_v19 = vld [vmem:[%s11428_s3 + $0x38] sm:$0xff]  }
 0x2e7   :  { %6098 = vmatpush2.bf16.msra.mxu0 %v8468_v20  ;;  %v8569_v20 = vld [vmem:[%s11428_s3 + $0x70] sm:$0xff]  }
 0x2e8   :  { %6099 = vmatprep.subr.bf16.mxu0 %v8476_v21  ;;  %v8570_v21 = vld [vmem:[%s11428_s3 + $0x30] sm:$0xff]  }
 0x2e9   :  { %6141 = vmatpush2.bf16.msra.mxu1 %v8471_v22  ;;  %v8571_v22 = vld [vmem:[%s11428_s3 + $0x68] sm:$0xff]  }
 0x2ea   :  { %6142 = vmatprep.subr.bf16.mxu1 %v8479_v23  ;;  %v8572_v23 = vld [vmem:[%s11428_s3 + $0x28] sm:$0xff]  }
 0x2eb   :  { %6100 = vmatpush2.bf16.msra.mxu0 %v8474_v24  ;;  %v8573_v24 = vld [vmem:[%s11428_s3 + $0x60] sm:$0xff]  }
 0x2ec   :  { %6101 = vmatprep.subr.bf16.mxu0 %v8482_v25  ;;  %v8574_v25 = vld [vmem:[%s11428_s3 + $0x20] sm:$0xff]  }
 0x2ed   :  { %6143 = vmatpush2.bf16.msra.mxu1 %v8477_v26  ;;  %v8575_v26 = vld [vmem:[%s11428_s3 + $0x58] sm:$0xff]  }
 0x2ee   :  { %6144 = vmatprep.subr.bf16.mxu1 %v8485_v27  ;;  %v11190_v27 = vpop.f32.mrf.mxu0 }
 0x2ef   :  { %6102 = vmatpush2.bf16.msra.mxu0 %v8480_v28  ;;  %v8576_v28 = vld [vmem:[%s11428_s3 + $0x18] sm:$0xff]  }
 0x2f0   :  { %6103 = vmatprep.subr.bf16.mxu0 %v8488_v29  ;;  %v11195_v29 = vpop.f32.mrf.mxu0 }
 0x2f1   :  { %6145 = vmatpush2.bf16.msra.mxu1 %v8483_v30  ;;  %v11197_v30 = vpop.f32.mrf.mxu1 }
 0x2f2   :  { %6146 = vmatprep.subr.bf16.mxu1 %v8491_v31  ;;  %v11199_v31 = vpop.f32.mrf.mxu0 }
 0x2f3   :  { %6104 = vmatpush2.bf16.msra.mxu0 %v8486_v32  ;;  %v11201_v32 = vpop.f32.mrf.mxu1 }
 0x2f4   :  { %6105 = vmatprep.subr.bf16.mxu0 %v8494_v33  ;;  %v11203_v33 = vpop.f32.mrf.mxu0 }
 0x2f5   :  { %6147 = vmatpush2.bf16.msra.mxu1 %v8489_v34  ;;  %v11205_v34 = vpop.f32.mrf.mxu1 }
 0x2f6   :  { %6148 = vmatprep.subr.bf16.mxu1 %v8497_v35  ;;  %v11207_v35 = vpop.f32.mrf.mxu0 }
 0x2f7   :  { %6106 = vmatpush2.bf16.msra.mxu0 %v8492_v36  ;;  %v11209_v36 = vpop.f32.mrf.mxu1 }
 0x2f8   :  { %6107 = vmatprep.subr.bf16.mxu0 %v8500_v37  ;;  %v11211_v37 = vpop.f32.mrf.mxu0 }
 0x2f9   :  { %6149 = vmatpush2.bf16.msra.mxu1 %v8495_v38  ;;  %v11213_v38 = vpop.f32.mrf.mxu1 }
 0x2fa   :  { %6150 = vmatprep.subr.bf16.mxu1 %v8503_v39  ;;  %v11215_v39 = vpop.f32.mrf.mxu0 }
 0x2fb   :  { %6108 = vmatpush2.bf16.msra.mxu0 %v8498_v40  ;;  %v11217_v40 = vpop.f32.mrf.mxu1 }
 0x2fc   :  { %6109 = vmatprep.subr.bf16.mxu0 %v8506_v41  ;;  %v11219_v41 = vpop.f32.mrf.mxu0 }
 0x2fd   :  { %6151 = vmatpush2.bf16.msra.mxu1 %v8501_v42  ;;  %v11221_v42 = vpop.f32.mrf.mxu1 }
 0x2fe   :  { %6152 = vmatprep.subr.bf16.mxu1 %v8509_v43  ;;  %v11223_v43 = vpop.f32.mrf.mxu0 }
 0x2ff   :  { %6110 = vmatpush2.bf16.msra.mxu0 %v8504_v44  ;;  %v11225_v44 = vpop.f32.mrf.mxu1 }
 0x300   :  { %6165 = vmatprep.subr.bf16.mxu0 %v8515_v45  ;;  %v11227_v45 = vpop.f32.mrf.mxu0 }
 0x301   :  { %6153 = vmatpush2.bf16.msra.mxu1 %v8507_v46  ;;  %v11229_v46 = vpop.f32.mrf.mxu1 }
 0x302   :  { %6112 = vmatmul.mubr.bf16.vlgmr.msra.gmra.mxu0 %v8510_v47  ;;  %7270 = vmatprep.subr.bf16.mxu1 %v8567_v18  ;;  %v11231_v47 = vpop.f32.mrf.mxu0  ;;  %v11432_v18 = vlaneseq }
 0x303   :  { %6166 = vmatpush1.bf16.msra.mxu0 %v8513_v48  ;;  %6197 = vmatprep.mubr.bf16.mxu0 %v8566_v49  ;;  %v11233_v48 = vpop.f32.mrf.mxu1 }
 0x304   :  { %6155 = vmatmul.mubr.bf16.vlgmr.msra.gmra.mxu1 %v8516_v50  ;;  %6167 = vmatprep.subr.bf16.mxu0 %v8521_v51  ;;  %v11235_v49 = vpop.f32.mrf.mxu0  ;;  %v8577_v51 = vld [vmem:[%s11428_s3 + $0x50] sm:$0xff]  }
 0x305   :  { %7271 = vmatpush3.bf16.msra.mxu1 %v8568_v19  ;;  %v11237_v50 = vpop.f32.mrf.mxu1 }
 0x306   :  { %7272 = vmatprep.subr.bf16.mxu1 %v8569_v20 }
 0x307   :  { %6168 = vmatpush1.bf16.msra.mxu0 %v8519_v52  ;;  %v8578_v52 = vld [vmem:[%s11428_s3 + $0x10] sm:$0xff]  }
 0x308   :  { %6169 = vmatprep.subr.bf16.mxu0 %v8524_v53  ;;  %v11245_v53 = vpop.f32.mrf.mxu0 }
 0x309   :  { %7273 = vmatpush3.bf16.msra.mxu1 %v8570_v21 }
 0x30a   :  { %7274 = vmatprep.subr.bf16.mxu1 %v8571_v22  ;;  %v874_v22 = vshrl.u32 %v11432_v18, 7 }
 0x30b   :  { %6170 = vmatpush1.bf16.msra.mxu0 %v8522_v54  ;;  %v11247_v54 = vpop.f32.mrf.mxu1 }
 0x30c   :  { %6171 = vmatprep.subr.bf16.mxu0 %v8527_v55  ;;  %v8579_v55 = vld [vmem:[%s11428_s3 + $0x48] sm:$0xff]  }
 0x30d   :  { %7275 = vmatpush3.bf16.msra.mxu1 %v8572_v23 }
 0x30e   :  { %7276 = vmatprep.subr.bf16.mxu1 %v8573_v24 }
 0x30f   :  { %6172 = vmatpush1.bf16.msra.mxu0 %v8525_v56  ;;  %v8580_v56 = vld [vmem:[%s11428_s3 + $0x8] sm:$0xff]  }
 0x310   :  { %6173 = vmatprep.subr.bf16.mxu0 %v8530_v57  ;;  %v11255_v57 = vpop.f32.mrf.mxu0 }
 0x311   :  { %7277 = vmatpush3.bf16.msra.mxu1 %v8574_v25  ;;  %v879_v25 = vsub.s32 1, %v874_v22 }
 0x312   :  { %7278 = vmatprep.subr.bf16.mxu1 %v8575_v26  ;;  %v871_v26 = vld [vmem:[%s11429_s2] sm:$0x3] }
 0x313   :  { %6174 = vmatpush1.bf16.msra.mxu0 %v8528_v58  ;;  %v11257_v58 = vpop.f32.mrf.mxu1 }
 0x314   :  { %6175 = vmatprep.subr.bf16.mxu0 %v8533_v59  ;;  %v8581_v59 = vld [vmem:[%s11428_s3 + $0x40] sm:$0xff]  }
 0x315   :  { %7279 = vmatpush3.bf16.msra.mxu1 %v8576_v28  ;;  %v875_v28 = vsub.s32 0, %v874_v22 }
 0x316   :  { %7280 = vmatprep.subr.bf16.mxu1 %v8577_v51 }
 0x317   :  { %6176 = vmatpush1.bf16.msra.mxu0 %v8531_v60  ;;  %v8582_v60 = vld [vmem:[%s11428_s3] sm:$0xff]  }
 0x318   :  { %6177 = vmatprep.subr.bf16.mxu0 %v8536_v61  ;;  %v11265_v61 = vpop.f32.mrf.mxu0 }
 0x319   :  { %7281 = vmatpush3.bf16.msra.mxu1 %v8578_v52 }
 0x31a   :  { %7282 = vmatprep.subr.bf16.mxu1 %v8579_v55  ;;  %v880_v55 = vrot.slane %v871_v26, %v879_v25 }
 0x31b   :  { %6178 = vmatpush1.bf16.msra.mxu0 %v8534_v62  ;;  %v11267_v62 = vpop.f32.mrf.mxu1 }
 0x31c   :  { %6179 = vmatprep.subr.bf16.mxu0 %v8539_v63  ;;  %v11269_v63 = vpop.f32.mrf.mxu0  ;;  %v5170_v18 = vadd.f32 %v11195_v29, %v880_v55  ;;  %v5174_v22 = vadd.f32 %v11203_v33, %v880_v55 }
 0x31d   :  { %7283 = vmatpush3.bf16.msra.mxu1 %v8580_v56  ;;  %v876_v56 = vrot.slane %v871_v26, %v875_v28 }
 0x31e   :  { %7284 = vmatprep.subr.bf16.mxu1 %v8581_v59  ;;  %v5217_v29 = vadd.f32 %v11209_v36, %v5174_v22 }
 0x31f   :  { %6180 = vmatpush1.bf16.msra.mxu0 %v8537_v0  ;;  %v11271_v0 = vpop.f32.mrf.mxu1 }
 0x320   :  { %6181 = vmatprep.subr.bf16.mxu0 %v8542_v1  ;;  %v11273_v1 = vpop.f32.mrf.mxu0  ;;  %v5260_v33 = vadd.f32 %v11219_v41, %v5217_v29 }
 0x321   :  { %7285 = vmatpush3.bf16.msra.mxu1 %v8582_v60 }
 0x322   :  { %v5303_v36 = vadd.f32 %v11225_v44, %v5260_v33 }
 0x323   :  { %6182 = vmatpush2.bf16.msra.mxu0 %v8540_v2  ;;  %v11275_v2 = vpop.f32.mrf.mxu1 }
 0x324   :  { %6183 = vmatprep.subr.bf16.mxu0 %v8545_v3  ;;  %v11277_v3 = vpop.f32.mrf.mxu0 }
 0x327   :  { %6184 = vmatpush2.bf16.msra.mxu0 %v8543_v4  ;;  %v11279_v4 = vpop.f32.mrf.mxu1 }
 0x328   :  { %6185 = vmatprep.subr.bf16.mxu0 %v8548_v5  ;;  %v11281_v5 = vpop.f32.mrf.mxu0 }
 0x32b   :  { %6186 = vmatpush2.bf16.msra.mxu0 %v8546_v6  ;;  %v11283_v6 = vpop.f32.mrf.mxu1 }
 0x32c   :  { %6187 = vmatprep.subr.bf16.mxu0 %v8551_v7  ;;  %v11285_v7 = vpop.f32.mrf.mxu0 }
 0x32f   :  { %6188 = vmatpush2.bf16.msra.mxu0 %v8549_v8  ;;  %v11287_v8 = vpop.f32.mrf.mxu1 }
 0x330   :  { %6189 = vmatprep.subr.bf16.mxu0 %v8554_v9  ;;  %v11289_v9 = vpop.f32.mrf.mxu0 }
 0x333   :  { %6190 = vmatpush2.bf16.msra.mxu0 %v8552_v10  ;;  %v11291_v10 = vpop.f32.mrf.mxu1 }
 0x334   :  { %6191 = vmatprep.subr.bf16.mxu0 %v8557_v11  ;;  %v11293_v11 = vpop.f32.mrf.mxu0 }
 0x337   :  { %6192 = vmatpush2.bf16.msra.mxu0 %v8555_v12  ;;  %v11295_v12 = vpop.f32.mrf.mxu1 }
 0x338   :  { %6193 = vmatprep.subr.bf16.mxu0 %v8560_v13  ;;  %v11297_v13 = vpop.f32.mrf.mxu0 }
 0x33b   :  { %6194 = vmatpush2.bf16.msra.mxu0 %v8558_v14  ;;  %v11299_v14 = vpop.f32.mrf.mxu1 }
 0x33c   :  { %6195 = vmatprep.subr.bf16.mxu0 %v8563_v15  ;;  %v11301_v15 = vpop.f32.mrf.mxu0 }
 0x33f   :  { %6196 = vmatpush2.bf16.msra.mxu0 %v8561_v16  ;;  %v11303_v16 = vpop.f32.mrf.mxu1 }
 0x341   :  { %v11307_v19 = vpop.f32.mrf.mxu1 }
 0x342   :  { %6198 = vmatmul.mubr.bf16.vlgmr.msra.gmra.mxu0 %v8564_v17  ;;  %v11305_v17 = vpop.f32.mrf.mxu0 }
 0x343   :  { %11433 = vst [vmem:[#allocation2_spill] sm:$0xff] %v11305_v17  ;;  %v11311_v21 = vpop.f32.mrf.mxu1 }
 0x344   :  { %v11309_v20 = vpop.f32.mrf.mxu0  ;;  %11434 = vst [vmem:[#allocation3_spill] sm:$0xff] %v11311_v21  ;;  %v5172_v21 = vadd.f32 %v11199_v31, %v876_v56 }
 0x345   :  { %v11316_v24 = vpop.f32.mrf.mxu1 }
 0x346   :  { %v11314_v23 = vpop.f32.mrf.mxu0  ;;  %11436 = vst [vmem:[#allocation5_spill] sm:$0xff] %v11316_v24  ;;  %v5168_v24 = vadd.f32 %v11190_v27, %v876_v56  ;;  %v5215_v25 = vadd.f32 %v11205_v34, %v5172_v21 }
 0x347   :  { %11435 = vst [vmem:[#allocation4_spill] sm:$0xff] %v11314_v23  ;;  %v11323_v52 = vpop.f32.mrf.mxu1 }
 0x348   :  { %v11321_v51 = vpop.f32.mrf.mxu0  ;;  %11437 = vst [vmem:[#allocation6_spill] sm:$0xff] %v11323_v52  ;;  %v5213_v52 = vadd.f32 %v11201_v32, %v5170_v18  ;;  %v5211_v26 = vadd.f32 %v11197_v30, %v5168_v24  ;;  %v5258_v31 = vadd.f32 %v11215_v39, %v5215_v25  ;;  %v5346_v24 = vadd.f32 %v11235_v49, %v5303_v36 }
 0x349   :  { %v11327_v60 = vpop.f32.mrf.mxu1 }
 0x34a   :  { %v11325_v59 = vpop.f32.mrf.mxu0  ;;  %v5256_v27 = vadd.f32 %v11211_v37, %v5213_v52  ;;  %v5254_v56 = vadd.f32 %v11207_v35, %v5211_v26  ;;  %v5301_v34 = vadd.f32 %v11221_v42, %v5258_v31 }
 0x34b   :  { %11438 = vst [vmem:[#allocation7_spill] sm:$0xff] %v11325_v59  ;;  %v11334_v23 = vpop.f32.mrf.mxu1 }
 0x34c   :  { %v11332_v17 = vpop.f32.mrf.mxu0  ;;  %v5299_v30 = vadd.f32 %v11217_v40, %v5256_v27  ;;  %v5297_v18 = vadd.f32 %v11213_v38, %v5254_v56  ;;  %v5344_v35 = vadd.f32 %v11231_v47, %v5301_v34 }
 0x34d   :  { %v11342_v59 = vpop.f32.mrf.mxu1 }
 0x34e   :  { %v11340_v28 = vpop.f32.mrf.mxu0  ;;  %v5342_v37 = vadd.f32 %v11227_v45, %v5299_v30  ;;  %v5340_v39 = vadd.f32 %v11223_v43, %v5297_v18  ;;  %v5387_v42 = vadd.f32 %v11237_v50, %v5344_v35  ;;  %v5389_v45 = vadd.f32 %v11247_v54, %v5346_v24  ;;  %v11440_v35 = vld [vmem:[#allocation2_spill] sm:$0xff] }
 0x34f   :  { %v11351_v32 = vpop.f32.mrf.mxu1 }
 0x350   :  { %v11349_v55 = vpop.f32.mrf.mxu0  ;;  %v5385_v38 = vadd.f32 %v11233_v48, %v5342_v37  ;;  %v5383_v44 = vadd.f32 %v11229_v46, %v5340_v39  ;;  %v5430_v43 = vadd.f32 %v11265_v61, %v5387_v42  ;;  %v5432_v26 = vadd.f32 %v11269_v63, %v5389_v45  ;;  %v11439_v37 = vld [vmem:[#allocation4_spill] sm:$0xff] }
 0x351   :  { %v11362_v41 = vpop.f32.mrf.mxu1 }
 0x352   :  { %v11356_v21 = vpop.f32.mrf.mxu0  ;;  %v5428_v47 = vadd.f32 %v11255_v57, %v5385_v38  ;;  %v5426_v22 = vadd.f32 %v11245_v53, %v5383_v44  ;;  %v5473_v48 = vadd.f32 %v11271_v0, %v5430_v43  ;;  %v5475_v54 = vadd.f32 %v11275_v2, %v5432_v26  ;;  %v11441_v38 = vld [vmem:[#allocation5_spill] sm:$0xff]  ;;  %v11444_v43 = vld [vmem:[#allocation7_spill] sm:$0xff] }
 0x353   :  { %v11367_v40 = vpop.f32.mrf.mxu1 }
 0x354   :  { %v11365_v52 = vpop.f32.mrf.mxu0  ;;  %v5471_v29 = vadd.f32 %v11267_v62, %v5428_v47  ;;  %v5469_v50 = vadd.f32 %v11257_v58, %v5426_v22  ;;  %v5516_v61 = vadd.f32 %v11281_v5, %v5473_v48  ;;  %v5518_v56 = vadd.f32 %v11285_v7, %v5475_v54 }
 0x355   :  { %v5900_v49 = vpop.f32.mrf.mxu1 }
 0x356   :  { %v5859_v25 = vpop.f32.mrf.mxu0  ;;  %v5514_v57 = vadd.f32 %v11277_v3, %v5471_v29  ;;  %v5512_v53 = vadd.f32 %v11273_v1, %v5469_v50  ;;  %v5559_v0 = vadd.f32 %v11287_v8, %v5516_v61  ;;  %v5561_v2 = vadd.f32 %v11291_v10, %v5518_v56 }
 0x357   :  { %v5902_v46 = vpop.f32.mrf.mxu1 }
 0x358   :  { %v5861_v27 = vpop.f32.mrf.mxu0  ;;  %v5557_v62 = vadd.f32 %v11283_v6, %v5514_v57  ;;  %v5555_v58 = vadd.f32 %v11279_v4, %v5512_v53  ;;  %v5602_v5 = vadd.f32 %v11297_v13, %v5559_v0  ;;  %v5604_v34 = vadd.f32 %v11301_v15, %v5561_v2 }
 0x359   :  { %v5904_v63 = vpop.f32.mrf.mxu1 }
 0x35a   :  { %v5941_v31 = vpop.f32.mrf.mxu0  ;;  %v5600_v3 = vadd.f32 %v11293_v11, %v5557_v62  ;;  %v5598_v1 = vadd.f32 %v11289_v9, %v5555_v58  ;;  %v5645_v8 = vadd.f32 %v11303_v16, %v5602_v5  ;;  %v5647_v36 = vadd.f32 %v11307_v19, %v5604_v34  ;;  %v11443_v16 = vld [vmem:[#allocation3_spill] sm:$0xff] }
 0x35b   :  { %v5984_v30 = vpop.f32.mrf.mxu1 }
 0x35c   :  { %v5943_v33 = vpop.f32.mrf.mxu0  ;;  %v5643_v6 = vadd.f32 %v11299_v14, %v5600_v3  ;;  %v5641_v4 = vadd.f32 %v11295_v12, %v5598_v1  ;;  %v5688_v11 = vadd.f32 %v11439_v37, %v5645_v8  ;;  %v5690_v15 = vadd.f32 %v11321_v51, %v5647_v36  ;;  %v11442_v14 = vld [vmem:[#allocation6_spill] sm:$0xff] }
 0x35d   :  { %v5986_v18 = vpop.f32.mrf.mxu1 }
 0x35e   :  { %v5945_v7 = vpop.f32.mrf.mxu0  ;;  %v5686_v10 = vadd.f32 %v11309_v20, %v5643_v6  ;;  %v5684_v13 = vadd.f32 %v11440_v35, %v5641_v4  ;;  %v5731_v44 = vadd.f32 %v11442_v14, %v5688_v11  ;;  %v5733_v19 = vadd.f32 %v11327_v60, %v5690_v15 }
 0x35f   :  { %v5988_v9 = vpop.f32.mrf.mxu1 }
 0x360   :  { %v5947_v39 = vpop.f32.mrf.mxu0  ;;  %v5729_v42 = vadd.f32 %v11441_v38, %v5686_v10  ;;  %v5727_v45 = vadd.f32 %v11443_v16, %v5684_v13  ;;  %v5774_v47 = vadd.f32 %v11340_v28, %v5731_v44  ;;  %v5776_v51 = vadd.f32 %v11349_v55, %v5733_v19 }
 0x361   :  { %v5990_v12 = vpop.f32.mrf.mxu1 }
 0x362   :  { %v5772_v20 = vadd.f32 %v11332_v17, %v5729_v42  ;;  %v5770_v22 = vadd.f32 %v11444_v43, %v5727_v45  ;;  %v5817_v50 = vadd.f32 %v11351_v32, %v5774_v47  ;;  %v5819_v60 = vadd.f32 %v11362_v41, %v5776_v51 }
 0x364   :  { %v5815_v48 = vadd.f32 %v11342_v59, %v5772_v20  ;;  %v5813_v54 = vadd.f32 %v11334_v23, %v5770_v22  ;;  %v5860_v53 = vadd.f32 %v5859_v25, %v5817_v50  ;;  %v5862_v56 = vadd.f32 %v5861_v27, %v5819_v60 }
 0x366   :  { %v5858_v17 = vadd.f32 %v11365_v52, %v5815_v48  ;;  %v5856_v28 = vadd.f32 %v11356_v21, %v5813_v54  ;;  %v5903_v55 = vadd.f32 %v5902_v46, %v5860_v53  ;;  %v5905_v32 = vadd.f32 %v5904_v63, %v5862_v56  ;;  %v7253_v48 = vld [vmem:[%s11430_s4] ss:$0 sm:$0xff] }
 0x367   :  { %v11445_v54 = vlaneseq }
 0x368   :  { %v5901_v58 = vadd.f32 %v5900_v49, %v5858_v17  ;;  %v5899_v59 = vadd.f32 %v11367_v40, %v5856_v28  ;;  %v5946_v23 = vadd.f32 %v5945_v7, %v5903_v55  ;;  %v5948_v34 = vadd.f32 %v5947_v39, %v5905_v32 }
 0x36a   :  { %v5944_v3 = vadd.f32 %v5943_v33, %v5901_v58  ;;  %v5942_v5 = vadd.f32 %v5941_v31, %v5899_v59  ;;  %v5989_v25 = vadd.f32 %v5988_v9, %v5946_v23  ;;  %v5991_v21 = vadd.f32 %v5990_v12, %v5948_v34 }
 0x36c   :  { %v5987_v52 = vadd.f32 %v5986_v18, %v5944_v3  ;;  %v5985_v8 = vadd.f32 %v5984_v30, %v5942_v5 }
 0x382   :  { %v6027_v24 = vpop.f32.mrf.mxu0 }
 0x383   :  { %v6028_v36 = vadd.f32 %v6027_v24, %v5985_v8 }
 0x384   :  { %v6029_v26 = vpop.f32.mrf.mxu0  ;;  %v6070_v29 = vpop.f32.mrf.mxu1 }
 0x385   :  { %v6030_v27 = vadd.f32 %v6029_v26, %v5987_v52  ;;  %v6071_v63 = vadd.f32 %v6070_v29, %v6028_v36 }
 0x386   :  { %v6031_v57 = vpop.f32.mrf.mxu0  ;;  %v6072_v61 = vpop.f32.mrf.mxu1 }
 0x387   :  { %v6032_v4 = vadd.f32 %v6031_v57, %v5989_v25  ;;  %v6073_v40 = vadd.f32 %v6072_v61, %v6030_v27  ;;  %v6391_v57 = vand.u32 127, %v11445_v54 }
 0x388   :  { %v6033_v62 = vpop.f32.mrf.mxu0  ;;  %v6074_v0 = vpop.f32.mrf.mxu1 }
 0x389   :  { %v6034_v10 = vadd.f32 %v6033_v62, %v5991_v21  ;;  %v6075_v37 = vadd.f32 %v6074_v0, %v6032_v4  ;;  %vm6392_vm0 = vcmp.eq.s32.totalorder %v6391_v57, 50 }
 0x38a   :  { %v6076_v1 = vpop.f32.mrf.mxu1 }
 0x38b   :  { %v6077_v31 = vadd.f32 %v6076_v1, %v6034_v10 }
 0x3c2   :  { %v6113_v2 = vpop.f32.mrf.mxu0 }
 0x3c3   :  { %v6114_v13 = vadd.f32 %v6113_v2, %v6071_v63 }
 0x3c4   :  { %v6115_v41 = vpop.f32.mrf.mxu0  ;;  %v6156_v6 = vpop.f32.mrf.mxu1 }
 0x3c5   :  { %v6116_v11 = vadd.f32 %v6115_v41, %v6073_v40  ;;  %v6157_v42 = vadd.f32 %v6156_v6, %v6114_v13 }
 0x3c6   :  { %v6117_v49 = vpop.f32.mrf.mxu0  ;;  %v6158_v46 = vpop.f32.mrf.mxu1 }
 0x3c7   :  { %v6118_v35 = vadd.f32 %v6117_v49, %v6075_v37  ;;  %v6159_v15 = vadd.f32 %v6158_v46, %v6116_v11 }
 0x3c8   :  { %v6119_v33 = vpop.f32.mrf.mxu0  ;;  %v6160_v7 = vpop.f32.mrf.mxu1 }
 0x3c9   :  { %v6120_v18 = vadd.f32 %v6119_v33, %v6077_v31  ;;  %v6161_v38 = vadd.f32 %v6160_v7, %v6118_v35 }
 0x3ca   :  { %v6162_v9 = vpop.f32.mrf.mxu1 }
 0x3cb   :  { %v6163_v14 = vadd.f32 %v6162_v9, %v6120_v18 }
 0x402   :  { %v6199_v39 = vpop.f32.mrf.mxu0 }
 0x403   :  { %v6200_v45 = vadd.f32 %v6199_v39, %v6157_v42 }
 0x404   :  { %v6201_v30 = vpop.f32.mrf.mxu0 }
 0x405   :  { %v6202_v44 = vadd.f32 %v6201_v30, %v6159_v15  ;;  %v6208_v22 = vmax.f32 %v6200_v45, 0.0 }
 0x406   :  { %v6203_v24 = vpop.f32.mrf.mxu0 }
 0x407   :  { %v6204_v16 = vadd.f32 %v6203_v24, %v6161_v38  ;;  %v6209_v47 = vmax.f32 %v6202_v44, 0.0 }
 0x408   :  { %v6205_v12 = vpop.f32.mrf.mxu0 }
 0x409   :  { %v6206_v19 = vadd.f32 %v6205_v12, %v6163_v14  ;;  %v6210_v20 = vmax.f32 %v6204_v16, 0.0 }
 0x40b   :  { %v6211_v43 = vmax.f32 %v6206_v19, 0.0  ;;  %v6212_v29 = vpack.c.bf16 %v6210_v20, %v6208_v22 }
 0x40d   :  { %v6213_v26 = vpack.c.bf16 %v6211_v43, %v6209_v47 }
 0x40f   :  { %6381 = vmatprep.mubr.bf16.mxu1 %v6213_v26 }
 0x410   :  { %6382 = vmatmul.mubr.bf16.vlgmr.msra.gmra.mxu1 %v6212_v29 }
 0x4d0   :  { %v7286_v51 = vpop.f32.mrf.mxu1 }
 0x4d2   :  { %v7287_v50 = vpop.f32.mrf.mxu1 }
 0x4d3   :  { %v7288_v61 = vadd.f32 %v7287_v50, %v7286_v51 }
 0x4d4   :  { %v7289_v60 = vpop.f32.mrf.mxu1 }
 0x4d5   :  { %v6384_v17 = vadd.f32 %v7288_v61, %v7253_v48 }
 0x4d6   :  { %v7290_v53 = vpop.f32.mrf.mxu1 }
 0x4d7   :  { %v6393_v28 = vmax.f32 %v6384_v17, 0.0  ;;  %v7291_v56 = vadd.f32 %v7290_v53, %v7289_v60 }
 0x4d9   :  { %v6395_v62 = vsel %vm6392_vm0, %v6393_v28, %v6384_v17  ;;  %v6387_v0 = vadd.f32 %v7291_v56, %v7253_v48 }
 0x4da   :  { %6397 = vst [vmem:[%s11431_s5] sm:$0xff] %v6395_v62 }
 0x4db   :  { %v6394_v58 = vmax.f32 %v6387_v0, 0.0 }
 0x4dd   :  { %v6396_v55 = vsel %vm6392_vm0, %v6394_v58, %v6387_v0 }
 0x4de   :  { %6398 = vst [vmem:[%s11431_s5 + $0x8] sm:$0xff] %v6396_v55 }

</bundles_post_ra>
